<compile_context>
chip_gen: v7x
topology: tpu7x:2x2x1
jax: 0.10.0
libtpu: 0.0.40
codegen_flags: <defaults>
</compile_context>

<pallas_src>
import math

import jax
import jax.numpy as jnp
import numpy as np
from jax.experimental import pallas as pl
from jax.experimental.pallas import tpu as pltpu

LANE = 128          # channel / lane padding
ROW_ALIGN = 16      # sublane padding (multiple of 8 for f32 tiles, 16 for bf16)

# (cout, cin, k, stride, padding, dilation) for conv, conv2, conv3, conv4, conv5
_CONV_CFG = (
    (10, 55, 3, 2, 2, 1),
    (10, 10, 3, 2, 1, 2),
    (15, 10, 1, 1, 0, 1),
    (20, 15, 3, 2, 2, 3),
    (2, 20, 1, 1, 0, 1),
)


def _round_up(x, m):
    return (x + m - 1) // m * m


# --------------------------- in-kernel math ---------------------------------
def _erf_f32(x):
    """f32 erf via the XLA/CHLO rational approximation (VPU + EUP only)."""
    ax = jnp.clip(x, -4.0, 4.0)
    x2 = ax * ax
    alpha = (-2.72614225801306e-10, 2.77068142495902e-08, -2.10102402082508e-06,
             -5.69250639462346e-05, -7.34990630326855e-04, -2.95459980854025e-03,
             -1.60960333262415e-02)
    beta = (-1.45660718464996e-05, -2.13374055278905e-04, -1.68282697438203e-03,
            -7.37332916720468e-03, -1.42647390514189e-02)
    p = jnp.full_like(ax, alpha[0])
    for a in alpha[1:]:
        p = p * x2 + a
    p = p * ax
    q = jnp.full_like(ax, beta[0])
    for b in beta[1:]:
        q = q * x2 + b
    return p * pl.reciprocal(q, approx=True)


def _gelu(v):
    # exactly the module's v*0.5 * (erf(v*0.70710678...) + 1)
    return (v * 0.5) * (_erf_f32(v * 0.7071067811865476) + 1.0)


def _make_fused_kernel(r1, t1, r2, t2, r4, t4):
    """r* = padded output-row counts, t* = number of surviving taps (static)."""

    def tap_conv(act, g_ref, w_ref, b_ref, rout, taps):
        ab = act.astype(jnp.bfloat16)
        # One big gather matmul: (taps*rout, rin) @ (rin, 128) -> f32
        gathered = jnp.dot(g_ref[...], ab, preferred_element_type=jnp.float32)
        if taps > 1:
            # lane-concat of the per-tap blocks -> (rout, taps*128)
            wide = jnp.concatenate(
                [gathered[t * rout:(t + 1) * rout, :] for t in range(taps)],
                axis=1)
        else:
            wide = gathered
        # One deep-K matmul: (rout, taps*128) @ (taps*128, 128) -> f32
        out = jnp.dot(wide.astype(jnp.bfloat16), w_ref[...],
                      preferred_element_type=jnp.float32)
        return out + b_ref[...]

    def conv1x1(act, w_ref, b_ref):
        return jnp.dot(act.astype(jnp.bfloat16), w_ref[...],
                       preferred_element_type=jnp.float32) + b_ref[...]

    def kernel(x_ref,
               g1_ref, w1_ref, b1_ref,
               g2_ref, w2_ref, b2_ref,
               w3_ref, b3_ref,
               g4_ref, w4_ref, b4_ref,
               w5_ref, b5_ref,
               o_ref):
        a = _gelu(tap_conv(x_ref[...], g1_ref, w1_ref, b1_ref, r1, t1))   # conv  + GELU
        a = _gelu(tap_conv(a, g2_ref, w2_ref, b2_ref, r2, t2))            # conv2 + GELU
        a = _gelu(conv1x1(a, w3_ref, b3_ref))                             # conv3 + GELU
        a = _gelu(tap_conv(a, g4_ref, w4_ref, b4_ref, r4, t4))            # conv4 + GELU
        o_ref[...] = conv1x1(a, w5_ref, b5_ref)                           # conv5 (no GELU)

    return kernel


# --------------------------- host-side builders ------------------------------
def _conv_out_hw(h, w, k, s, p, d):
    ho = (h + 2 * p - d * (k - 1) - 1) // s + 1
    wo = (w + 2 * p - d * (k - 1) - 1) // s + 1
    return ho, wo


def _make_gather_stacked(n, hin, win, hout, wout, k, s, p, d, rin_pad, rout_pad):
    """Per-tap 0/1 row-gather matrices, all-zero taps PRUNED, stacked along rows.

    Returns (kept_taps, G) with G of shape (len(kept)*rout_pad, rin_pad);
    G[t*rout_pad + r, q] = 1 selects the tap-t input pixel for output pixel r
    (out-of-bounds taps contribute zero rows = implicit zero padding).
    """
    kept, mats = [], []
    for dy in range(k):
        for dx in range(k):
            g = np.zeros((rout_pad, rin_pad), np.float32)
            for b in range(n):
                for yo in range(hout):
                    yi = yo * s + dy * d - p
                    if yi < 0 or yi >= hin:
                        continue
                    for xo in range(wout):
                        xi = xo * s + dx * d - p
                        if xi < 0 or xi >= win:
                            continue
                        g[b * hout * wout + yo * wout + xo,
                          b * hin * win + yi * win + xi] = 1.0
            if g.any():
                kept.append((dy, dx))
                mats.append(g)
    assert kept, "conv has no geometrically valid tap"
    return kept, np.concatenate(mats, axis=0)


def _stack_weight_taps(w, kept):
    """(Cout,Cin,kh,kw) -> (len(kept)*128, 128), block t rows = W[:, :, dy, dx].T."""
    cout, cin = w.shape[:2]
    wn = np.asarray(w, np.float32)
    blocks = []
    for (dy, dx) in kept:
        blk = np.zeros((LANE, LANE), np.float32)
        blk[:cin, :cout] = wn[:, :, dy, dx].T
        blocks.append(blk)
    return np.concatenate(blocks, axis=0)


def _pad_bias(b):
    out = np.zeros((1, LANE), np.float32)
    bn = np.asarray(b, np.float32)
    out[0, :bn.shape[0]] = bn
    return out


def build_forward(params, x_shape):
    """Pre-pads weights/biases, builds the pruned/stacked gather matrices and
    returns a jitted forward(x) running the whole network in one pallas_call."""
    n, c, h, w = x_shape
    assert c == _CONV_CFG[0][1], "input channel mismatch"

    # spatial plan + padded row counts (rows = N*H*W, padded to ROW_ALIGN)
    spatial = [(h, w)]
    for (_, _, k, s, p, d) in _CONV_CFG:
        spatial.append(_conv_out_hw(spatial[-1][0], spatial[-1][1], k, s, p, d))
    for (hh, ww) in spatial:
        assert hh > 0 and ww > 0, f"non-positive spatial size in plan {spatial}"
    rows = [_round_up(max(n * hh * ww, 1), ROW_ALIGN) for (hh, ww) in spatial]

    (w1, b1), (w2, b2), (w3, b3), (w4, b4), (w5, b5) = params

    cfg1, cfg2, cfg4 = _CONV_CFG[0], _CONV_CFG[1], _CONV_CFG[3]
    kept1, g1 = _make_gather_stacked(n, *spatial[0], *spatial[1], *cfg1[2:], rows[0], rows[1])
    kept2, g2 = _make_gather_stacked(n, *spatial[1], *spatial[2], *cfg2[2:], rows[1], rows[2])
    kept4, g4 = _make_gather_stacked(n, *spatial[3], *spatial[4], *cfg4[2:], rows[3], rows[4])

    bf = jnp.bfloat16   # 0/1 gather entries are exact in bf16; weights well inside 1e-2 tol
    consts = (
        jnp.asarray(g1, bf), jnp.asarray(_stack_weight_taps(w1, kept1), bf), jnp.asarray(_pad_bias(b1)),
        jnp.asarray(g2, bf), jnp.asarray(_stack_weight_taps(w2, kept2), bf), jnp.asarray(_pad_bias(b2)),
        jnp.asarray(_stack_weight_taps(w3, [(0, 0)]), bf), jnp.asarray(_pad_bias(b3)),
        jnp.asarray(g4, bf), jnp.asarray(_stack_weight_taps(w4, kept4), bf), jnp.asarray(_pad_bias(b4)),
        jnp.asarray(_stack_weight_taps(w5, [(0, 0)]), bf), jnp.asarray(_pad_bias(b5)),
    )

    kernel = _make_fused_kernel(rows[1], len(kept1),
                                rows[2], len(kept2),
                                rows[4], len(kept4))

    out_h, out_w = spatial[5]
    cout_final = _CONV_CFG[-1][0]
    rows_in, rows_out = rows[0], rows[5]
    valid_in, valid_out = n * h * w, n * out_h * out_w

    # grid=() -> single invocation; everything fits comfortably in VMEM (<3 MiB).
    # TODO(synk): for batch > 1 add a leading "parallel" grid axis over batch-row
    # blocks so the second TensorCore on v7x is used; pointless at batch 1.
    fused = pl.pallas_call(
        kernel,
        out_shape=jax.ShapeDtypeStruct((rows_out, LANE), jnp.float32),
        compiler_params=pltpu.CompilerParams(vmem_limit_bytes=32 * 1024 * 1024),
    )

    @jax.jit
    def forward(x):
        # NCHW -> (N*H*W, C) rows in bf16, channel lanes zero-padded to 128.
        xr = jnp.transpose(x.reshape(n, c, h * w), (0, 2, 1)).reshape(valid_in, c)
        xp = jnp.pad(xr.astype(jnp.bfloat16),
                     ((0, rows_in - valid_in), (0, LANE - c)))
        out = fused(xp, *consts)                       # (rows_out, 128) f32
        out = out[:valid_out, :cout_final]
        return out.reshape(n, out_h, out_w, cout_final).transpose(0, 3, 1, 2)

    return forward


# --------------------------- parameter init ---------------------------------
def init_conv_params(key, cout, cin, kh, kw):
    kw_key, kb_key = jax.random.split(key)
    fan_in = cin * kh * kw
    bound = 1.0 / math.sqrt(fan_in)
    w = jax.random.uniform(kw_key, (cout, cin, kh, kw), jnp.float32, -bound, bound)
    b = jax.random.uniform(kb_key, (cout,), jnp.float32, -bound, bound)
    return w, b


# --------------------------- pure-JAX reference ------------------------------
def _ref_conv(x, w, b, stride, padding, dilation):
    out = jax.lax.conv_general_dilated(
        x, w, window_strides=(stride, stride),
        padding=[(padding, padding), (padding, padding)],
        rhs_dilation=(dilation, dilation),
        dimension_numbers=("NCHW", "OIHW", "NCHW"),
        precision=jax.lax.Precision.HIGHEST)
    return out + b[None, :, None, None]


def _ref_gelu(x):
    return (x * 0.5) * (jax.scipy.special.erf(x * 0.7071067811865476) + 1.0)


def _ref_forward(params, x):
    (w1, b1), (w2, b2), (w3, b3), (w4, b4), (w5, b5) = params
    v = _ref_gelu(_ref_conv(x, w1, b1, 2, 2, 1))
    v = _ref_gelu(_ref_conv(v, w2, b2, 2, 1, 2))
    v = _ref_gelu(_ref_conv(v, w3, b3, 1, 0, 1))
    v = _ref_gelu(_ref_conv(v, w4, b4, 2, 2, 3))
    v = _ref_conv(v, w5, b5, 1, 0, 1)
    return v


if __name__ == "__main__":
    key = jax.random.PRNGKey(0)
    k_x, k1, k2, k3, k4, k5 = jax.random.split(key, 6)

    # NOTE: the module's original input (1,55,12,10) makes conv4 compute a
    # zero-sized width in PyTorch (it errors), so a slightly larger spatial
    # size consistent with the module is used: (1, 55, 16, 16).
    x = jax.random.normal(k_x, (1, 55, 16, 16), jnp.float32)

    params = (
        init_conv_params(k1, 10, 55, 3, 3),
        init_conv_params(k2, 10, 10, 3, 3),
        init_conv_params(k3, 15, 10, 1, 1),
        init_conv_params(k4, 20, 15, 3, 3),
        init_conv_params(k5, 2, 20, 1, 1),
    )

    forward = build_forward(params, x.shape)
    out = jax.block_until_ready(forward(x))

    ref = jax.block_until_ready(_ref_forward(params, x))
    assert out.shape == ref.shape == (1, 2, 1, 1), (out.shape, ref.shape)
    np.testing.assert_allclose(np.asarray(out), np.asarray(ref), rtol=1e-2, atol=1e-2)

    print("KERNEL_OK")
</pallas_src>

<mosaic_0001>
module attributes {stable_mosaic.version = 11 : i64} {
  func.func @kernel(%arg0: memref<256x128xbf16, #tpu.memory_space<vmem>>, %arg1: memref<864x256xbf16, #tpu.memory_space<vmem>>, %arg2: memref<1152x128xbf16, #tpu.memory_space<vmem>>, %arg3: memref<1x128xf32, #tpu.memory_space<vmem>>, %arg4: memref<144x96xbf16, #tpu.memory_space<vmem>>, %arg5: memref<1152x128xbf16, #tpu.memory_space<vmem>>, %arg6: memref<1x128xf32, #tpu.memory_space<vmem>>, %arg7: memref<128x128xbf16, #tpu.memory_space<vmem>>, %arg8: memref<1x128xf32, #tpu.memory_space<vmem>>, %arg9: memref<16x16xbf16, #tpu.memory_space<vmem>>, %arg10: memref<128x128xbf16, #tpu.memory_space<vmem>>, %arg11: memref<1x128xf32, #tpu.memory_space<vmem>>, %arg12: memref<128x128xbf16, #tpu.memory_space<vmem>>, %arg13: memref<1x128xf32, #tpu.memory_space<vmem>>, %arg14: memref<16x128xf32, #tpu.memory_space<vmem>>) attributes {dimension_semantics = [], scalar_prefetch = 0 : i64, scratch_operands = 0 : i64, tpu.core_type = #tpu.core_type<tc>} {
    %c0 = arith.constant 0 : index
    %c0_0 = arith.constant 0 : index
    %0 = vector.load %arg0[%c0, %c0_0] : memref<256x128xbf16, #tpu.memory_space<vmem>>, vector<256x128xbf16>
    %c0_1 = arith.constant 0 : index
    %c0_2 = arith.constant 0 : index
    %1 = vector.load %arg1[%c0_1, %c0_2] : memref<864x256xbf16, #tpu.memory_space<vmem>>, vector<864x256xbf16>
    %cst = arith.constant dense<0.000000e+00> : vector<864x128xf32>
    %2 = tpu.matmul %1, %0, %cst {dimension_numbers = #tpu.dot_dimension_numbers<[1], [0], [0], [1], [0, 0, 1, 1], [], []>} : vector<864x256xbf16>, vector<256x128xbf16>, vector<864x128xf32> -> vector<864x128xf32>
    %3 = vector.extract_strided_slice %2 {offsets = [0, 0], sizes = [96, 128], strides = [1, 1]} : vector<864x128xf32> to vector<96x128xf32>
    %4 = vector.extract_strided_slice %2 {offsets = [96, 0], sizes = [96, 128], strides = [1, 1]} : vector<864x128xf32> to vector<96x128xf32>
    %5 = vector.extract_strided_slice %2 {offsets = [192, 0], sizes = [96, 128], strides = [1, 1]} : vector<864x128xf32> to vector<96x128xf32>
    %6 = vector.extract_strided_slice %2 {offsets = [288, 0], sizes = [96, 128], strides = [1, 1]} : vector<864x128xf32> to vector<96x128xf32>
    %7 = vector.extract_strided_slice %2 {offsets = [384, 0], sizes = [96, 128], strides = [1, 1]} : vector<864x128xf32> to vector<96x128xf32>
    %8 = vector.extract_strided_slice %2 {offsets = [480, 0], sizes = [96, 128], strides = [1, 1]} : vector<864x128xf32> to vector<96x128xf32>
    %9 = vector.extract_strided_slice %2 {offsets = [576, 0], sizes = [96, 128], strides = [1, 1]} : vector<864x128xf32> to vector<96x128xf32>
    %10 = vector.extract_strided_slice %2 {offsets = [672, 0], sizes = [96, 128], strides = [1, 1]} : vector<864x128xf32> to vector<96x128xf32>
    %11 = vector.extract_strided_slice %2 {offsets = [768, 0], sizes = [96, 128], strides = [1, 1]} : vector<864x128xf32> to vector<96x128xf32>
    %12 = tpu.concatenate %3, %4, %5, %6, %7, %8, %9, %10, %11 in 1 : vector<96x128xf32>, vector<96x128xf32>, vector<96x128xf32>, vector<96x128xf32>, vector<96x128xf32>, vector<96x128xf32>, vector<96x128xf32>, vector<96x128xf32>, vector<96x128xf32> -> vector<96x1152xf32>
    %13 = arith.truncf %12 : vector<96x1152xf32> to vector<96x1152xbf16>
    %c0_3 = arith.constant 0 : index
    %c0_4 = arith.constant 0 : index
    %14 = vector.load %arg2[%c0_3, %c0_4] : memref<1152x128xbf16, #tpu.memory_space<vmem>>, vector<1152x128xbf16>
    %cst_5 = arith.constant dense<0.000000e+00> : vector<96x128xf32>
    %15 = tpu.matmul %13, %14, %cst_5 {dimension_numbers = #tpu.dot_dimension_numbers<[1], [0], [0], [1], [0, 0, 1, 1], [], []>} : vector<96x1152xbf16>, vector<1152x128xbf16>, vector<96x128xf32> -> vector<96x128xf32>
    %c0_6 = arith.constant 0 : index
    %c0_7 = arith.constant 0 : index
    %16 = vector.load %arg3[%c0_6, %c0_7] : memref<1x128xf32, #tpu.memory_space<vmem>>, vector<1x128xf32>
    %17 = vector.broadcast %16 : vector<1x128xf32> to vector<96x128xf32>
    %18 = arith.addf %15, %17 : vector<96x128xf32>
    %cst_8 = arith.constant 5.000000e-01 : f32
    %19 = vector.broadcast %cst_8 : f32 to vector<96x128xf32>
    %20 = arith.mulf %18, %19 : vector<96x128xf32>
    %cst_9 = arith.constant 0.707106769 : f32
    %21 = vector.broadcast %cst_9 : f32 to vector<96x128xf32>
    %22 = arith.mulf %18, %21 : vector<96x128xf32>
    %cst_10 = arith.constant -4.000000e+00 : f32
    %cst_11 = arith.constant 4.000000e+00 : f32
    %23 = vector.broadcast %cst_10 : f32 to vector<96x128xf32>
    %24 = arith.maximumf %23, %22 : vector<96x128xf32>
    %25 = vector.broadcast %cst_11 : f32 to vector<96x128xf32>
    %26 = arith.minimumf %25, %24 : vector<96x128xf32>
    %27 = arith.mulf %26, %26 : vector<96x128xf32>
    %cst_12 = arith.constant -2.72614237E-10 : f32
    %28 = vector.broadcast %cst_12 : f32 to vector<96x128xf32>
    %29 = arith.mulf %28, %27 : vector<96x128xf32>
    %cst_13 = arith.constant 2.77068146E-8 : f32
    %30 = vector.broadcast %cst_13 : f32 to vector<96x128xf32>
    %31 = arith.addf %29, %30 : vector<96x128xf32>
    %32 = arith.mulf %31, %27 : vector<96x128xf32>
    %cst_14 = arith.constant -2.10102394E-6 : f32
    %33 = vector.broadcast %cst_14 : f32 to vector<96x128xf32>
    %34 = arith.addf %32, %33 : vector<96x128xf32>
    %35 = arith.mulf %34, %27 : vector<96x128xf32>
    %cst_15 = arith.constant -5.69250624E-5 : f32
    %36 = vector.broadcast %cst_15 : f32 to vector<96x128xf32>
    %37 = arith.addf %35, %36 : vector<96x128xf32>
    %38 = arith.mulf %37, %27 : vector<96x128xf32>
    %cst_16 = arith.constant -7.34990637E-4 : f32
    %39 = vector.broadcast %cst_16 : f32 to vector<96x128xf32>
    %40 = arith.addf %38, %39 : vector<96x128xf32>
    %41 = arith.mulf %40, %27 : vector<96x128xf32>
    %cst_17 = arith.constant -2.954600e-03 : f32
    %42 = vector.broadcast %cst_17 : f32 to vector<96x128xf32>
    %43 = arith.addf %41, %42 : vector<96x128xf32>
    %44 = arith.mulf %43, %27 : vector<96x128xf32>
    %cst_18 = arith.constant -0.0160960332 : f32
    %45 = vector.broadcast %cst_18 : f32 to vector<96x128xf32>
    %46 = arith.addf %44, %45 : vector<96x128xf32>
    %47 = arith.mulf %46, %26 : vector<96x128xf32>
    %cst_19 = arith.constant -1.45660715E-5 : f32
    %48 = vector.broadcast %cst_19 : f32 to vector<96x128xf32>
    %49 = arith.mulf %48, %27 : vector<96x128xf32>
    %cst_20 = arith.constant -2.13374049E-4 : f32
    %50 = vector.broadcast %cst_20 : f32 to vector<96x128xf32>
    %51 = arith.addf %49, %50 : vector<96x128xf32>
    %52 = arith.mulf %51, %27 : vector<96x128xf32>
    %cst_21 = arith.constant -0.00168282702 : f32
    %53 = vector.broadcast %cst_21 : f32 to vector<96x128xf32>
    %54 = arith.addf %52, %53 : vector<96x128xf32>
    %55 = arith.mulf %54, %27 : vector<96x128xf32>
    %cst_22 = arith.constant -0.00737332925 : f32
    %56 = vector.broadcast %cst_22 : f32 to vector<96x128xf32>
    %57 = arith.addf %55, %56 : vector<96x128xf32>
    %58 = arith.mulf %57, %27 : vector<96x128xf32>
    %cst_23 = arith.constant -0.0142647391 : f32
    %59 = vector.broadcast %cst_23 : f32 to vector<96x128xf32>
    %60 = arith.addf %58, %59 : vector<96x128xf32>
    %61 = tpu.reciprocal %60 {approx = true} : vector<96x128xf32> -> vector<96x128xf32>
    %62 = arith.mulf %47, %61 : vector<96x128xf32>
    %cst_24 = arith.constant 1.000000e+00 : f32
    %63 = vector.broadcast %cst_24 : f32 to vector<96x128xf32>
    %64 = arith.addf %62, %63 : vector<96x128xf32>
    %65 = arith.mulf %20, %64 : vector<96x128xf32>
    %66 = arith.truncf %65 : vector<96x128xf32> to vector<96x128xbf16>
    %c0_25 = arith.constant 0 : index
    %c0_26 = arith.constant 0 : index
    %67 = vector.load %arg4[%c0_25, %c0_26] : memref<144x96xbf16, #tpu.memory_space<vmem>>, vector<144x96xbf16>
    %cst_27 = arith.constant dense<0.000000e+00> : vector<144x128xf32>
    %68 = tpu.matmul %67, %66, %cst_27 {dimension_numbers = #tpu.dot_dimension_numbers<[1], [0], [0], [1], [0, 0, 1, 1], [], []>} : vector<144x96xbf16>, vector<96x128xbf16>, vector<144x128xf32> -> vector<144x128xf32>
    %69 = vector.extract_strided_slice %68 {offsets = [0, 0], sizes = [16, 128], strides = [1, 1]} : vector<144x128xf32> to vector<16x128xf32>
    %70 = vector.extract_strided_slice %68 {offsets = [16, 0], sizes = [16, 128], strides = [1, 1]} : vector<144x128xf32> to vector<16x128xf32>
    %71 = vector.extract_strided_slice %68 {offsets = [32, 0], sizes = [16, 128], strides = [1, 1]} : vector<144x128xf32> to vector<16x128xf32>
    %72 = vector.extract_strided_slice %68 {offsets = [48, 0], sizes = [16, 128], strides = [1, 1]} : vector<144x128xf32> to vector<16x128xf32>
    %73 = vector.extract_strided_slice %68 {offsets = [64, 0], sizes = [16, 128], strides = [1, 1]} : vector<144x128xf32> to vector<16x128xf32>
    %74 = vector.extract_strided_slice %68 {offsets = [80, 0], sizes = [16, 128], strides = [1, 1]} : vector<144x128xf32> to vector<16x128xf32>
    %75 = vector.extract_strided_slice %68 {offsets = [96, 0], sizes = [16, 128], strides = [1, 1]} : vector<144x128xf32> to vector<16x128xf32>
    %76 = vector.extract_strided_slice %68 {offsets = [112, 0], sizes = [16, 128], strides = [1, 1]} : vector<144x128xf32> to vector<16x128xf32>
    %77 = vector.extract_strided_slice %68 {offsets = [128, 0], sizes = [16, 128], strides = [1, 1]} : vector<144x128xf32> to vector<16x128xf32>
    %78 = tpu.concatenate %69, %70, %71, %72, %73, %74, %75, %76, %77 in 1 : vector<16x128xf32>, vector<16x128xf32>, vector<16x128xf32>, vector<16x128xf32>, vector<16x128xf32>, vector<16x128xf32>, vector<16x128xf32>, vector<16x128xf32>, vector<16x128xf32> -> vector<16x1152xf32>
    %79 = arith.truncf %78 : vector<16x1152xf32> to vector<16x1152xbf16>
    %c0_28 = arith.constant 0 : index
    %c0_29 = arith.constant 0 : index
    %80 = vector.load %arg5[%c0_28, %c0_29] : memref<1152x128xbf16, #tpu.memory_space<vmem>>, vector<1152x128xbf16>
    %cst_30 = arith.constant dense<0.000000e+00> : vector<16x128xf32>
    %81 = tpu.matmul %79, %80, %cst_30 {dimension_numbers = #tpu.dot_dimension_numbers<[1], [0], [0], [1], [0, 0, 1, 1], [], []>} : vector<16x1152xbf16>, vector<1152x128xbf16>, vector<16x128xf32> -> vector<16x128xf32>
    %c0_31 = arith.constant 0 : index
    %c0_32 = arith.constant 0 : index
    %82 = vector.load %arg6[%c0_31, %c0_32] : memref<1x128xf32, #tpu.memory_space<vmem>>, vector<1x128xf32>
    %83 = vector.broadcast %82 : vector<1x128xf32> to vector<16x128xf32>
    %84 = arith.addf %81, %83 : vector<16x128xf32>
    %cst_33 = arith.constant 5.000000e-01 : f32
    %85 = vector.broadcast %cst_33 : f32 to vector<16x128xf32>
    %86 = arith.mulf %84, %85 : vector<16x128xf32>
    %cst_34 = arith.constant 0.707106769 : f32
    %87 = vector.broadcast %cst_34 : f32 to vector<16x128xf32>
    %88 = arith.mulf %84, %87 : vector<16x128xf32>
    %cst_35 = arith.constant -4.000000e+00 : f32
    %cst_36 = arith.constant 4.000000e+00 : f32
    %89 = vector.broadcast %cst_35 : f32 to vector<16x128xf32>
    %90 = arith.maximumf %89, %88 : vector<16x128xf32>
    %91 = vector.broadcast %cst_36 : f32 to vector<16x128xf32>
    %92 = arith.minimumf %91, %90 : vector<16x128xf32>
    %93 = arith.mulf %92, %92 : vector<16x128xf32>
    %cst_37 = arith.constant -2.72614237E-10 : f32
    %94 = vector.broadcast %cst_37 : f32 to vector<16x128xf32>
    %95 = arith.mulf %94, %93 : vector<16x128xf32>
    %cst_38 = arith.constant 2.77068146E-8 : f32
    %96 = vector.broadcast %cst_38 : f32 to vector<16x128xf32>
    %97 = arith.addf %95, %96 : vector<16x128xf32>
    %98 = arith.mulf %97, %93 : vector<16x128xf32>
    %cst_39 = arith.constant -2.10102394E-6 : f32
    %99 = vector.broadcast %cst_39 : f32 to vector<16x128xf32>
    %100 = arith.addf %98, %99 : vector<16x128xf32>
    %101 = arith.mulf %100, %93 : vector<16x128xf32>
    %cst_40 = arith.constant -5.69250624E-5 : f32
    %102 = vector.broadcast %cst_40 : f32 to vector<16x128xf32>
    %103 = arith.addf %101, %102 : vector<16x128xf32>
    %104 = arith.mulf %103, %93 : vector<16x128xf32>
    %cst_41 = arith.constant -7.34990637E-4 : f32
    %105 = vector.broadcast %cst_41 : f32 to vector<16x128xf32>
    %106 = arith.addf %104, %105 : vector<16x128xf32>
    %107 = arith.mulf %106, %93 : vector<16x128xf32>
    %cst_42 = arith.constant -2.954600e-03 : f32
    %108 = vector.broadcast %cst_42 : f32 to vector<16x128xf32>
    %109 = arith.addf %107, %108 : vector<16x128xf32>
    %110 = arith.mulf %109, %93 : vector<16x128xf32>
    %cst_43 = arith.constant -0.0160960332 : f32
    %111 = vector.broadcast %cst_43 : f32 to vector<16x128xf32>
    %112 = arith.addf %110, %111 : vector<16x128xf32>
    %113 = arith.mulf %112, %92 : vector<16x128xf32>
    %cst_44 = arith.constant -1.45660715E-5 : f32
    %114 = vector.broadcast %cst_44 : f32 to vector<16x128xf32>
    %115 = arith.mulf %114, %93 : vector<16x128xf32>
    %cst_45 = arith.constant -2.13374049E-4 : f32
    %116 = vector.broadcast %cst_45 : f32 to vector<16x128xf32>
    %117 = arith.addf %115, %116 : vector<16x128xf32>
    %118 = arith.mulf %117, %93 : vector<16x128xf32>
    %cst_46 = arith.constant -0.00168282702 : f32
    %119 = vector.broadcast %cst_46 : f32 to vector<16x128xf32>
    %120 = arith.addf %118, %119 : vector<16x128xf32>
    %121 = arith.mulf %120, %93 : vector<16x128xf32>
    %cst_47 = arith.constant -0.00737332925 : f32
    %122 = vector.broadcast %cst_47 : f32 to vector<16x128xf32>
    %123 = arith.addf %121, %122 : vector<16x128xf32>
    %124 = arith.mulf %123, %93 : vector<16x128xf32>
    %cst_48 = arith.constant -0.0142647391 : f32
    %125 = vector.broadcast %cst_48 : f32 to vector<16x128xf32>
    %126 = arith.addf %124, %125 : vector<16x128xf32>
    %127 = tpu.reciprocal %126 {approx = true} : vector<16x128xf32> -> vector<16x128xf32>
    %128 = arith.mulf %113, %127 : vector<16x128xf32>
    %cst_49 = arith.constant 1.000000e+00 : f32
    %129 = vector.broadcast %cst_49 : f32 to vector<16x128xf32>
    %130 = arith.addf %128, %129 : vector<16x128xf32>
    %131 = arith.mulf %86, %130 : vector<16x128xf32>
    %132 = arith.truncf %131 : vector<16x128xf32> to vector<16x128xbf16>
    %c0_50 = arith.constant 0 : index
    %c0_51 = arith.constant 0 : index
    %133 = vector.load %arg7[%c0_50, %c0_51] : memref<128x128xbf16, #tpu.memory_space<vmem>>, vector<128x128xbf16>
    %cst_52 = arith.constant dense<0.000000e+00> : vector<16x128xf32>
    %134 = tpu.matmul %132, %133, %cst_52 {dimension_numbers = #tpu.dot_dimension_numbers<[1], [0], [0], [1], [0, 0, 1, 1], [], []>} : vector<16x128xbf16>, vector<128x128xbf16>, vector<16x128xf32> -> vector<16x128xf32>
    %c0_53 = arith.constant 0 : index
    %c0_54 = arith.constant 0 : index
    %135 = vector.load %arg8[%c0_53, %c0_54] : memref<1x128xf32, #tpu.memory_space<vmem>>, vector<1x128xf32>
    %136 = vector.broadcast %135 : vector<1x128xf32> to vector<16x128xf32>
    %137 = arith.addf %134, %136 : vector<16x128xf32>
    %cst_55 = arith.constant 5.000000e-01 : f32
    %138 = vector.broadcast %cst_55 : f32 to vector<16x128xf32>
    %139 = arith.mulf %137, %138 : vector<16x128xf32>
    %cst_56 = arith.constant 0.707106769 : f32
    %140 = vector.broadcast %cst_56 : f32 to vector<16x128xf32>
    %141 = arith.mulf %137, %140 : vector<16x128xf32>
    %cst_57 = arith.constant -4.000000e+00 : f32
    %cst_58 = arith.constant 4.000000e+00 : f32
    %142 = vector.broadcast %cst_57 : f32 to vector<16x128xf32>
    %143 = arith.maximumf %142, %141 : vector<16x128xf32>
    %144 = vector.broadcast %cst_58 : f32 to vector<16x128xf32>
    %145 = arith.minimumf %144, %143 : vector<16x128xf32>
    %146 = arith.mulf %145, %145 : vector<16x128xf32>
    %cst_59 = arith.constant -2.72614237E-10 : f32
    %147 = vector.broadcast %cst_59 : f32 to vector<16x128xf32>
    %148 = arith.mulf %147, %146 : vector<16x128xf32>
    %cst_60 = arith.constant 2.77068146E-8 : f32
    %149 = vector.broadcast %cst_60 : f32 to vector<16x128xf32>
    %150 = arith.addf %148, %149 : vector<16x128xf32>
    %151 = arith.mulf %150, %146 : vector<16x128xf32>
    %cst_61 = arith.constant -2.10102394E-6 : f32
    %152 = vector.broadcast %cst_61 : f32 to vector<16x128xf32>
    %153 = arith.addf %151, %152 : vector<16x128xf32>
    %154 = arith.mulf %153, %146 : vector<16x128xf32>
    %cst_62 = arith.constant -5.69250624E-5 : f32
    %155 = vector.broadcast %cst_62 : f32 to vector<16x128xf32>
    %156 = arith.addf %154, %155 : vector<16x128xf32>
    %157 = arith.mulf %156, %146 : vector<16x128xf32>
    %cst_63 = arith.constant -7.34990637E-4 : f32
    %158 = vector.broadcast %cst_63 : f32 to vector<16x128xf32>
    %159 = arith.addf %157, %158 : vector<16x128xf32>
    %160 = arith.mulf %159, %146 : vector<16x128xf32>
    %cst_64 = arith.constant -2.954600e-03 : f32
    %161 = vector.broadcast %cst_64 : f32 to vector<16x128xf32>
    %162 = arith.addf %160, %161 : vector<16x128xf32>
    %163 = arith.mulf %162, %146 : vector<16x128xf32>
    %cst_65 = arith.constant -0.0160960332 : f32
    %164 = vector.broadcast %cst_65 : f32 to vector<16x128xf32>
    %165 = arith.addf %163, %164 : vector<16x128xf32>
    %166 = arith.mulf %165, %145 : vector<16x128xf32>
    %cst_66 = arith.constant -1.45660715E-5 : f32
    %167 = vector.broadcast %cst_66 : f32 to vector<16x128xf32>
    %168 = arith.mulf %167, %146 : vector<16x128xf32>
    %cst_67 = arith.constant -2.13374049E-4 : f32
    %169 = vector.broadcast %cst_67 : f32 to vector<16x128xf32>
    %170 = arith.addf %168, %169 : vector<16x128xf32>
    %171 = arith.mulf %170, %146 : vector<16x128xf32>
    %cst_68 = arith.constant -0.00168282702 : f32
    %172 = vector.broadcast %cst_68 : f32 to vector<16x128xf32>
    %173 = arith.addf %171, %172 : vector<16x128xf32>
    %174 = arith.mulf %173, %146 : vector<16x128xf32>
    %cst_69 = arith.constant -0.00737332925 : f32
    %175 = vector.broadcast %cst_69 : f32 to vector<16x128xf32>
    %176 = arith.addf %174, %175 : vector<16x128xf32>
    %177 = arith.mulf %176, %146 : vector<16x128xf32>
    %cst_70 = arith.constant -0.0142647391 : f32
    %178 = vector.broadcast %cst_70 : f32 to vector<16x128xf32>
    %179 = arith.addf %177, %178 : vector<16x128xf32>
    %180 = tpu.reciprocal %179 {approx = true} : vector<16x128xf32> -> vector<16x128xf32>
    %181 = arith.mulf %166, %180 : vector<16x128xf32>
    %cst_71 = arith.constant 1.000000e+00 : f32
    %182 = vector.broadcast %cst_71 : f32 to vector<16x128xf32>
    %183 = arith.addf %181, %182 : vector<16x128xf32>
    %184 = arith.mulf %139, %183 : vector<16x128xf32>
    %185 = arith.truncf %184 : vector<16x128xf32> to vector<16x128xbf16>
    %c0_72 = arith.constant 0 : index
    %c0_73 = arith.constant 0 : index
    %186 = vector.load %arg9[%c0_72, %c0_73] : memref<16x16xbf16, #tpu.memory_space<vmem>>, vector<16x16xbf16>
    %cst_74 = arith.constant dense<0.000000e+00> : vector<16x128xf32>
    %187 = tpu.matmul %186, %185, %cst_74 {dimension_numbers = #tpu.dot_dimension_numbers<[1], [0], [0], [1], [0, 0, 1, 1], [], []>} : vector<16x16xbf16>, vector<16x128xbf16>, vector<16x128xf32> -> vector<16x128xf32>
    %188 = arith.truncf %187 : vector<16x128xf32> to vector<16x128xbf16>
    %c0_75 = arith.constant 0 : index
    %c0_76 = arith.constant 0 : index
    %189 = vector.load %arg10[%c0_75, %c0_76] : memref<128x128xbf16, #tpu.memory_space<vmem>>, vector<128x128xbf16>
    %cst_77 = arith.constant dense<0.000000e+00> : vector<16x128xf32>
    %190 = tpu.matmul %188, %189, %cst_77 {dimension_numbers = #tpu.dot_dimension_numbers<[1], [0], [0], [1], [0, 0, 1, 1], [], []>} : vector<16x128xbf16>, vector<128x128xbf16>, vector<16x128xf32> -> vector<16x128xf32>
    %c0_78 = arith.constant 0 : index
    %c0_79 = arith.constant 0 : index
    %191 = vector.load %arg11[%c0_78, %c0_79] : memref<1x128xf32, #tpu.memory_space<vmem>>, vector<1x128xf32>
    %192 = vector.broadcast %191 : vector<1x128xf32> to vector<16x128xf32>
    %193 = arith.addf %190, %192 : vector<16x128xf32>
    %cst_80 = arith.constant 5.000000e-01 : f32
    %194 = vector.broadcast %cst_80 : f32 to vector<16x128xf32>
    %195 = arith.mulf %193, %194 : vector<16x128xf32>
    %cst_81 = arith.constant 0.707106769 : f32
    %196 = vector.broadcast %cst_81 : f32 to vector<16x128xf32>
    %197 = arith.mulf %193, %196 : vector<16x128xf32>
    %cst_82 = arith.constant -4.000000e+00 : f32
    %cst_83 = arith.constant 4.000000e+00 : f32
    %198 = vector.broadcast %cst_82 : f32 to vector<16x128xf32>
    %199 = arith.maximumf %198, %197 : vector<16x128xf32>
    %200 = vector.broadcast %cst_83 : f32 to vector<16x128xf32>
    %201 = arith.minimumf %200, %199 : vector<16x128xf32>
    %202 = arith.mulf %201, %201 : vector<16x128xf32>
    %cst_84 = arith.constant -2.72614237E-10 : f32
    %203 = vector.broadcast %cst_84 : f32 to vector<16x128xf32>
    %204 = arith.mulf %203, %202 : vector<16x128xf32>
    %cst_85 = arith.constant 2.77068146E-8 : f32
    %205 = vector.broadcast %cst_85 : f32 to vector<16x128xf32>
    %206 = arith.addf %204, %205 : vector<16x128xf32>
    %207 = arith.mulf %206, %202 : vector<16x128xf32>
    %cst_86 = arith.constant -2.10102394E-6 : f32
    %208 = vector.broadcast %cst_86 : f32 to vector<16x128xf32>
    %209 = arith.addf %207, %208 : vector<16x128xf32>
    %210 = arith.mulf %209, %202 : vector<16x128xf32>
    %cst_87 = arith.constant -5.69250624E-5 : f32
    %211 = vector.broadcast %cst_87 : f32 to vector<16x128xf32>
    %212 = arith.addf %210, %211 : vector<16x128xf32>
    %213 = arith.mulf %212, %202 : vector<16x128xf32>
    %cst_88 = arith.constant -7.34990637E-4 : f32
    %214 = vector.broadcast %cst_88 : f32 to vector<16x128xf32>
    %215 = arith.addf %213, %214 : vector<16x128xf32>
    %216 = arith.mulf %215, %202 : vector<16x128xf32>
    %cst_89 = arith.constant -2.954600e-03 : f32
    %217 = vector.broadcast %cst_89 : f32 to vector<16x128xf32>
    %218 = arith.addf %216, %217 : vector<16x128xf32>
    %219 = arith.mulf %218, %202 : vector<16x128xf32>
    %cst_90 = arith.constant -0.0160960332 : f32
    %220 = vector.broadcast %cst_90 : f32 to vector<16x128xf32>
    %221 = arith.addf %219, %220 : vector<16x128xf32>
    %222 = arith.mulf %221, %201 : vector<16x128xf32>
    %cst_91 = arith.constant -1.45660715E-5 : f32
    %223 = vector.broadcast %cst_91 : f32 to vector<16x128xf32>
    %224 = arith.mulf %223, %202 : vector<16x128xf32>
    %cst_92 = arith.constant -2.13374049E-4 : f32
    %225 = vector.broadcast %cst_92 : f32 to vector<16x128xf32>
    %226 = arith.addf %224, %225 : vector<16x128xf32>
    %227 = arith.mulf %226, %202 : vector<16x128xf32>
    %cst_93 = arith.constant -0.00168282702 : f32
    %228 = vector.broadcast %cst_93 : f32 to vector<16x128xf32>
    %229 = arith.addf %227, %228 : vector<16x128xf32>
    %230 = arith.mulf %229, %202 : vector<16x128xf32>
    %cst_94 = arith.constant -0.00737332925 : f32
    %231 = vector.broadcast %cst_94 : f32 to vector<16x128xf32>
    %232 = arith.addf %230, %231 : vector<16x128xf32>
    %233 = arith.mulf %232, %202 : vector<16x128xf32>
    %cst_95 = arith.constant -0.0142647391 : f32
    %234 = vector.broadcast %cst_95 : f32 to vector<16x128xf32>
    %235 = arith.addf %233, %234 : vector<16x128xf32>
    %236 = tpu.reciprocal %235 {approx = true} : vector<16x128xf32> -> vector<16x128xf32>
    %237 = arith.mulf %222, %236 : vector<16x128xf32>
    %cst_96 = arith.constant 1.000000e+00 : f32
    %238 = vector.broadcast %cst_96 : f32 to vector<16x128xf32>
    %239 = arith.addf %237, %238 : vector<16x128xf32>
    %240 = arith.mulf %195, %239 : vector<16x128xf32>
    %241 = arith.truncf %240 : vector<16x128xf32> to vector<16x128xbf16>
    %c0_97 = arith.constant 0 : index
    %c0_98 = arith.constant 0 : index
    %242 = vector.load %arg12[%c0_97, %c0_98] : memref<128x128xbf16, #tpu.memory_space<vmem>>, vector<128x128xbf16>
    %cst_99 = arith.constant dense<0.000000e+00> : vector<16x128xf32>
    %243 = tpu.matmul %241, %242, %cst_99 {dimension_numbers = #tpu.dot_dimension_numbers<[1], [0], [0], [1], [0, 0, 1, 1], [], []>} : vector<16x128xbf16>, vector<128x128xbf16>, vector<16x128xf32> -> vector<16x128xf32>
    %c0_100 = arith.constant 0 : index
    %c0_101 = arith.constant 0 : index
    %244 = vector.load %arg13[%c0_100, %c0_101] : memref<1x128xf32, #tpu.memory_space<vmem>>, vector<1x128xf32>
    %245 = vector.broadcast %244 : vector<1x128xf32> to vector<16x128xf32>
    %246 = arith.addf %243, %245 : vector<16x128xf32>
    %c0_102 = arith.constant 0 : index
    %c0_103 = arith.constant 0 : index
    %247 = vector.load %arg14[%c0_102, %c0_103] : memref<16x128xf32, #tpu.memory_space<vmem>>, vector<16x128xf32>
    tpu.vector_store %arg14[%c0_102, %c0_103], %246 {strides = array<i32>} : memref<16x128xf32, #tpu.memory_space<vmem>>, vector<16x128xf32>,
    return
  }
}

</mosaic_0001>

<bundles_post_ra>
// kernel: forward.1
= control target key start
LH: loop header
LB: loop body
LE: loop exit
PB: predicated region body
PF: predicated region fallthrough
CT: control target
= control target key end

     0   :  { %v5523_v0 = vmov 0   ;;  %vm5525_vm0 = vmmov 0   ;;  %vm2760_vm1 = vcmask 785408   ;;  %vm3931_vm2 = vcmask 130048   ;;  %s7162_s0 = inlined_call_operand.vmem [shape: bf16[256,128], index: 0, kind: input, shape index: {}]   ;;  %s7163_s1 = inlined_call_operand.vmem [shape: bf16[864,256], index: 1, kind: input, shape index: {}]   ;;  %s7164_s2 = inlined_call_operand.vmem [shape: bf16[1152,128], index: 2, kind: input, shape index: {}]   ;;  %s7165_s3 = inlined_call_operand.vmem [shape: f32[1,128], index: 3, kind: input, shape index: {}]   ;;  %s7166_s4 = inlined_call_operand.vmem [shape: bf16[144,96], index: 4, kind: input, shape index: {}]   ;;  %s7167_s5 = inlined_call_operand.vmem [shape: bf16[1152,128], index: 5, kind: input, shape index: {}]   ;;  %s7168_s7 = inlined_call_operand.vmem [shape: bf16[128,128], index: 7, kind: input, shape index: {}]   ;;  %s7169_s6 = inlined_call_operand.vmem [shape: f32[1,128], index: 6, kind: input, shape index: {}]   ;;  %s7170_s10 = inlined_call_operand.vmem [shape: bf16[128,128], index: 10, kind: input, shape index: {}]   ;;  %s7171_s9 = inlined_call_operand.vmem [shape: bf16[16,16], index: 9, kind: input, shape index: {}]   ;;  %s7172_s8 = inlined_call_operand.vmem [shape: f32[1,128], index: 8, kind: input, shape index: {}]   ;;  %s7173_s12 = inlined_call_operand.vmem [shape: bf16[128,128], index: 12, kind: input, shape index: {}]   ;;  %s7174_s11 = inlined_call_operand.vmem [shape: f32[1,128], index: 11, kind: input, shape index: {}]   ;;  %s7175_s13 = inlined_call_operand.vmem [shape: f32[1,128], index: 13, kind: input, shape index: {}]   ;;  %s7176_s14 = inlined_call_operand.vmem [shape: f32[16,128], index: 14, kind: output, shape index: {}]  }
   0x1   :  { %824 = vmatprep.subr.bf16.mxu0 %v5523_v0  ;;  %v5131_v1 = vld [vmem:[%s7162_s0] sm:$0xff]   ;;  %v5132_v2 = vld [vmem:[%s7162_s0 + $0x8] sm:$0xff]   ;;  %v5133_v3 = vld [vmem:[%s7162_s0 + $0x10] sm:$0xff]  }
   0x2   :  { %825 = vmatpush1.bf16.msra.mxu0 %v5131_v1  ;;  %v5134_v4 = vld [vmem:[%s7162_s0 + $0x18] sm:$0xff]   ;;  %v5135_v5 = vld [vmem:[%s7162_s0 + $0x20] sm:$0xff]   ;;  %v5136_v7 = vld [vmem:[%s7162_s0 + $0x28] sm:$0xff]  }
   0x3   :  { %826 = vmatprep.subr.bf16.mxu0 %v5523_v0  ;;  %v5149_v6 = vld [vmem:[%s7163_s1 + $0x4] ss:$8 sps:$4 sm:$0xff]   ;;  %v5137_v8 = vld [vmem:[%s7162_s0 + $0x30] sm:$0xff]   ;;  %v5138_v9 = vld [vmem:[%s7162_s0 + $0x38] sm:$0xff]  }
   0x4   :  { %856 = vmatprep.mubr.bf16.mxu0 %v5149_v6  ;;  %v5139_v10 = vld [vmem:[%s7162_s0 + $0x40] sm:$0xff]   ;;  %v5140_v11 = vld [vmem:[%s7162_s0 + $0x48] sm:$0xff]   ;;  %v5141_v12 = vld [vmem:[%s7162_s0 + $0x50] sm:$0xff]  }
   0x5   :  { %v5142_v13 = vld [vmem:[%s7162_s0 + $0x58] sm:$0xff]   ;;  %v5143_v14 = vld [vmem:[%s7162_s0 + $0x60] sm:$0xff]   ;;  %v5144_v15 = vld [vmem:[%s7162_s0 + $0x68] sm:$0xff]  }
   0x6   :  { %827 = vmatpush1.bf16.msra.mxu0 %v5132_v2  ;;  %v5145_v16 = vld [vmem:[%s7162_s0 + $0x70] sm:$0xff]   ;;  %v5146_v17 = vld [vmem:[%s7162_s0 + $0x78] sm:$0xff]   ;;  %v5147_v18 = vld [vmem:[%s7163_s1] ss:$8 sps:$4 sm:$0xff]  }
   0x7   :  { %828 = vmatprep.subr.bf16.mxu0 %v5523_v0  ;;  %v5150_v19 = vld [vmem:[%s7163_s1 + $0x14] ss:$8 sps:$4 sm:$0xff]   ;;  %v5152_v20 = vld [vmem:[%s7163_s1 + $0x10] ss:$8 sps:$4 sm:$0xff]   ;;  %v5153_v21 = vld [vmem:[%s7163_s1 + $0x24] ss:$8 sps:$4 sm:$0xff]  }
   0x8   :  { %v5155_v22 = vld [vmem:[%s7163_s1 + $0x20] ss:$8 sps:$4 sm:$0xff]   ;;  %v5156_v23 = vld [vmem:[%s7163_s1 + $0x34] ss:$8 sps:$4 sm:$0xff]   ;;  %v5158_v24 = vld [vmem:[%s7163_s1 + $0x30] ss:$8 sps:$4 sm:$0xff]  }
   0x9   :  { %v5159_v25 = vld [vmem:[%s7163_s1 + $0x44] ss:$8 sps:$4 sm:$0xff]   ;;  %v5161_v26 = vld [vmem:[%s7163_s1 + $0x40] ss:$8 sps:$4 sm:$0xff]   ;;  %v5162_v27 = vld [vmem:[%s7163_s1 + $0x54] ss:$8 sps:$4 sm:$0xff]  }
   0xa   :  { %829 = vmatpush1.bf16.msra.mxu0 %v5133_v3  ;;  %v5164_v28 = vld [vmem:[%s7163_s1 + $0x50] ss:$8 sps:$4 sm:$0xff]   ;;  %v5165_v29 = vld [vmem:[%s7163_s1 + $0x64] ss:$8 sps:$4 sm:$0xff]   ;;  %v5167_v30 = vld [vmem:[%s7163_s1 + $0x60] ss:$8 sps:$4 sm:$0xff]  }
   0xb   :  { %830 = vmatprep.subr.bf16.mxu0 %v5523_v0  ;;  %v5168_v31 = vld [vmem:[%s7163_s1 + $0x74] ss:$8 sps:$4 sm:$0xff]   ;;  %v5170_v32 = vld [vmem:[%s7163_s1 + $0x70] ss:$8 sps:$4 sm:$0xff]   ;;  %v5171_v33 = vld [vmem:[%s7163_s1 + $0x84] ss:$8 sps:$4 sm:$0xff]  }
   0xc   :  { %v5173_v34 = vld [vmem:[%s7163_s1 + $0x80] ss:$8 sps:$4 sm:$0xff]   ;;  %v5174_v35 = vld [vmem:[%s7163_s1 + $0x94] ss:$8 sps:$4 sm:$0xff]   ;;  %v5176_v36 = vld [vmem:[%s7163_s1 + $0x90] ss:$8 sps:$4 sm:$0xff]  }
   0xd   :  { %v5177_v37 = vld [vmem:[%s7163_s1 + $0xa4] ss:$8 sps:$4 sm:$0xff]   ;;  %v5179_v38 = vld [vmem:[%s7163_s1 + $0xa0] ss:$8 sps:$4 sm:$0xff]   ;;  %v5180_v39 = vld [vmem:[%s7163_s1 + $0xb4] ss:$8 sps:$4 sm:$0xff]  }
   0xe   :  { %831 = vmatpush1.bf16.msra.mxu0 %v5134_v4  ;;  %v5182_v40 = vld [vmem:[%s7163_s1 + $0xb0] ss:$8 sps:$4 sm:$0xff]   ;;  %v5183_v41 = vld [vmem:[%s7163_s1 + $0xc4] ss:$8 sps:$4 sm:$0xff]   ;;  %v5185_v42 = vld [vmem:[%s7163_s1 + $0xc0] ss:$8 sps:$4 sm:$0xff]  }
   0xf   :  { %832 = vmatprep.subr.bf16.mxu0 %v5523_v0  ;;  %v5186_v43 = vld [vmem:[%s7163_s1 + $0xd4] ss:$8 sps:$4 sm:$0xff]   ;;  %v5188_v44 = vld [vmem:[%s7163_s1 + $0xd0] ss:$8 sps:$4 sm:$0xff]   ;;  %v5189_v45 = vld [vmem:[%s7163_s1 + $0xe4] ss:$8 sps:$4 sm:$0xff]  }
  0x10   :  { %v5237_v46 = vld [vmem:[%s7164_s2 + $0x40] sm:$0xff]   ;;  %v5239_v49 = vld [vmem:[%s7164_s2 + $0x48] sm:$0xff]   ;;  %v5192_v51 = vld [vmem:[%s7163_s1 + $0xf4] ss:$8 sps:$4 sm:$0xff]  }
  0x11   :  { %v5238_v47 = vld [vmem:[%s7164_s2] sm:$0xff]   ;;  %4603 = vmatprep.subr.bf16.mxu1 %v5237_v46  ;;  %v5240_v50 = vld [vmem:[%s7164_s2 + $0x8] sm:$0xff]   ;;  %v5244_v52 = vld [vmem:[%s7164_s2 + $0x50] sm:$0xff]  }
  0x12   :  { %833 = vmatpush1.bf16.msra.mxu0 %v5135_v5  ;;  %v5191_v48 = vld [vmem:[%s7163_s1 + $0xe0] ss:$8 sps:$4 sm:$0xff]   ;;  %4604 = vmatpush3.bf16.msra.mxu1 %v5238_v47  ;;  %v5245_v53 = vld [vmem:[%s7164_s2 + $0x10] sm:$0xff]   ;;  %v5246_v55 = vld [vmem:[%s7164_s2 + $0x58] sm:$0xff]  }
  0x13   :  { %834 = vmatprep.subr.bf16.mxu0 %v5523_v0  ;;  %4605 = vmatprep.subr.bf16.mxu1 %v5239_v49  ;;  %v5194_v54 = vld [vmem:[%s7163_s1 + $0xf0] ss:$8 sps:$4 sm:$0xff]   ;;  %v5195_v57 = vld [vmem:[%s7163_s1 + $0x104] ss:$8 sps:$4 sm:$0xff]   ;;  %v5197_v60 = vld [vmem:[%s7163_s1 + $0x100] ss:$8 sps:$4 sm:$0xff]  }
  0x14   :  { %v5247_v56 = vld [vmem:[%s7164_s2 + $0x18] sm:$0xff]   ;;  %v5251_v58 = vld [vmem:[%s7164_s2 + $0x60] sm:$0xff]   ;;  %v5253_v61 = vld [vmem:[%s7164_s2 + $0x68] sm:$0xff]  }
  0x15   :  { %v5252_v59 = vld [vmem:[%s7164_s2 + $0x20] sm:$0xff]   ;;  %v5254_v62 = vld [vmem:[%s7164_s2 + $0x28] sm:$0xff]   ;;  %v5198_v63 = vld [vmem:[%s7163_s1 + $0x114] ss:$8 sps:$4 sm:$0xff]  }
  0x16   :  { %835 = vmatpush1.bf16.msra.mxu0 %v5136_v7  ;;  %4606 = vmatpush3.bf16.msra.mxu1 %v5240_v50  ;;  %v5259_v1 = vld [vmem:[%s7164_s2 + $0x30] sm:$0xff]   ;;  %v5260_v3 = vld [vmem:[%s7164_s2 + $0x78] sm:$0xff]   ;;  %v5201_v5 = vld [vmem:[%s7163_s1 + $0x124] ss:$8 sps:$4 sm:$0xff]  }
  0x17   :  { %836 = vmatprep.subr.bf16.mxu0 %v5523_v0  ;;  %4607 = vmatprep.subr.bf16.mxu1 %v5244_v52  ;;  %v5200_v2 = vld [vmem:[%s7163_s1 + $0x110] ss:$8 sps:$4 sm:$0xff]   ;;  %v5203_v6 = vld [vmem:[%s7163_s1 + $0x120] ss:$8 sps:$4 sm:$0xff]   ;;  %v5204_v7 = vld [vmem:[%s7163_s1 + $0x134] ss:$8 sps:$4 sm:$0xff]  }
  0x18   :  { %v5261_v4 = vld [vmem:[%s7164_s2 + $0x38] sm:$0xff]  }
  0x19   :  { %v5248_v50 = vld [vmem:[%s7163_s1 + $0x1f4] ss:$8 sps:$4 sm:$0xff]  }
  0x1a   :  { %837 = vmatpush1.bf16.msra.mxu0 %v5137_v8  ;;  %4608 = vmatpush3.bf16.msra.mxu1 %v5245_v53  ;;  %v5206_v8 = vld [vmem:[%s7163_s1 + $0x130] ss:$8 sps:$4 sm:$0xff]  }
  0x1b   :  { %838 = vmatprep.subr.bf16.mxu0 %v5523_v0  ;;  %4609 = vmatprep.subr.bf16.mxu1 %v5246_v55  ;;  %v5250_v55 = vld [vmem:[%s7163_s1 + $0x1f0] ss:$8 sps:$4 sm:$0xff]  }
  0x1e   :  { %839 = vmatpush1.bf16.msra.mxu0 %v5138_v9  ;;  %4610 = vmatpush3.bf16.msra.mxu1 %v5247_v56  ;;  %v5207_v9 = vld [vmem:[%s7163_s1 + $0x144] ss:$8 sps:$4 sm:$0xff]  }
  0x1f   :  { %840 = vmatprep.subr.bf16.mxu0 %v5523_v0  ;;  %4611 = vmatprep.subr.bf16.mxu1 %v5251_v58 }
  0x22   :  { %841 = vmatpush1.bf16.msra.mxu0 %v5139_v10  ;;  %4612 = vmatpush3.bf16.msra.mxu1 %v5252_v59  ;;  %v5209_v10 = vld [vmem:[%s7163_s1 + $0x140] ss:$8 sps:$4 sm:$0xff]  }
  0x23   :  { %842 = vmatprep.subr.bf16.mxu0 %v5523_v0  ;;  %4613 = vmatprep.subr.bf16.mxu1 %v5253_v61 }
  0x26   :  { %843 = vmatpush1.bf16.msra.mxu0 %v5140_v11  ;;  %4614 = vmatpush3.bf16.msra.mxu1 %v5254_v62  ;;  %v5210_v11 = vld [vmem:[%s7163_s1 + $0x154] ss:$8 sps:$4 sm:$0xff]   ;;  %v5257_v62 = vld [vmem:[%s7163_s1 + $0x200] ss:$8 sps:$4 sm:$0xff]  }
  0x27   :  { %844 = vmatprep.subr.bf16.mxu0 %v5523_v0 }
  0x2a   :  { %845 = vmatpush1.bf16.msra.mxu0 %v5141_v12  ;;  %v5212_v12 = vld [vmem:[%s7163_s1 + $0x150] ss:$8 sps:$4 sm:$0xff]  }
  0x2b   :  { %846 = vmatprep.subr.bf16.mxu0 %v5523_v0 }
  0x2e   :  { %847 = vmatpush1.bf16.msra.mxu0 %v5142_v13  ;;  %v5213_v13 = vld [vmem:[%s7163_s1 + $0x164] ss:$8 sps:$4 sm:$0xff]  }
  0x2f   :  { %848 = vmatprep.subr.bf16.mxu0 %v5523_v0 }
  0x32   :  { %849 = vmatpush1.bf16.msra.mxu0 %v5143_v14  ;;  %v5215_v14 = vld [vmem:[%s7163_s1 + $0x160] ss:$8 sps:$4 sm:$0xff]  }
  0x33   :  { %850 = vmatprep.subr.bf16.mxu0 %v5523_v0 }
  0x36   :  { %851 = vmatpush1.bf16.msra.mxu0 %v5144_v15  ;;  %v5216_v15 = vld [vmem:[%s7163_s1 + $0x174] ss:$8 sps:$4 sm:$0xff]  }
  0x37   :  { %852 = vmatprep.subr.bf16.mxu0 %v5523_v0 }
  0x3a   :  { %853 = vmatpush1.bf16.msra.mxu0 %v5145_v16  ;;  %v5218_v16 = vld [vmem:[%s7163_s1 + $0x170] ss:$8 sps:$4 sm:$0xff]  }
  0x3b   :  { %854 = vmatprep.subr.bf16.mxu0 %v5523_v0  ;;  %v5258_v0 = vld [vmem:[%s7164_s2 + $0x70] sm:$0xff]  }
  0x3c   :  { %4615 = vmatprep.subr.bf16.mxu1 %v5258_v0  ;;  %v5262_v0 = vld [vmem:[%s7163_s1 + $0x214] ss:$8 sps:$4 sm:$0xff]  }
  0x3d   :  { %4616 = vmatpush3.bf16.msra.mxu1 %v5259_v1 }
  0x3e   :  { %855 = vmatpush1.bf16.msra.mxu0 %v5146_v17  ;;  %4617 = vmatprep.subr.bf16.mxu1 %v5260_v3  ;;  %v5219_v17 = vld [vmem:[%s7163_s1 + $0x184] ss:$8 sps:$4 sm:$0xff]  }
  0x41   :  { %857 = vmatmul.mubr.bf16.vlgmr.msra.gmra.mrb[0].mxu0 %v5147_v18  ;;  %4618 = vmatpush3.bf16.msra.mxu1 %v5261_v4  ;;  %v5221_v18 = vld [vmem:[%s7163_s1 + $0x180] ss:$8 sps:$4 sm:$0xff]  }
  0x42   :  { %864 = vmatprep.mubr.bf16.mxu0 %v5150_v19  ;;  %v5222_v19 = vld [vmem:[%s7163_s1 + $0x194] ss:$8 sps:$4 sm:$0xff]  }
  0x49   :  { %865 = vmatmul.mubr.bf16.gmra.mrb[4].mxu0 %v5152_v20  ;;  %v5224_v20 = vld [vmem:[%s7163_s1 + $0x190] ss:$8 sps:$4 sm:$0xff]  }
  0x4a   :  { %872 = vmatprep.mubr.bf16.mxu0 %v5153_v21  ;;  %v5225_v21 = vld [vmem:[%s7163_s1 + $0x1a4] ss:$8 sps:$4 sm:$0xff]  }
  0x51   :  { %873 = vmatmul.mubr.bf16.gmra.mrb[8].mxu0 %v5155_v22  ;;  %v5289_v22 = vld [vmem:[%s7164_s2 + $0xc0] sm:$0xff]  }
  0x52   :  { %880 = vmatprep.mubr.bf16.mxu0 %v5156_v23  ;;  %4655 = vmatprep.subr.bf16.mxu1 %v5289_v22  ;;  %v5227_v23 = vld [vmem:[%s7163_s1 + $0x1a0] ss:$8 sps:$4 sm:$0xff]   ;;  %v5298_v22 = vld [vmem:[%s7164_s2 + $0xd8] sm:$0xff]  }
  0x59   :  { %881 = vmatmul.mubr.bf16.gmra.mrb[12].mxu0 %v5158_v24  ;;  %v5228_v24 = vld [vmem:[%s7163_s1 + $0x1b4] ss:$8 sps:$4 sm:$0xff]  }
  0x5a   :  { %888 = vmatprep.mubr.bf16.mxu0 %v5159_v25 }
  0x61   :  { %889 = vmatmul.mubr.bf16.gmra.mrb[16].mxu0 %v5161_v26 }
  0x62   :  { %896 = vmatprep.mubr.bf16.mxu0 %v5162_v27  ;;  %v5230_v27 = vld [vmem:[%s7163_s1 + $0x1b0] ss:$8 sps:$4 sm:$0xff]  }
  0x69   :  { %897 = vmatmul.mubr.bf16.gmra.mrb[20].mxu0 %v5164_v28 }
  0x6a   :  { %904 = vmatprep.mubr.bf16.mxu0 %v5165_v29  ;;  %v5231_v29 = vld [vmem:[%s7163_s1 + $0x1c4] ss:$8 sps:$4 sm:$0xff]  }
  0x71   :  { %905 = vmatmul.mubr.bf16.gmra.mrb[24].mxu0 %v5167_v30 }
  0x72   :  { %912 = vmatprep.mubr.bf16.mxu0 %v5168_v31 }
  0x79   :  { %913 = vmatmul.mubr.bf16.gmra.mrb[28].mxu0 %v5170_v32 }
  0x7a   :  { %920 = vmatprep.mubr.bf16.mxu0 %v5171_v33 }
  0x81   :  { %921 = vmatmul.mubr.bf16.gmra.mrb[32].mxu0 %v5173_v34  ;;  %v5233_v34 = vld [vmem:[%s7163_s1 + $0x1c0] ss:$8 sps:$4 sm:$0xff]  }
  0x82   :  { %928 = vmatprep.mubr.bf16.mxu0 %v5174_v35 }
  0x89   :  { %929 = vmatmul.mubr.bf16.gmra.mrb[36].mxu0 %v5176_v36  ;;  %v5234_v36 = vld [vmem:[%s7163_s1 + $0x1d4] ss:$8 sps:$4 sm:$0xff]  }
  0x8a   :  { %936 = vmatprep.mubr.bf16.mxu0 %v5177_v37 }
  0x91   :  { %937 = vmatmul.mubr.bf16.gmra.mrb[40].mxu0 %v5179_v38 }
  0x92   :  { %944 = vmatprep.mubr.bf16.mxu0 %v5180_v39 }
  0x99   :  { %945 = vmatmul.mubr.bf16.gmra.mrb[44].mxu0 %v5182_v40 }
  0x9a   :  { %952 = vmatprep.mubr.bf16.mxu0 %v5183_v41  ;;  %v5236_v41 = vld [vmem:[%s7163_s1 + $0x1d0] ss:$8 sps:$4 sm:$0xff]  }
  0xa1   :  { %953 = vmatmul.mubr.bf16.gmra.mrb[48].mxu0 %v5185_v42 }
  0xa2   :  { %960 = vmatprep.mubr.bf16.mxu0 %v5186_v43  ;;  %v5241_v43 = vld [vmem:[%s7163_s1 + $0x1e4] ss:$8 sps:$4 sm:$0xff]  }
  0xa9   :  { %961 = vmatmul.mubr.bf16.gmra.mrb[52].mxu0 %v5188_v44 }
  0xaa   :  { %968 = vmatprep.mubr.bf16.mxu0 %v5189_v45 }
  0xb1   :  { %969 = vmatmul.mubr.bf16.gmra.mrb[56].mxu0 %v5191_v48  ;;  %v5243_v48 = vld [vmem:[%s7163_s1 + $0x1e0] ss:$8 sps:$4 sm:$0xff]  }
  0xb2   :  { %976 = vmatprep.mubr.bf16.mxu0 %v5192_v51 }
  0xb9   :  { %977 = vmatmul.mubr.bf16.gmra.mrb[60].mxu0 %v5194_v54 }
  0xba   :  { %984 = vmatprep.mubr.bf16.mxu0 %v5195_v57  ;;  %v5255_v57 = vld [vmem:[%s7163_s1 + $0x204] ss:$8 sps:$4 sm:$0xff]  }
  0xc1   :  { %985 = vmatmul.mubr.bf16.gmra.mrb[64].mxu0 %v5197_v60 }
  0xc2   :  { %992 = vmatprep.mubr.bf16.mxu0 %v5198_v63 }
  0xc9   :  { %993 = vmatmul.mubr.bf16.gmra.mrb[68].mxu0 %v5200_v2 }
  0xca   :  { %1000 = vmatprep.mubr.bf16.mxu0 %v5201_v5  ;;  %v5264_v5 = vld [vmem:[%s7163_s1 + $0x210] ss:$8 sps:$4 sm:$0xff]  }
  0xd1   :  { %1001 = vmatmul.mubr.bf16.gmra.mrb[72].mxu0 %v5203_v6 }
  0xd2   :  { %1008 = vmatprep.mubr.bf16.mxu0 %v5204_v7  ;;  %v5265_v7 = vld [vmem:[%s7163_s1 + $0x224] ss:$8 sps:$4 sm:$0xff]  }
  0xd9   :  { %1009 = vmatmul.mubr.bf16.gmra.mrb[76].mxu0 %v5206_v8 }
  0xda   :  { %1016 = vmatprep.mubr.bf16.mxu0 %v5207_v9 }
  0xe1   :  { %1017 = vmatmul.mubr.bf16.gmra.mrb[80].mxu0 %v5209_v10  ;;  %v5290_v10 = vld [vmem:[%s7164_s2 + $0x80] sm:$0xff]  }
  0xe2   :  { %1024 = vmatprep.mubr.bf16.mxu0 %v5210_v11  ;;  %v5291_v11 = vld [vmem:[%s7164_s2 + $0xc8] sm:$0xff]  }
  0xe9   :  { %1025 = vmatmul.mubr.bf16.gmra.mrb[84].mxu0 %v5212_v12  ;;  %v5292_v12 = vld [vmem:[%s7164_s2 + $0x88] sm:$0xff]  }
  0xea   :  { %1032 = vmatprep.mubr.bf16.mxu0 %v5213_v13 }
  0xf1   :  { %1033 = vmatmul.mubr.bf16.gmra.mrb[88].mxu0 %v5215_v14  ;;  %v5296_v14 = vld [vmem:[%s7164_s2 + $0xd0] sm:$0xff]  }
  0xf2   :  { %1040 = vmatprep.mubr.bf16.mxu0 %v5216_v15 }
  0xf9   :  { %1041 = vmatmul.mubr.bf16.gmra.mrb[92].mxu0 %v5218_v16  ;;  %v5267_v16 = vld [vmem:[%s7163_s1 + $0x220] ss:$8 sps:$4 sm:$0xff]  }
  0xfa   :  { %1048 = vmatprep.mubr.bf16.mxu0 %v5219_v17 }
 0x101   :  { %1049 = vmatmul.mubr.bf16.gmra.mrb[96].mxu0 %v5221_v18  ;;  %v5268_v18 = vld [vmem:[%s7163_s1 + $0x234] ss:$8 sps:$4 sm:$0xff]  }
 0x102   :  { %1056 = vmatprep.mubr.bf16.mxu0 %v5222_v19 }
 0x109   :  { %1057 = vmatmul.mubr.bf16.gmra.mrb[100].mxu0 %v5224_v20 }
 0x10a   :  { %1064 = vmatprep.mubr.bf16.mxu0 %v5225_v21  ;;  %v5297_v21 = vld [vmem:[%s7164_s2 + $0x90] sm:$0xff]  }
 0x111   :  { %1065 = vmatmul.mubr.bf16.gmra.mrb[104].mxu0 %v5227_v23  ;;  %v5299_v23 = vld [vmem:[%s7164_s2 + $0x98] sm:$0xff]  }
 0x112   :  { %1072 = vmatprep.mubr.bf16.mxu0 %v5228_v24 }
 0x114   :  { %v5865_v25 = vpop.f32.mrb[0].mxu0 }
 0x115   :  { %v860_v26 = vpop.f32.mrb[1].mxu0 }
 0x116   :  { %v861_v28 = vpop.f32.mrb[2].mxu0 }
 0x117   :  { %v1289_v30 = vpack.c.bf16 %v861_v28, %v5865_v25  ;;  %v863_v31 = vpop.f32.mrb[3].mxu0  ;;  %v5303_v25 = vld [vmem:[%s7164_s2 + $0xe0] sm:$0xff]  }
 0x119   :  { %1073 = vmatmul.mubr.bf16.gmra.mrb[108].mxu0 %v5230_v27  ;;  %v5270_v27 = vld [vmem:[%s7163_s1 + $0x230] ss:$8 sps:$4 sm:$0xff]  }
 0x11a   :  { %1080 = vmatprep.mubr.bf16.mxu0 %v5231_v29  ;;  %v5271_v29 = vld [vmem:[%s7163_s1 + $0x244] ss:$8 sps:$4 sm:$0xff]  }
 0x11c   :  { %v5874_v32 = vpop.f32.mrb[4].mxu0 }
 0x11d   :  { %v868_v33 = vpop.f32.mrb[5].mxu0 }
 0x11e   :  { %v5879_v35 = vpop.f32.mrb[6].mxu0  ;;  %v5305_v33 = vld [vmem:[%s7164_s2 + $0xe8] sm:$0xff]  }
 0x11f   :  { %v1298_v37 = vpack.c.bf16 %v5879_v35, %v5874_v32  ;;  %v871_v38 = vpop.f32.mrb[7].mxu0  ;;  %v5304_v32 = vld [vmem:[%s7164_s2 + $0xa0] sm:$0xff]  }
 0x120   :  { %v5273_v38 = vld [vmem:[%s7163_s1 + $0x240] ss:$8 sps:$4 sm:$0xff]  }
 0x121   :  { %1081 = vmatmul.mubr.bf16.gmra.mrb[112].mxu0 %v5233_v34  ;;  %v5306_v34 = vld [vmem:[%s7164_s2 + $0xa8] sm:$0xff]  }
 0x122   :  { %1088 = vmatprep.mubr.bf16.mxu0 %v5234_v36  ;;  %v5310_v36 = vld [vmem:[%s7164_s2 + $0xf0] sm:$0xff]  }
 0x124   :  { %v5886_v39 = vpop.f32.mrb[8].mxu0 }
 0x125   :  { %v876_v40 = vpop.f32.mrb[9].mxu0 }
 0x126   :  { %v5891_v42 = vpop.f32.mrb[10].mxu0 }
 0x127   :  { %v1307_v44 = vpack.c.bf16 %v5891_v42, %v5886_v39  ;;  %v879_v45 = vpop.f32.mrb[11].mxu0  ;;  %v5274_v39 = vld [vmem:[%s7163_s1 + $0x254] ss:$8 sps:$4 sm:$0xff]  }
 0x128   :  { %v5313_v45 = vld [vmem:[%s7164_s2 + $0xb8] sm:$0xff]  }
 0x129   :  { %1089 = vmatmul.mubr.bf16.gmra.mrb[116].mxu0 %v5236_v41 }
 0x12a   :  { %1096 = vmatprep.mubr.bf16.mxu0 %v5241_v43  ;;  %v5311_v43 = vld [vmem:[%s7164_s2 + $0xb0] sm:$0xff]  }
 0x12c   :  { %v5898_v46 = vpop.f32.mrb[12].mxu0 }
 0x12d   :  { %v884_v47 = vpop.f32.mrb[13].mxu0 }
 0x12e   :  { %v5903_v49 = vpop.f32.mrb[14].mxu0 }
 0x12f   :  { %v1316_v51 = vpack.c.bf16 %v5903_v49, %v5898_v46  ;;  %v887_v52 = vpop.f32.mrb[15].mxu0 }
 0x131   :  { %1097 = vmatmul.mubr.bf16.gmra.mrb[120].mxu0 %v5243_v48 }
 0x132   :  { %1104 = vmatprep.mubr.bf16.mxu0 %v5248_v50  ;;  %v5276_v50 = vld [vmem:[%s7163_s1 + $0x250] ss:$8 sps:$4 sm:$0xff]  }
 0x134   :  { %v5910_v53 = vpop.f32.mrb[16].mxu0 }
 0x135   :  { %v892_v54 = vpop.f32.mrb[17].mxu0 }
 0x136   :  { %v5915_v56 = vpop.f32.mrb[18].mxu0  ;;  %v5277_v54 = vld [vmem:[%s7163_s1 + $0x264] ss:$8 sps:$4 sm:$0xff]  }
 0x137   :  { %v1325_v58 = vpack.c.bf16 %v5915_v56, %v5910_v53  ;;  %v895_v59 = vpop.f32.mrb[19].mxu0 }
 0x138   :  { %v5279_v59 = vld [vmem:[%s7163_s1 + $0x260] ss:$8 sps:$4 sm:$0xff]  }
 0x139   :  { %1105 = vmatmul.mubr.bf16.gmra.mrb[124].mxu0 %v5250_v55 }
 0x13a   :  { %1112 = vmatprep.mubr.bf16.mxu0 %v5255_v57 }
 0x13c   :  { %v5922_v60 = vpop.f32.mrb[20].mxu0 }
 0x13d   :  { %v900_v61 = vpop.f32.mrb[21].mxu0 }
 0x13e   :  { %v5927_v63 = vpop.f32.mrb[22].mxu0 }
 0x13f   :  { %v1334_v1 = vpack.c.bf16 %v5927_v63, %v5922_v60  ;;  %v903_v2 = vpop.f32.mrb[23].mxu0 }
 0x141   :  { %1113 = vmatmul.mubr.bf16.gmra.mrb[128].mxu0 %v5257_v62  ;;  %v5280_v62 = vld [vmem:[%s7163_s1 + $0x274] ss:$8 sps:$4 sm:$0xff]  }
 0x142   :  { %1120 = vmatprep.mubr.bf16.mxu0 %v5262_v0 }
 0x144   :  { %v906_v3 = vpop.f32.mrb[24].mxu0 }
 0x145   :  { %v908_v4 = vpop.f32.mrb[25].mxu0 }
 0x146   :  { %v909_v6 = vpop.f32.mrb[26].mxu0  ;;  %v5283_v4 = vld [vmem:[%s7163_s1 + $0x284] ss:$8 sps:$4 sm:$0xff]  }
 0x147   :  { %v911_v8 = vpop.f32.mrb[27].mxu0  ;;  %v1290_v9 = vpack.c.bf16 %v909_v6, %v906_v3 }
 0x148   :  { %v5286_v8 = vld [vmem:[%s7163_s1 + $0x294] ss:$8 sps:$4 sm:$0xff]  }
 0x149   :  { %1121 = vmatmul.mubr.bf16.gmra.mrb[132].mxu0 %v5264_v5  ;;  %1958 = vmatprep.mubr.bf16.mxu1 %v1290_v9 }
 0x14a   :  { %1959 = vmatmul.mubr.bf16.vlgmr.msra.gmra.mrb[0].mxu1 %v1289_v30  ;;  %1128 = vmatprep.mubr.bf16.mxu0 %v5265_v7 }
 0x14b   :  { %4656 = vmatpush3.bf16.msra.mxu1 %v5290_v10 }
 0x14c   :  { %v914_v13 = vpop.f32.mrb[28].mxu0  ;;  %4657 = vmatprep.subr.bf16.mxu1 %v5291_v11 }
 0x14d   :  { %v916_v15 = vpop.f32.mrb[29].mxu0 }
 0x14e   :  { %v917_v17 = vpop.f32.mrb[30].mxu0  ;;  %v5293_v15 = vld [vmem:[%s7163_s1 + $0x2a4] ss:$8 sps:$4 sm:$0xff]  }
 0x14f   :  { %v1299_v19 = vpack.c.bf16 %v917_v17, %v914_v13  ;;  %v919_v20 = vpop.f32.mrb[31].mxu0  ;;  %4658 = vmatpush3.bf16.msra.mxu1 %v5292_v12  ;;  %v5288_v13 = vld [vmem:[%s7163_s1 + $0x290] ss:$8 sps:$4 sm:$0xff]  }
 0x150   :  { %4659 = vmatprep.subr.bf16.mxu1 %v5296_v14  ;;  %v5295_v20 = vld [vmem:[%s7163_s1 + $0x2a0] ss:$8 sps:$4 sm:$0xff]  }
 0x151   :  { %1129 = vmatmul.mubr.bf16.gmra.mrb[136].mxu0 %v5267_v16  ;;  %1966 = vmatprep.mubr.bf16.mxu1 %v1299_v19 }
 0x152   :  { %1967 = vmatmul.mubr.bf16.gmra.mrb[4].mxu1 %v1298_v37  ;;  %1136 = vmatprep.mubr.bf16.mxu0 %v5268_v18 }
 0x153   :  { %4660 = vmatpush3.bf16.msra.mxu1 %v5297_v21 }
 0x154   :  { %v922_v24 = vpop.f32.mrb[32].mxu0  ;;  %4661 = vmatprep.subr.bf16.mxu1 %v5298_v22  ;;  %v5300_v22 = vld [vmem:[%s7163_s1 + $0x2b4] ss:$8 sps:$4 sm:$0xff]  }
 0x155   :  { %v924_v26 = vpop.f32.mrb[33].mxu0 }
 0x156   :  { %v925_v28 = vpop.f32.mrb[34].mxu0 }
 0x157   :  { %v1308_v30 = vpack.c.bf16 %v925_v28, %v922_v24  ;;  %v927_v31 = vpop.f32.mrb[35].mxu0  ;;  %4662 = vmatpush3.bf16.msra.mxu1 %v5299_v23 }
 0x158   :  { %4663 = vmatprep.subr.bf16.mxu1 %v5303_v25 }
 0x159   :  { %1137 = vmatmul.mubr.bf16.gmra.mrb[140].mxu0 %v5270_v27  ;;  %1974 = vmatprep.mubr.bf16.mxu1 %v1308_v30  ;;  %v5302_v27 = vld [vmem:[%s7163_s1 + $0x2b0] ss:$8 sps:$4 sm:$0xff]  }
 0x15a   :  { %1975 = vmatmul.mubr.bf16.gmra.mrb[8].mxu1 %v1307_v44  ;;  %1144 = vmatprep.mubr.bf16.mxu0 %v5271_v29  ;;  %v5312_v44 = vld [vmem:[%s7164_s2 + $0xf8] sm:$0xff]   ;;  %v5307_v29 = vld [vmem:[%s7163_s1 + $0x2c4] ss:$8 sps:$4 sm:$0xff]  }
 0x15b   :  { %4664 = vmatpush3.bf16.msra.mxu1 %v5304_v32 }
 0x15c   :  { %v930_v35 = vpop.f32.mrb[36].mxu0  ;;  %4665 = vmatprep.subr.bf16.mxu1 %v5305_v33 }
 0x15d   :  { %v932_v37 = vpop.f32.mrb[37].mxu0 }
 0x15e   :  { %v933_v40 = vpop.f32.mrb[38].mxu0 }
 0x15f   :  { %v1317_v41 = vpack.c.bf16 %v933_v40, %v930_v35  ;;  %v935_v42 = vpop.f32.mrb[39].mxu0  ;;  %4666 = vmatpush3.bf16.msra.mxu1 %v5306_v34  ;;  %v5309_v34 = vld [vmem:[%s7163_s1 + $0x2c0] ss:$8 sps:$4 sm:$0xff]  }
 0x160   :  { %4667 = vmatprep.subr.bf16.mxu1 %v5310_v36  ;;  %v5314_v36 = vld [vmem:[%s7163_s1 + $0x2d4] ss:$8 sps:$4 sm:$0xff]  }
 0x161   :  { %1145 = vmatmul.mubr.bf16.gmra.mrb[144].mxu0 %v5273_v38  ;;  %1982 = vmatprep.mubr.bf16.mxu1 %v1317_v41  ;;  %v5316_v41 = vld [vmem:[%s7163_s1 + $0x2d0] ss:$8 sps:$4 sm:$0xff]  }
 0x162   :  { %1983 = vmatmul.mubr.bf16.gmra.mrb[12].mxu1 %v1316_v51  ;;  %1152 = vmatprep.mubr.bf16.mxu0 %v5274_v39  ;;  %v5341_v51 = vld [vmem:[%s7164_s2 + $0x140] sm:$0xff]  }
 0x163   :  { %4668 = vmatpush3.bf16.msra.mxu1 %v5311_v43  ;;  %v5317_v43 = vld [vmem:[%s7163_s1 + $0x2e4] ss:$8 sps:$4 sm:$0xff]  }
 0x164   :  { %v938_v47 = vpop.f32.mrb[40].mxu0  ;;  %4669 = vmatprep.subr.bf16.mxu1 %v5312_v44 }
 0x165   :  { %v940_v48 = vpop.f32.mrb[41].mxu0 }
 0x166   :  { %v941_v52 = vpop.f32.mrb[42].mxu0  ;;  %v5343_v48 = vld [vmem:[%s7164_s2 + $0x148] sm:$0xff]  }
 0x167   :  { %v1326_v46 = vpack.c.bf16 %v941_v52, %v938_v47  ;;  %v943_v49 = vpop.f32.mrb[43].mxu0  ;;  %4670 = vmatpush3.bf16.msra.mxu1 %v5313_v45  ;;  %v5342_v47 = vld [vmem:[%s7164_s2 + $0x100] sm:$0xff]  }
 0x168   :  { %4707 = vmatprep.subr.bf16.mxu1 %v5341_v51  ;;  %v5319_v49 = vld [vmem:[%s7163_s1 + $0x2e0] ss:$8 sps:$4 sm:$0xff]  }
 0x169   :  { %1153 = vmatmul.mubr.bf16.gmra.mrb[148].mxu0 %v5276_v50  ;;  %1990 = vmatprep.mubr.bf16.mxu1 %v1326_v46  ;;  %v5344_v50 = vld [vmem:[%s7164_s2 + $0x108] sm:$0xff]  }
 0x16a   :  { %1991 = vmatmul.mubr.bf16.gmra.mrb[16].mxu1 %v1325_v58  ;;  %1160 = vmatprep.mubr.bf16.mxu0 %v5277_v54  ;;  %v5282_v58 = vld [vmem:[%s7163_s1 + $0x270] ss:$8 sps:$4 sm:$0xff]  }
 0x16b   :  { %v5345_v54 = vld [vmem:[%s7164_s2 + $0x150] sm:$0xff]  }
 0x16c   :  { %v946_v55 = vpop.f32.mrb[44].mxu0 }
 0x16d   :  { %v948_v57 = vpop.f32.mrb[45].mxu0 }
 0x16e   :  { %v949_v61 = vpop.f32.mrb[46].mxu0 }
 0x16f   :  { %v1335_v0 = vpack.c.bf16 %v949_v61, %v946_v55  ;;  %v951_v2 = vpop.f32.mrb[47].mxu0  ;;  %v5320_v55 = vld [vmem:[%s7163_s1 + $0x2f4] ss:$8 sps:$4 sm:$0xff]  }
 0x170   :  { %v5346_v61 = vld [vmem:[%s7164_s2 + $0x110] sm:$0xff]  }
 0x171   :  { %1161 = vmatmul.mubr.bf16.gmra.mrb[152].mxu0 %v5279_v59  ;;  %1998 = vmatprep.mubr.bf16.mxu1 %v1335_v0  ;;  %v5348_v0 = vld [vmem:[%s7164_s2 + $0x118] sm:$0xff]  }
 0x172   :  { %1999 = vmatmul.mubr.bf16.gmra.mrb[20].mxu1 %v1334_v1  ;;  %1168 = vmatprep.mubr.bf16.mxu0 %v5280_v62  ;;  %v5285_v1 = vld [vmem:[%s7163_s1 + $0x280] ss:$8 sps:$4 sm:$0xff]   ;;  %v5347_v62 = vld [vmem:[%s7164_s2 + $0x158] sm:$0xff]  }
 0x174   :  { %v6033_v53 = vpop.f32.mrb[48].mxu0 }
 0x175   :  { %v956_v56 = vpop.f32.mrb[49].mxu0 }
 0x176   :  { %v957_v3 = vpop.f32.mrb[50].mxu0 }
 0x177   :  { %v1291_v5 = vpack.c.bf16 %v957_v3, %v6033_v53  ;;  %v959_v6 = vpop.f32.mrb[51].mxu0  ;;  %v5349_v53 = vld [vmem:[%s7164_s2 + $0x160] sm:$0xff]  }
 0x179   :  { %1169 = vmatmul.mubr.bf16.gmra.mrb[156].mxu0 %v5282_v58  ;;  %v5322_v58 = vld [vmem:[%s7163_s1 + $0x2f0] ss:$8 sps:$4 sm:$0xff]  }
 0x17a   :  { %1176 = vmatprep.mubr.bf16.mxu0 %v5283_v4  ;;  %v5323_v4 = vld [vmem:[%s7163_s1 + $0x304] ss:$8 sps:$4 sm:$0xff]  }
 0x17c   :  { %v6042_v60 = vpop.f32.mrb[52].mxu0 }
 0x17d   :  { %v964_v63 = vpop.f32.mrb[53].mxu0 }
 0x17e   :  { %v6047_v7 = vpop.f32.mrb[54].mxu0  ;;  %v5351_v63 = vld [vmem:[%s7164_s2 + $0x168] sm:$0xff]  }
 0x17f   :  { %v1300_v9 = vpack.c.bf16 %v6047_v7, %v6042_v60  ;;  %v967_v10 = vpop.f32.mrb[55].mxu0  ;;  %v5350_v60 = vld [vmem:[%s7164_s2 + $0x120] sm:$0xff]  }
 0x180   :  { %v5325_v10 = vld [vmem:[%s7163_s1 + $0x300] ss:$8 sps:$4 sm:$0xff]  }
 0x181   :  { %1177 = vmatmul.mubr.bf16.gmra.mrb[160].mxu0 %v5285_v1  ;;  %v5352_v1 = vld [vmem:[%s7164_s2 + $0x128] sm:$0xff]  }
 0x182   :  { %1184 = vmatprep.mubr.bf16.mxu0 %v5286_v8  ;;  %v5353_v8 = vld [vmem:[%s7164_s2 + $0x170] sm:$0xff]  }
 0x184   :  { %v6054_v11 = vpop.f32.mrb[56].mxu0 }
 0x185   :  { %v972_v12 = vpop.f32.mrb[57].mxu0 }
 0x186   :  { %v6059_v14 = vpop.f32.mrb[58].mxu0 }
 0x187   :  { %v1309_v16 = vpack.c.bf16 %v6059_v14, %v6054_v11  ;;  %v975_v17 = vpop.f32.mrb[59].mxu0  ;;  %v5326_v11 = vld [vmem:[%s7163_s1 + $0x314] ss:$8 sps:$4 sm:$0xff]  }
 0x188   :  { %v5356_v17 = vld [vmem:[%s7164_s2 + $0x138] sm:$0xff]  }
 0x189   :  { %1185 = vmatmul.mubr.bf16.gmra.mrb[164].mxu0 %v5288_v13 }
 0x18a   :  { %1192 = vmatprep.mubr.bf16.mxu0 %v5293_v15  ;;  %v5354_v15 = vld [vmem:[%s7164_s2 + $0x130] sm:$0xff]  }
 0x18c   :  { %v6066_v18 = vpop.f32.mrb[60].mxu0 }
 0x18d   :  { %v980_v19 = vpop.f32.mrb[61].mxu0 }
 0x18e   :  { %v6071_v21 = vpop.f32.mrb[62].mxu0 }
 0x18f   :  { %v1318_v23 = vpack.c.bf16 %v6071_v21, %v6066_v18  ;;  %v983_v24 = vpop.f32.mrb[63].mxu0 }
 0x191   :  { %1193 = vmatmul.mubr.bf16.gmra.mrb[168].mxu0 %v5295_v20 }
 0x192   :  { %1200 = vmatprep.mubr.bf16.mxu0 %v5300_v22  ;;  %v5328_v22 = vld [vmem:[%s7163_s1 + $0x310] ss:$8 sps:$4 sm:$0xff]  }
 0x194   :  { %v6078_v25 = vpop.f32.mrb[64].mxu0 }
 0x195   :  { %v988_v26 = vpop.f32.mrb[65].mxu0 }
 0x196   :  { %v6083_v28 = vpop.f32.mrb[66].mxu0  ;;  %v5329_v26 = vld [vmem:[%s7163_s1 + $0x324] ss:$8 sps:$4 sm:$0xff]  }
 0x197   :  { %v1327_v30 = vpack.c.bf16 %v6083_v28, %v6078_v25  ;;  %v991_v31 = vpop.f32.mrb[67].mxu0 }
 0x198   :  { %v5331_v31 = vld [vmem:[%s7163_s1 + $0x320] ss:$8 sps:$4 sm:$0xff]  }
 0x199   :  { %1201 = vmatmul.mubr.bf16.gmra.mrb[172].mxu0 %v5302_v27 }
 0x19a   :  { %1208 = vmatprep.mubr.bf16.mxu0 %v5307_v29 }
 0x19c   :  { %v6090_v32 = vpop.f32.mrb[68].mxu0 }
 0x19d   :  { %v996_v33 = vpop.f32.mrb[69].mxu0 }
 0x19e   :  { %v6095_v35 = vpop.f32.mrb[70].mxu0 }
 0x19f   :  { %v1336_v37 = vpack.c.bf16 %v6095_v35, %v6090_v32  ;;  %v999_v38 = vpop.f32.mrb[71].mxu0  ;;  %v5337_v32 = vld [vmem:[%s7163_s1 + $0x340] ss:$8 sps:$4 sm:$0xff]  }
 0x1a1   :  { %1209 = vmatmul.mubr.bf16.gmra.mrb[176].mxu0 %v5309_v34  ;;  %v5332_v34 = vld [vmem:[%s7163_s1 + $0x334] ss:$8 sps:$4 sm:$0xff]  }
 0x1a2   :  { %1216 = vmatprep.mubr.bf16.mxu0 %v5314_v36 }
 0x1a4   :  { %v1002_v40 = vpop.f32.mrb[72].mxu0 }
 0x1a5   :  { %v1004_v39 = vpop.f32.mrb[73].mxu0 }
 0x1a6   :  { %v1005_v42 = vpop.f32.mrb[74].mxu0  ;;  %v5335_v39 = vld [vmem:[%s7163_s1 + $0x344] ss:$8 sps:$4 sm:$0xff]  }
 0x1a7   :  { %v1292_v44 = vpack.c.bf16 %v1005_v42, %v1002_v40  ;;  %v1007_v45 = vpop.f32.mrb[75].mxu0 }
 0x1a9   :  { %1217 = vmatmul.mubr.bf16.gmra.mrb[180].mxu0 %v5316_v41  ;;  %2039 = vmatprep.mubr.bf16.mxu1 %v1292_v44 }
 0x1aa   :  { %2040 = vmatmul.mubr.bf16.vlgmr.msra.gmra.mrb[24].mxu1 %v1291_v5  ;;  %1224 = vmatprep.mubr.bf16.mxu0 %v5317_v43 }
 0x1ab   :  { %4708 = vmatpush3.bf16.msra.mxu1 %v5342_v47 }
 0x1ac   :  { %v1010_v52 = vpop.f32.mrb[76].mxu0  ;;  %4709 = vmatprep.subr.bf16.mxu1 %v5343_v48 }
 0x1ad   :  { %v1012_v46 = vpop.f32.mrb[77].mxu0 }
 0x1ae   :  { %v1013_v51 = vpop.f32.mrb[78].mxu0 }
 0x1af   :  { %v1301_v57 = vpack.c.bf16 %v1013_v51, %v1010_v52  ;;  %v1015_v59 = vpop.f32.mrb[79].mxu0  ;;  %4710 = vmatpush3.bf16.msra.mxu1 %v5344_v50  ;;  %v5340_v52 = vld [vmem:[%s7163_s1 + $0x350] ss:$8 sps:$4 sm:$0xff]  }
 0x1b0   :  { %4711 = vmatprep.subr.bf16.mxu1 %v5345_v54 }
 0x1b1   :  { %1225 = vmatmul.mubr.bf16.gmra.mrb[184].mxu0 %v5319_v49  ;;  %2047 = vmatprep.mubr.bf16.mxu1 %v1301_v57 }
 0x1b2   :  { %2048 = vmatmul.mubr.bf16.gmra.mrb[28].mxu1 %v1300_v9  ;;  %1232 = vmatprep.mubr.bf16.mxu0 %v5320_v55 }
 0x1b3   :  { %4712 = vmatpush3.bf16.msra.mxu1 %v5346_v61 }
 0x1b4   :  { %v1018_v2 = vpop.f32.mrb[80].mxu0  ;;  %4713 = vmatprep.subr.bf16.mxu1 %v5347_v62 }
 0x1b5   :  { %v1020_v56 = vpop.f32.mrb[81].mxu0 }
 0x1b6   :  { %v1021_v3 = vpop.f32.mrb[82].mxu0 }
 0x1b7   :  { %v1310_v5 = vpack.c.bf16 %v1021_v3, %v1018_v2  ;;  %v1023_v6 = vpop.f32.mrb[83].mxu0  ;;  %4714 = vmatpush3.bf16.msra.mxu1 %v5348_v0 }
 0x1b8   :  { %4715 = vmatprep.subr.bf16.mxu1 %v5349_v53 }
 0x1b9   :  { %1233 = vmatmul.mubr.bf16.gmra.mrb[188].mxu0 %v5322_v58  ;;  %2055 = vmatprep.mubr.bf16.mxu1 %v1310_v5 }
 0x1ba   :  { %2056 = vmatmul.mubr.bf16.gmra.mrb[32].mxu1 %v1309_v16  ;;  %1240 = vmatprep.mubr.bf16.mxu0 %v5323_v4  ;;  %v5355_v16 = vld [vmem:[%s7164_s2 + $0x178] sm:$0xff]  }
 0x1bb   :  { %4716 = vmatpush3.bf16.msra.mxu1 %v5350_v60 }
 0x1bc   :  { %v1026_v7 = vpop.f32.mrb[84].mxu0  ;;  %4717 = vmatprep.subr.bf16.mxu1 %v5351_v63 }
 0x1bd   :  { %v1028_v9 = vpop.f32.mrb[85].mxu0 }
 0x1be   :  { %v1029_v12 = vpop.f32.mrb[86].mxu0  ;;  %v5358_v9 = vld [vmem:[%s7164_s2 + $0x180] sm:$0xff]  }
 0x1bf   :  { %v1319_v13 = vpack.c.bf16 %v1029_v12, %v1026_v7  ;;  %v1031_v14 = vpop.f32.mrb[87].mxu0  ;;  %4718 = vmatpush3.bf16.msra.mxu1 %v5352_v1  ;;  %v5360_v12 = vld [vmem:[%s7164_s2 + $0x188] sm:$0xff]  }
 0x1c0   :  { %4719 = vmatprep.subr.bf16.mxu1 %v5353_v8 }
 0x1c1   :  { %1241 = vmatmul.mubr.bf16.gmra.mrb[192].mxu0 %v5325_v10  ;;  %2063 = vmatprep.mubr.bf16.mxu1 %v1319_v13  ;;  %v5359_v10 = vld [vmem:[%s7164_s2 + $0x1c8] sm:$0xff]   ;;  %v5361_v13 = vld [vmem:[%s7164_s2 + $0x1d0] sm:$0xff]  }
 0x1c2   :  { %2064 = vmatmul.mubr.bf16.gmra.mrb[36].mxu1 %v1318_v23  ;;  %1248 = vmatprep.mubr.bf16.mxu0 %v5326_v11  ;;  %v5357_v23 = vld [vmem:[%s7164_s2 + $0x1c0] sm:$0xff]  }
 0x1c3   :  { %4720 = vmatpush3.bf16.msra.mxu1 %v5354_v15 }
 0x1c4   :  { %v1034_v19 = vpop.f32.mrb[88].mxu0  ;;  %4721 = vmatprep.subr.bf16.mxu1 %v5355_v16 }
 0x1c5   :  { %v1036_v20 = vpop.f32.mrb[89].mxu0 }
 0x1c6   :  { %v1037_v24 = vpop.f32.mrb[90].mxu0  ;;  %v5363_v20 = vld [vmem:[%s7164_s2 + $0x1d8] sm:$0xff]  }
 0x1c7   :  { %v1328_v18 = vpack.c.bf16 %v1037_v24, %v1034_v19  ;;  %v1039_v21 = vpop.f32.mrb[91].mxu0  ;;  %4722 = vmatpush3.bf16.msra.mxu1 %v5356_v17  ;;  %v5362_v19 = vld [vmem:[%s7164_s2 + $0x190] sm:$0xff]  }
 0x1c8   :  { %4759 = vmatprep.subr.bf16.mxu1 %v5357_v23 }
 0x1c9   :  { %1249 = vmatmul.mubr.bf16.gmra.mrb[196].mxu0 %v5328_v22  ;;  %2071 = vmatprep.mubr.bf16.mxu1 %v1328_v18  ;;  %v5364_v22 = vld [vmem:[%s7164_s2 + $0x198] sm:$0xff]  }
 0x1ca   :  { %2072 = vmatmul.mubr.bf16.gmra.mrb[40].mxu1 %v1327_v30  ;;  %1256 = vmatprep.mubr.bf16.mxu0 %v5329_v26  ;;  %v5334_v30 = vld [vmem:[%s7163_s1 + $0x330] ss:$8 sps:$4 sm:$0xff]   ;;  %v5365_v26 = vld [vmem:[%s7164_s2 + $0x1e0] sm:$0xff]  }
 0x1cc   :  { %v1042_v27 = vpop.f32.mrb[92].mxu0 }
 0x1cd   :  { %v1044_v29 = vpop.f32.mrb[93].mxu0 }
 0x1ce   :  { %v1045_v33 = vpop.f32.mrb[94].mxu0  ;;  %v5366_v29 = vld [vmem:[%s7164_s2 + $0x1a0] sm:$0xff]  }
 0x1cf   :  { %v1337_v36 = vpack.c.bf16 %v1045_v33, %v1042_v27  ;;  %v1047_v38 = vpop.f32.mrb[95].mxu0  ;;  %v5368_v33 = vld [vmem:[%s7164_s2 + $0x1a8] sm:$0xff]  }
 0x1d1   :  { %1257 = vmatmul.mubr.bf16.gmra.mrb[200].mxu0 %v5331_v31  ;;  %2079 = vmatprep.mubr.bf16.mxu1 %v1337_v36  ;;  %v5367_v31 = vld [vmem:[%s7164_s2 + $0x1e8] sm:$0xff]   ;;  %v5369_v36 = vld [vmem:[%s7164_s2 + $0x1f0] sm:$0xff]  }
 0x1d2   :  { %2080 = vmatmul.mubr.bf16.gmra.mrb[44].mxu1 %v1336_v37  ;;  %1264 = vmatprep.mubr.bf16.mxu0 %v5332_v34  ;;  %v5338_v37 = vld [vmem:[%s7163_s1 + $0x354] ss:$8 sps:$4 sm:$0xff]  }
 0x1d4   :  { %v1050_v25 = vpop.f32.mrb[96].mxu0 }
 0x1d5   :  { %v1052_v28 = vpop.f32.mrb[97].mxu0 }
 0x1d6   :  { %v1053_v40 = vpop.f32.mrb[98].mxu0 }
 0x1d7   :  { %v1293_v41 = vpack.c.bf16 %v1053_v40, %v1050_v25  ;;  %v1055_v42 = vpop.f32.mrb[99].mxu0 }
 0x1d9   :  { %1265 = vmatmul.mubr.bf16.gmra.mrb[204].mxu0 %v5334_v30 }
 0x1da   :  { %1272 = vmatprep.mubr.bf16.mxu0 %v5335_v39 }
 0x1dc   :  { %v1058_v43 = vpop.f32.mrb[100].mxu0 }
 0x1dd   :  { %v1060_v44 = vpop.f32.mrb[101].mxu0 }
 0x1de   :  { %v1061_v35 = vpop.f32.mrb[102].mxu0 }
 0x1df   :  { %v1302_v45 = vpack.c.bf16 %v1061_v35, %v1058_v43  ;;  %v1063_v47 = vpop.f32.mrb[103].mxu0  ;;  %v5370_v43 = vld [vmem:[%s7164_s2 + $0x1b0] sm:$0xff]  }
 0x1e0   :  { %v6289_v47 = vld [vmem:[%s7164_s2 + $0x200] sm:$0xff]  }
 0x1e1   :  { %1273 = vmatmul.mubr.bf16.gmra.mrb[208].mxu0 %v5337_v32  ;;  %v5371_v32 = vld [vmem:[%s7164_s2 + $0x1f8] sm:$0xff]  }
 0x1e2   :  { %1280 = vmatprep.mubr.bf16.mxu0 %v5338_v37  ;;  %v5372_v37 = vld [vmem:[%s7164_s2 + $0x1b8] sm:$0xff]  }
 0x1e4   :  { %v1066_v48 = vpop.f32.mrb[104].mxu0 }
 0x1e5   :  { %v1068_v50 = vpop.f32.mrb[105].mxu0 }
 0x1e6   :  { %v1069_v54 = vpop.f32.mrb[106].mxu0 }
 0x1e7   :  { %v1311_v46 = vpack.c.bf16 %v1069_v54, %v1066_v48  ;;  %v1071_v49 = vpop.f32.mrb[107].mxu0 }
 0x1e9   :  { %1281 = vmatmul.mubr.bf16.gmra.mrb[212].mxu0 %v5340_v52 }
 0x1ec   :  { %v6216_v51 = vpop.f32.mrb[108].mxu0 }
 0x1ed   :  { %v1076_v55 = vpop.f32.mrb[109].mxu0 }
 0x1ee   :  { %v6218_v57 = vpop.f32.mrb[110].mxu0 }
 0x1ef   :  { %v1320_v59 = vpack.c.bf16 %v6218_v57, %v6216_v51  ;;  %v1079_v61 = vpop.f32.mrb[111].mxu0 }
 0x1f4   :  { %v6222_v62 = vpop.f32.mrb[112].mxu0 }
 0x1f5   :  { %v1084_v0 = vpop.f32.mrb[113].mxu0 }
 0x1f6   :  { %v6224_v2 = vpop.f32.mrb[114].mxu0 }
 0x1f7   :  { %v1329_v53 = vpack.c.bf16 %v6224_v2, %v6222_v62  ;;  %v1087_v56 = vpop.f32.mrb[115].mxu0 }
 0x1fc   :  { %v6228_v58 = vpop.f32.mrb[116].mxu0 }
 0x1fd   :  { %v1092_v3 = vpop.f32.mrb[117].mxu0 }
 0x1fe   :  { %v6230_v4 = vpop.f32.mrb[118].mxu0 }
 0x1ff   :  { %v1338_v5 = vpack.c.bf16 %v6230_v4, %v6228_v58  ;;  %v1095_v6 = vpop.f32.mrb[119].mxu0 }
 0x204   :  { %v1098_v60 = vpop.f32.mrb[120].mxu0 }
 0x205   :  { %v1100_v63 = vpop.f32.mrb[121].mxu0 }
 0x206   :  { %v1101_v1 = vpop.f32.mrb[122].mxu0 }
 0x207   :  { %v1294_v7 = vpack.c.bf16 %v1101_v1, %v1098_v60  ;;  %v1103_v8 = vpop.f32.mrb[123].mxu0 }
 0x209   :  { %2120 = vmatprep.mubr.bf16.mxu1 %v1294_v7 }
 0x20a   :  { %2121 = vmatmul.mubr.bf16.vlgmr.msra.gmra.mrb[48].mxu1 %v1293_v41 }
 0x20b   :  { %4760 = vmatpush3.bf16.msra.mxu1 %v5358_v9 }
 0x20c   :  { %v1106_v11 = vpop.f32.mrb[124].mxu0  ;;  %4761 = vmatprep.subr.bf16.mxu1 %v5359_v10 }
 0x20d   :  { %v1108_v14 = vpop.f32.mrb[125].mxu0 }
 0x20e   :  { %v1109_v15 = vpop.f32.mrb[126].mxu0 }
 0x20f   :  { %v1303_v16 = vpack.c.bf16 %v1109_v15, %v1106_v11  ;;  %v1111_v17 = vpop.f32.mrb[127].mxu0  ;;  %4762 = vmatpush3.bf16.msra.mxu1 %v5360_v12 }
 0x210   :  { %4763 = vmatprep.subr.bf16.mxu1 %v5361_v13 }
 0x211   :  { %2128 = vmatprep.mubr.bf16.mxu1 %v1303_v16 }
 0x212   :  { %2129 = vmatmul.mubr.bf16.gmra.mrb[52].mxu1 %v1302_v45 }
 0x213   :  { %4764 = vmatpush3.bf16.msra.mxu1 %v5362_v19 }
 0x214   :  { %v1114_v24 = vpop.f32.mrb[128].mxu0  ;;  %4765 = vmatprep.subr.bf16.mxu1 %v5363_v20 }
 0x215   :  { %v1116_v18 = vpop.f32.mrb[129].mxu0 }
 0x216   :  { %v1117_v21 = vpop.f32.mrb[130].mxu0 }
 0x217   :  { %v1312_v23 = vpack.c.bf16 %v1117_v21, %v1114_v24  ;;  %v1119_v27 = vpop.f32.mrb[131].mxu0  ;;  %4766 = vmatpush3.bf16.msra.mxu1 %v5364_v22  ;;  %v6316_v21 = vld [vmem:[%s7165_s3] ss:$0 sm:$0xff] }
 0x218   :  { %4767 = vmatprep.subr.bf16.mxu1 %v5365_v26 }
 0x219   :  { %2136 = vmatprep.mubr.bf16.mxu1 %v1312_v23 }
 0x21a   :  { %2137 = vmatmul.mubr.bf16.gmra.mrb[56].mxu1 %v1311_v46 }
 0x21b   :  { %4768 = vmatpush3.bf16.msra.mxu1 %v5366_v29 }
 0x21c   :  { %v1122_v34 = vpop.f32.mrb[132].mxu0  ;;  %4769 = vmatprep.subr.bf16.mxu1 %v5367_v31 }
 0x21d   :  { %v1124_v38 = vpop.f32.mrb[133].mxu0  ;;  %v4619_v25 = vpop.f32.mrb[0].mxu1 }
 0x21e   :  { %v1125_v28 = vpop.f32.mrb[134].mxu0  ;;  %v4620_v30 = vpop.f32.mrb[1].mxu1 }
 0x21f   :  { %v1321_v40 = vpack.c.bf16 %v1125_v28, %v1122_v34  ;;  %v6270_v39 = vadd.f32 %v4620_v30, %v4619_v25  ;;  %v1127_v41 = vpop.f32.mrb[135].mxu0  ;;  %v4622_v42 = vpop.f32.mrb[2].mxu1  ;;  %4770 = vmatpush3.bf16.msra.mxu1 %v5368_v33 }
 0x220   :  { %v4623_v44 = vpop.f32.mrb[3].mxu1  ;;  %4771 = vmatprep.subr.bf16.mxu1 %v5369_v36 }
 0x221   :  { %v6278_v35 = vadd.f32 %v4623_v44, %v4622_v42  ;;  %2144 = vmatprep.mubr.bf16.mxu1 %v1321_v40 }
 0x222   :  { %2145 = vmatmul.mubr.bf16.gmra.mrb[60].mxu1 %v1320_v59 }
 0x223   :  { %4772 = vmatpush3.bf16.msra.mxu1 %v5370_v43 }
 0x224   :  { %v1130_v45 = vpop.f32.mrb[136].mxu0  ;;  %4773 = vmatprep.subr.bf16.mxu1 %v5371_v32 }
 0x225   :  { %v1132_v48 = vpop.f32.mrb[137].mxu0  ;;  %v4625_v50 = vpop.f32.mrb[4].mxu1 }
 0x226   :  { %v1133_v52 = vpop.f32.mrb[138].mxu0  ;;  %v4626_v54 = vpop.f32.mrb[5].mxu1 }
 0x227   :  { %v1330_v46 = vpack.c.bf16 %v1133_v52, %v1130_v45  ;;  %v6291_v49 = vadd.f32 %v4626_v54, %v4625_v50  ;;  %v1135_v51 = vpop.f32.mrb[139].mxu0  ;;  %v4628_v55 = vpop.f32.mrb[6].mxu1  ;;  %4774 = vmatpush3.bf16.msra.mxu1 %v5372_v37 }
 0x228   :  { %v4629_v57 = vpop.f32.mrb[7].mxu1  ;;  %4966 = vmatprep.subr.bf16.mxu1 %v6289_v47 }
 0x229   :  { %v6294_v59 = vadd.f32 %v4629_v57, %v4628_v55  ;;  %2152 = vmatprep.mubr.bf16.mxu1 %v1330_v46 }
 0x22a   :  { %2153 = vmatmul.mubr.bf16.gmra.mrb[64].mxu1 %v1329_v53 }
 0x22c   :  { %v1138_v61 = vpop.f32.mrb[140].mxu0 }
 0x22d   :  { %v1140_v0 = vpop.f32.mrb[141].mxu0  ;;  %v4631_v56 = vpop.f32.mrb[8].mxu1 }
 0x22e   :  { %v1141_v3 = vpop.f32.mrb[142].mxu0  ;;  %v4632_v6 = vpop.f32.mrb[9].mxu1 }
 0x22f   :  { %v1339_v60 = vpack.c.bf16 %v1141_v3, %v1138_v61  ;;  %v6299_v63 = vadd.f32 %v4632_v6, %v4631_v56  ;;  %v1143_v1 = vpop.f32.mrb[143].mxu0  ;;  %v4634_v7 = vpop.f32.mrb[10].mxu1 }
 0x230   :  { %v4635_v8 = vpop.f32.mrb[11].mxu1 }
 0x231   :  { %v6301_v9 = vadd.f32 %v4635_v8, %v4634_v7  ;;  %2160 = vmatprep.mubr.bf16.mxu1 %v1339_v60 }
 0x232   :  { %2161 = vmatmul.mubr.bf16.gmra.mrb[68].mxu1 %v1338_v5 }
 0x234   :  { %v1146_v62 = vpop.f32.mrb[144].mxu0 }
 0x235   :  { %v1148_v2 = vpop.f32.mrb[145].mxu0  ;;  %v4637_v53 = vpop.f32.mrb[12].mxu1 }
 0x236   :  { %v1149_v10 = vpop.f32.mrb[146].mxu0  ;;  %v4638_v12 = vpop.f32.mrb[13].mxu1  ;;  %v5374_v2 = vld [vmem:[%s7164_s2 + $0x208] sm:$0xff]  }
 0x237   :  { %v1295_v11 = vpack.c.bf16 %v1149_v10, %v1146_v62  ;;  %v6306_v13 = vadd.f32 %v4638_v12, %v4637_v53  ;;  %v1151_v14 = vpop.f32.mrb[147].mxu0  ;;  %v4640_v15 = vpop.f32.mrb[14].mxu1  ;;  %v5375_v10 = vld [vmem:[%s7164_s2 + $0x210] sm:$0xff]  }
 0x238   :  { %v4641_v16 = vpop.f32.mrb[15].mxu1 }
 0x239   :  { %v6308_v17 = vadd.f32 %v4641_v16, %v4640_v15 }
 0x23c   :  { %v6310_v19 = vpop.f32.mrb[148].mxu0 }
 0x23d   :  { %v1156_v20 = vpop.f32.mrb[149].mxu0  ;;  %v4643_v22 = vpop.f32.mrb[16].mxu1 }
 0x23e   :  { %v1157_v24 = vpop.f32.mrb[150].mxu0  ;;  %v4644_v58 = vpop.f32.mrb[17].mxu1 }
 0x23f   :  { %v1304_v4 = vpack.c.bf16 %v1157_v24, %v6310_v19  ;;  %v4645_v5 = vadd.f32 %v4644_v58, %v4643_v22  ;;  %v1159_v26 = vpop.f32.mrb[151].mxu0  ;;  %v4646_v18 = vpop.f32.mrb[18].mxu1  ;;  %v5376_v19 = vld [vmem:[%s7164_s2 + $0x218] sm:$0xff]  }
 0x240   :  { %v4647_v23 = vpop.f32.mrb[19].mxu1  ;;  %v5379_v26 = vld [vmem:[%s7164_s2 + $0x230] sm:$0xff]  }
 0x241   :  { %v6319_v27 = vadd.f32 %v4645_v5, %v6316_v21  ;;  %v4648_v29 = vadd.f32 %v4647_v23, %v4646_v18  ;;  %v5378_v5 = vld [vmem:[%s7164_s2 + $0x228] sm:$0xff]  }
 0x243   :  { %v6322_v31 = vadd.f32 %v4648_v29, %v6316_v21 }
 0x244   :  { %v1162_v33 = vpop.f32.mrb[152].mxu0 }
 0x245   :  { %v1164_v34 = vpop.f32.mrb[153].mxu0  ;;  %v4649_v36 = vpop.f32.mrb[20].mxu1 }
 0x246   :  { %v1165_v38 = vpop.f32.mrb[154].mxu0  ;;  %v4650_v25 = vpop.f32.mrb[21].mxu1  ;;  %v1961_v34 = vadd.f32 %v6270_v39, %v6316_v21 }
 0x247   :  { %v1313_v28 = vpack.c.bf16 %v1165_v38, %v1162_v33  ;;  %v4651_v30 = vadd.f32 %v4650_v25, %v4649_v36  ;;  %v1167_v40 = vpop.f32.mrb[155].mxu0  ;;  %v4652_v41 = vpop.f32.mrb[22].mxu1 }
 0x248   :  { %v4653_v42 = vpop.f32.mrb[23].mxu1  ;;  %v5380_v40 = vld [vmem:[%s7164_s2 + $0x238] sm:$0xff]  }
 0x249   :  { %v6325_v43 = vadd.f32 %v4651_v30, %v6316_v21  ;;  %v4654_v44 = vadd.f32 %v4653_v42, %v4652_v41  ;;  %v1964_v41 = vadd.f32 %v6278_v35, %v6316_v21  ;;  %v1969_v35 = vadd.f32 %v6291_v49, %v6316_v21 }
 0x24b   :  { %v6328_v32 = vadd.f32 %v4654_v44, %v6316_v21 }
 0x24c   :  { %v6330_v37 = vpop.f32.mrb[156].mxu0 }
 0x24d   :  { %v1172_v45 = vpop.f32.mrb[157].mxu0 }
 0x24e   :  { %v6332_v48 = vpop.f32.mrb[158].mxu0 }
 0x24f   :  { %v1322_v50 = vpack.c.bf16 %v6332_v48, %v6330_v37  ;;  %v1175_v52 = vpop.f32.mrb[159].mxu0  ;;  %v1972_v37 = vadd.f32 %v6294_v59, %v6316_v21 }
 0x254   :  { %v6336_v54 = vpop.f32.mrb[160].mxu0 }
 0x255   :  { %v1180_v46 = vpop.f32.mrb[161].mxu0 }
 0x256   :  { %v6338_v51 = vpop.f32.mrb[162].mxu0 }
 0x257   :  { %v1331_v55 = vpack.c.bf16 %v6338_v51, %v6336_v54  ;;  %v1183_v57 = vpop.f32.mrb[163].mxu0 }
 0x25c   :  { %v6342_v61 = vpop.f32.mrb[164].mxu0 }
 0x25d   :  { %v1188_v0 = vpop.f32.mrb[165].mxu0 }
 0x25e   :  { %v6344_v56 = vpop.f32.mrb[166].mxu0 }
 0x25f   :  { %v1340_v3 = vpack.c.bf16 %v6344_v56, %v6342_v61  ;;  %v1191_v6 = vpop.f32.mrb[167].mxu0 }
 0x264   :  { %v1194_v60 = vpop.f32.mrb[168].mxu0 }
 0x265   :  { %v1196_v1 = vpop.f32.mrb[169].mxu0 }
 0x266   :  { %v1197_v7 = vpop.f32.mrb[170].mxu0 }
 0x267   :  { %v1296_v8 = vpack.c.bf16 %v1197_v7, %v1194_v60  ;;  %v1199_v62 = vpop.f32.mrb[171].mxu0 }
 0x269   :  { %2201 = vmatprep.mubr.bf16.mxu1 %v1296_v8 }
 0x26a   :  { %2202 = vmatmul.mubr.bf16.vlgmr.msra.gmra.mrb[72].mxu1 %v1295_v11  ;;  %v5377_v11 = vld [vmem:[%s7164_s2 + $0x220] sm:$0xff]  }
 0x26b   :  { %4967 = vmatpush3.bf16.msra.mxu1 %v6289_v47 }
 0x26c   :  { %v1202_v53 = vpop.f32.mrb[172].mxu0  ;;  %4968 = vmatprep.subr.bf16.mxu1 %v5374_v2 }
 0x26d   :  { %v1204_v12 = vpop.f32.mrb[173].mxu0 }
 0x26e   :  { %v1205_v14 = vpop.f32.mrb[174].mxu0 }
 0x26f   :  { %v1305_v15 = vpack.c.bf16 %v1205_v14, %v1202_v53  ;;  %v1207_v16 = vpop.f32.mrb[175].mxu0  ;;  %4969 = vmatpush3.bf16.msra.mxu1 %v5374_v2  ;;  %v1977_v14 = vadd.f32 %v6299_v63, %v6316_v21 }
 0x270   :  { %4970 = vmatprep.subr.bf16.mxu1 %v5375_v10 }
 0x271   :  { %2209 = vmatprep.mubr.bf16.mxu1 %v1305_v15 }
 0x272   :  { %2210 = vmatmul.mubr.bf16.gmra.mrb[76].mxu1 %v1304_v4 }
 0x273   :  { %4971 = vmatpush3.bf16.msra.mxu1 %v5375_v10 }
 0x274   :  { %v1210_v47 = vpop.f32.mrb[176].mxu0  ;;  %4972 = vmatprep.subr.bf16.mxu1 %v5376_v19 }
 0x275   :  { %v1212_v20 = vpop.f32.mrb[177].mxu0 }
 0x276   :  { %v1213_v22 = vpop.f32.mrb[178].mxu0 }
 0x277   :  { %v1314_v24 = vpack.c.bf16 %v1213_v22, %v1210_v47  ;;  %v1215_v58 = vpop.f32.mrb[179].mxu0  ;;  %4973 = vmatpush3.bf16.msra.mxu1 %v5376_v19 }
 0x278   :  { %4974 = vmatprep.subr.bf16.mxu1 %v5377_v11 }
 0x279   :  { %2217 = vmatprep.mubr.bf16.mxu1 %v1314_v24 }
 0x27a   :  { %2218 = vmatmul.mubr.bf16.gmra.mrb[80].mxu1 %v1313_v28 }
 0x27b   :  { %4975 = vmatpush3.bf16.msra.mxu1 %v5377_v11  ;;  %v1980_v11 = vadd.f32 %v6301_v9, %v6316_v21 }
 0x27c   :  { %v1218_v4 = vpop.f32.mrb[180].mxu0  ;;  %4976 = vmatprep.subr.bf16.mxu1 %v5378_v5 }
 0x27d   :  { %v1220_v18 = vpop.f32.mrb[181].mxu0  ;;  %v4671_v23 = vpop.f32.mrb[24].mxu1 }
 0x27e   :  { %v1221_v29 = vpop.f32.mrb[182].mxu0  ;;  %v4672_v33 = vpop.f32.mrb[25].mxu1 }
 0x27f   :  { %v1323_v36 = vpack.c.bf16 %v1221_v29, %v1218_v4  ;;  %v4673_v38 = vadd.f32 %v4672_v33, %v4671_v23  ;;  %v1223_v25 = vpop.f32.mrb[183].mxu0  ;;  %v4674_v30 = vpop.f32.mrb[26].mxu1  ;;  %4977 = vmatpush3.bf16.msra.mxu1 %v5378_v5  ;;  %v1985_v5 = vadd.f32 %v6306_v13, %v6316_v21  ;;  %v1988_v29 = vadd.f32 %v6308_v17, %v6316_v21 }
 0x280   :  { %v4675_v28 = vpop.f32.mrb[27].mxu1  ;;  %4978 = vmatprep.subr.bf16.mxu1 %v5379_v26 }
 0x281   :  { %v6374_v42 = vadd.f32 %v4673_v38, %v1961_v34  ;;  %v4676_v44 = vadd.f32 %v4675_v28, %v4674_v30  ;;  %2225 = vmatprep.mubr.bf16.mxu1 %v1323_v36 }
 0x282   :  { %2226 = vmatmul.mubr.bf16.gmra.mrb[84].mxu1 %v1322_v50 }
 0x283   :  { %v6379_v39 = vadd.f32 %v4676_v44, %v1964_v41  ;;  %4979 = vmatpush3.bf16.msra.mxu1 %v5379_v26 }
 0x284   :  { %v1226_v45 = vpop.f32.mrb[184].mxu0  ;;  %4980 = vmatprep.subr.bf16.mxu1 %v5380_v40 }
 0x285   :  { %v1228_v52 = vpop.f32.mrb[185].mxu0  ;;  %v4677_v46 = vpop.f32.mrb[28].mxu1 }
 0x286   :  { %v1229_v57 = vpop.f32.mrb[186].mxu0  ;;  %v4678_v0 = vpop.f32.mrb[29].mxu1 }
 0x287   :  { %v1332_v6 = vpack.c.bf16 %v1229_v57, %v1226_v45  ;;  %v4679_v60 = vadd.f32 %v4678_v0, %v4677_v46  ;;  %v1231_v1 = vpop.f32.mrb[187].mxu0  ;;  %v4680_v7 = vpop.f32.mrb[30].mxu1  ;;  %4981 = vmatpush3.bf16.msra.mxu1 %v5380_v40 }
 0x288   :  { %v4681_v8 = vpop.f32.mrb[31].mxu1 }
 0x289   :  { %v6385_v48 = vadd.f32 %v4679_v60, %v1969_v35  ;;  %v4682_v50 = vadd.f32 %v4681_v8, %v4680_v7  ;;  %2233 = vmatprep.mubr.bf16.mxu1 %v1332_v6 }
 0x28a   :  { %2234 = vmatmul.mubr.bf16.gmra.mrb[88].mxu1 %v1331_v55 }
 0x28b   :  { %v6390_v62 = vadd.f32 %v4682_v50, %v1972_v37 }
 0x28c   :  { %v1234_v49 = vpop.f32.mrb[188].mxu0 }
 0x28d   :  { %v1236_v2 = vpop.f32.mrb[189].mxu0  ;;  %v4683_v53 = vpop.f32.mrb[32].mxu1 }
 0x28e   :  { %v1237_v10 = vpop.f32.mrb[190].mxu0  ;;  %v4684_v12 = vpop.f32.mrb[33].mxu1 }
 0x28f   :  { %v1341_v15 = vpack.c.bf16 %v1237_v10, %v1234_v49  ;;  %v4685_v59 = vadd.f32 %v4684_v12, %v4683_v53  ;;  %v1239_v16 = vpop.f32.mrb[191].mxu0  ;;  %v4686_v19 = vpop.f32.mrb[34].mxu1 }
 0x290   :  { %v4687_v47 = vpop.f32.mrb[35].mxu1 }
 0x291   :  { %v6396_v54 = vadd.f32 %v4685_v59, %v1977_v14  ;;  %v4688_v51 = vadd.f32 %v4687_v47, %v4686_v19  ;;  %2241 = vmatprep.mubr.bf16.mxu1 %v1341_v15 }
 0x292   :  { %2242 = vmatmul.mubr.bf16.gmra.mrb[92].mxu1 %v1340_v3 }
 0x293   :  { %v6401_v55 = vadd.f32 %v4688_v51, %v1980_v11 }
 0x294   :  { %v1242_v20 = vpop.f32.mrb[192].mxu0 }
 0x295   :  { %v1244_v63 = vpop.f32.mrb[193].mxu0  ;;  %v4689_v22 = vpop.f32.mrb[36].mxu1 }
 0x296   :  { %v1245_v24 = vpop.f32.mrb[194].mxu0  ;;  %v4690_v58 = vpop.f32.mrb[37].mxu1 }
 0x297   :  { %v1297_v4 = vpack.c.bf16 %v1245_v24, %v1242_v20  ;;  %v4691_v9 = vadd.f32 %v4690_v58, %v4689_v22  ;;  %v1247_v26 = vpop.f32.mrb[195].mxu0  ;;  %v4692_v18 = vpop.f32.mrb[38].mxu1 }
 0x298   :  { %v4693_v23 = vpop.f32.mrb[39].mxu1 }
 0x299   :  { %v6407_v61 = vadd.f32 %v4691_v9, %v1985_v5  ;;  %v4694_v56 = vadd.f32 %v4693_v23, %v4692_v18  ;;  %4982 = vmatprep.mubr.bf16.mxu1 %v1297_v4 }
 0x29b   :  { %v6409_v3 = vadd.f32 %v4694_v56, %v1988_v29 }
 0x29c   :  { %v1250_v33 = vpop.f32.mrb[196].mxu0 }
 0x29d   :  { %v1252_v34 = vpop.f32.mrb[197].mxu0  ;;  %v4695_v36 = vpop.f32.mrb[40].mxu1 }
 0x29e   :  { %v1253_v38 = vpop.f32.mrb[198].mxu0  ;;  %v4696_v25 = vpop.f32.mrb[41].mxu1 }
 0x29f   :  { %v1306_v13 = vpack.c.bf16 %v1253_v38, %v1250_v33  ;;  %v4697_v30 = vadd.f32 %v4696_v25, %v4695_v36  ;;  %v1255_v28 = vpop.f32.mrb[199].mxu0  ;;  %v4698_v40 = vpop.f32.mrb[42].mxu1 }
 0x2a0   :  { %v4699_v41 = vpop.f32.mrb[43].mxu1 }
 0x2a1   :  { %v6412_v44 = vadd.f32 %v4697_v30, %v6319_v27  ;;  %v4700_v17 = vadd.f32 %v4699_v41, %v4698_v40  ;;  %4983 = vmatmul.mubr.bf16.vlgmr.msra.gmra.mrb[96].mxu1 %v1306_v13 }
 0x2a3   :  { %v6415_v21 = vadd.f32 %v4700_v17, %v6322_v31 }
 0x2a4   :  { %v1258_v45 = vpop.f32.mrb[200].mxu0 }
 0x2a5   :  { %v1260_v52 = vpop.f32.mrb[201].mxu0  ;;  %v4701_v46 = vpop.f32.mrb[44].mxu1 }
 0x2a6   :  { %v1261_v57 = vpop.f32.mrb[202].mxu0  ;;  %v4702_v0 = vpop.f32.mrb[45].mxu1 }
 0x2a7   :  { %v1315_v35 = vpack.c.bf16 %v1261_v57, %v1258_v45  ;;  %v4703_v6 = vadd.f32 %v4702_v0, %v4701_v46  ;;  %v1263_v60 = vpop.f32.mrb[203].mxu0  ;;  %v4704_v1 = vpop.f32.mrb[46].mxu1 }
 0x2a8   :  { %v4705_v7 = vpop.f32.mrb[47].mxu1 }
 0x2a9   :  { %v6418_v8 = vadd.f32 %v4703_v6, %v6325_v43  ;;  %v4706_v27 = vadd.f32 %v4705_v7, %v4704_v1  ;;  %4986 = vmatprep.mubr.bf16.mxu1 %v1315_v35 }
 0x2ab   :  { %v6421_v37 = vadd.f32 %v4706_v27, %v6328_v32 }
 0x2ac   :  { %v1266_v31 = vpop.f32.mrb[204].mxu0 }
 0x2ad   :  { %v1268_v50 = vpop.f32.mrb[205].mxu0 }
 0x2ae   :  { %v1269_v49 = vpop.f32.mrb[206].mxu0 }
 0x2af   :  { %v1324_v2 = vpack.c.bf16 %v1269_v49, %v1266_v31  ;;  %v1271_v53 = vpop.f32.mrb[207].mxu0 }
 0x2b1   :  { %4987 = vmatmul.mubr.bf16.gmra.mrb[100].mxu1 %v1324_v2 }
 0x2b4   :  { %v1274_v10 = vpop.f32.mrb[208].mxu0 }
 0x2b5   :  { %v1276_v12 = vpop.f32.mrb[209].mxu0 }
 0x2b6   :  { %v1277_v14 = vpop.f32.mrb[210].mxu0 }
 0x2b7   :  { %v1333_v15 = vpack.c.bf16 %v1277_v14, %v1274_v10  ;;  %v1279_v59 = vpop.f32.mrb[211].mxu0 }
 0x2b9   :  { %4990 = vmatprep.mubr.bf16.mxu1 %v1333_v15 }
 0x2bc   :  { %v1282_v16 = vpop.f32.mrb[212].mxu0 }
 0x2bd   :  { %v1284_v43 = vpop.f32.mrb[213].mxu0 }
 0x2be   :  { %v1285_v19 = vpop.f32.mrb[214].mxu0 }
 0x2bf   :  { %v1342_v47 = vpack.c.bf16 %v1285_v19, %v1282_v16  ;;  %v1287_v11 = vpop.f32.mrb[215].mxu0 }
 0x2c1   :  { %4991 = vmatmul.mubr.bf16.gmra.mrb[104].mxu1 %v1342_v47 }
 0x2dd   :  { %v4723_v32 = vpop.f32.mrb[48].mxu1 }
 0x2de   :  { %v4724_v51 = vpop.f32.mrb[49].mxu1 }
 0x2df   :  { %v4725_v20 = vadd.f32 %v4724_v51, %v4723_v32  ;;  %v4726_v63 = vpop.f32.mrb[50].mxu1 }
 0x2e0   :  { %v4727_v22 = vpop.f32.mrb[51].mxu1 }
 0x2e1   :  { %v2123_v24 = vadd.f32 %v4725_v20, %v6374_v42  ;;  %v4728_v58 = vadd.f32 %v4727_v22, %v4726_v63 }
 0x2e3   :  { %v2126_v5 = vadd.f32 %v4728_v58, %v6379_v39 }
 0x2e5   :  { %v4729_v4 = vpop.f32.mrb[52].mxu1 }
 0x2e6   :  { %v4730_v9 = vpop.f32.mrb[53].mxu1 }
 0x2e7   :  { %v4731_v26 = vadd.f32 %v4730_v9, %v4729_v4  ;;  %v4732_v18 = vpop.f32.mrb[54].mxu1 }
 0x2e8   :  { %v4733_v23 = vpop.f32.mrb[55].mxu1 }
 0x2e9   :  { %v2131_v29 = vadd.f32 %v4731_v26, %v6385_v48  ;;  %v4734_v56 = vadd.f32 %v4733_v23, %v4732_v18 }
 0x2eb   :  { %v2134_v33 = vadd.f32 %v4734_v56, %v6390_v62 }
 0x2ed   :  { %v4735_v34 = vpop.f32.mrb[56].mxu1 }
 0x2ee   :  { %v4736_v36 = vpop.f32.mrb[57].mxu1 }
 0x2ef   :  { %v4737_v38 = vadd.f32 %v4736_v36, %v4735_v34  ;;  %v4738_v25 = vpop.f32.mrb[58].mxu1 }
 0x2f0   :  { %v4739_v13 = vpop.f32.mrb[59].mxu1 }
 0x2f1   :  { %v2139_v42 = vadd.f32 %v4737_v38, %v6396_v54  ;;  %v4740_v30 = vadd.f32 %v4739_v13, %v4738_v25 }
 0x2f3   :  { %v2142_v39 = vadd.f32 %v4740_v30, %v6401_v55 }
 0x2f5   :  { %v4741_v28 = vpop.f32.mrb[60].mxu1 }
 0x2f6   :  { %v4742_v40 = vpop.f32.mrb[61].mxu1 }
 0x2f7   :  { %v4743_v41 = vadd.f32 %v4742_v40, %v4741_v28  ;;  %v4744_v17 = vpop.f32.mrb[62].mxu1 }
 0x2f8   :  { %v4745_v45 = vpop.f32.mrb[63].mxu1 }
 0x2f9   :  { %v2147_v48 = vadd.f32 %v4743_v41, %v6407_v61  ;;  %v4746_v52 = vadd.f32 %v4745_v45, %v4744_v17 }
 0x2fb   :  { %v2150_v62 = vadd.f32 %v4746_v52, %v6409_v3 }
 0x2fd   :  { %v4747_v46 = vpop.f32.mrb[64].mxu1 }
 0x2fe   :  { %v4748_v57 = vpop.f32.mrb[65].mxu1 }
 0x2ff   :  { %v4749_v0 = vadd.f32 %v4748_v57, %v4747_v46  ;;  %v4750_v35 = vpop.f32.mrb[66].mxu1 }
 0x300   :  { %v4751_v6 = vpop.f32.mrb[67].mxu1 }
 0x301   :  { %v2155_v54 = vadd.f32 %v4749_v0, %v6412_v44  ;;  %v4752_v60 = vadd.f32 %v4751_v6, %v4750_v35 }
 0x303   :  { %v2158_v55 = vadd.f32 %v4752_v60, %v6415_v21 }
 0x305   :  { %v4753_v1 = vpop.f32.mrb[68].mxu1 }
 0x306   :  { %v4754_v7 = vpop.f32.mrb[69].mxu1 }
 0x307   :  { %v4755_v27 = vadd.f32 %v4754_v7, %v4753_v1  ;;  %v4756_v31 = vpop.f32.mrb[70].mxu1 }
 0x308   :  { %v4757_v50 = vpop.f32.mrb[71].mxu1 }
 0x309   :  { %v2163_v61 = vadd.f32 %v4755_v27, %v6418_v8  ;;  %v4758_v49 = vadd.f32 %v4757_v50, %v4756_v31  ;;  %v5524_v8 = vmov 0.0  }
 0x30a   :  { %4994 = vmatprep.subr.bf16.mxu1 %v5524_v8  ;;  %5088 = vmatprep.subr.bf16.mxu0 %v5524_v8 }
 0x30b   :  { %v2166_v3 = vadd.f32 %v4758_v49, %v6421_v37  ;;  %5006 = vmatprep.mubr.msk.bf16.mxu1 %vm5525_vm0, %v5524_v8  ;;  %5104 = vmatprep.mubr.msk.bf16.mxu0 %vm5525_vm0, %v5524_v8 }
 0x33d   :  { %v4775_v2 = vpop.f32.mrb[72].mxu1 }
 0x33e   :  { %v4776_v53 = vpop.f32.mrb[73].mxu1 }
 0x33f   :  { %v4777_v10 = vadd.f32 %v4776_v53, %v4775_v2  ;;  %v4778_v12 = vpop.f32.mrb[74].mxu1 }
 0x340   :  { %v4779_v14 = vpop.f32.mrb[75].mxu1 }
 0x341   :  { %v4780_v15 = vadd.f32 %v4779_v14, %v4778_v12  ;;  %v2204_v44 = vadd.f32 %v4777_v10, %v2123_v24 }
 0x343   :  { %v2207_v59 = vadd.f32 %v4780_v15, %v2126_v5 }
 0x345   :  { %v4781_v16 = vpop.f32.mrb[76].mxu1 }
 0x346   :  { %v4782_v21 = vpop.f32.mrb[77].mxu1 }
 0x347   :  { %v4783_v43 = vadd.f32 %v4782_v21, %v4781_v16  ;;  %v4784_v19 = vpop.f32.mrb[78].mxu1 }
 0x348   :  { %v4785_v47 = vpop.f32.mrb[79].mxu1 }
 0x349   :  { %v4786_v11 = vadd.f32 %v4785_v47, %v4784_v19  ;;  %v2212_v32 = vadd.f32 %v4783_v43, %v2131_v29 }
 0x34b   :  { %v2215_v51 = vadd.f32 %v4786_v11, %v2134_v33 }
 0x34d   :  { %v4787_v37 = vpop.f32.mrb[80].mxu1 }
 0x34e   :  { %v4788_v20 = vpop.f32.mrb[81].mxu1 }
 0x34f   :  { %v4789_v63 = vadd.f32 %v4788_v20, %v4787_v37  ;;  %v4790_v22 = vpop.f32.mrb[82].mxu1 }
 0x350   :  { %v4791_v58 = vpop.f32.mrb[83].mxu1 }
 0x351   :  { %v4792_v24 = vadd.f32 %v4791_v58, %v4790_v22  ;;  %v6437_v5 = vadd.f32 %v4789_v63, %v2139_v42 }
 0x353   :  { %v6439_v4 = vadd.f32 %v4792_v24, %v2142_v39 }
 0x355   :  { %v4793_v9 = vpop.f32.mrb[84].mxu1 }
 0x356   :  { %v4794_v26 = vpop.f32.mrb[85].mxu1 }
 0x357   :  { %v4795_v18 = vadd.f32 %v4794_v26, %v4793_v9  ;;  %v4796_v23 = vpop.f32.mrb[86].mxu1 }
 0x358   :  { %v4797_v29 = vpop.f32.mrb[87].mxu1 }
 0x359   :  { %v4798_v56 = vadd.f32 %v4797_v29, %v4796_v23  ;;  %v6441_v33 = vadd.f32 %v4795_v18, %v2147_v48 }
 0x35b   :  { %v6443_v34 = vadd.f32 %v4798_v56, %v2150_v62 }
 0x35d   :  { %v4799_v36 = vpop.f32.mrb[88].mxu1 }
 0x35e   :  { %v4800_v38 = vpop.f32.mrb[89].mxu1 }
 0x35f   :  { %v4801_v25 = vadd.f32 %v4800_v38, %v4799_v36  ;;  %v4802_v13 = vpop.f32.mrb[90].mxu1 }
 0x360   :  { %v4803_v30 = vpop.f32.mrb[91].mxu1 }
 0x361   :  { %v4804_v28 = vadd.f32 %v4803_v30, %v4802_v13  ;;  %v6445_v42 = vadd.f32 %v4801_v25, %v2155_v54 }
 0x363   :  { %v6447_v39 = vadd.f32 %v4804_v28, %v2158_v55 }
 0x365   :  { %v4805_v40 = vpop.f32.mrb[92].mxu1 }
 0x366   :  { %v4806_v41 = vpop.f32.mrb[93].mxu1 }
 0x367   :  { %v4807_v17 = vadd.f32 %v4806_v41, %v4805_v40  ;;  %v4808_v45 = vpop.f32.mrb[94].mxu1 }
 0x368   :  { %v4809_v52 = vpop.f32.mrb[95].mxu1 }
 0x369   :  { %v4810_v46 = vadd.f32 %v4809_v52, %v4808_v45  ;;  %v6449_v48 = vadd.f32 %v4807_v17, %v2163_v61 }
 0x36b   :  { %v6451_v62 = vadd.f32 %v4810_v46, %v2166_v3 }
 0x374   :  { %v4984_v57 = vpop.f32.mrb[96].mxu1 }
 0x375   :  { %v6457_v0 = vadd.f32 %v4984_v57, %v2212_v32  ;;  %v2284_v35 = vpop.f32.mrb[97].mxu1 }
 0x376   :  { %v6459_v6 = vadd.f32 %v2284_v35, %v2204_v44  ;;  %v4985_v54 = vpop.f32.mrb[98].mxu1 }
 0x377   :  { %v2345_v60 = vmul.f32 0.70710677, %v6457_v0  ;;  %v6462_v55 = vadd.f32 %v4985_v54, %v2215_v51  ;;  %v2287_v1 = vpop.f32.mrb[99].mxu1 }
 0x378   :  { %v2343_v7 = vmul.f32 0.70710677, %v6459_v6  ;;  %v6465_v27 = vadd.f32 %v2287_v1, %v2207_v59 }
 0x379   :  { %v6467_v31 = vclamps-f32 %v2345_v60, 4.0  ;;  %v2346_v50 = vmul.f32 0.70710677, %v6462_v55 }
 0x37a   :  { %v6470_v61 = vclamps-f32 %v2343_v7, 4.0  ;;  %v2344_v49 = vmul.f32 0.70710677, %v6465_v27 }
 0x37b   :  { %v6475_v3 = vmul.f32 %v6467_v31, %v6467_v31  ;;  %v6477_v2 = vclamps-f32 %v2346_v50, 4.0 }
 0x37c   :  { %v6481_v53 = vmul.f32 %v6470_v61, %v6470_v61  ;;  %v6483_v10 = vclamps-f32 %v2344_v49, 4.0 }
 0x37d   :  { %v2393_v12 = vmul.f32 -2.7261424e-10, %v6475_v3  ;;  %v2549_v14 = vmul.f32 -1.45660715e-05, %v6475_v3  ;;  %v6489_v15 = vmul.f32 %v6477_v2, %v6477_v2 }
 0x37e   :  { %v2391_v44 = vmul.f32 -2.7261424e-10, %v6481_v53  ;;  %v2547_v59 = vmul.f32 -1.45660715e-05, %v6481_v53  ;;  %v6495_v16 = vmul.f32 %v6483_v10, %v6483_v10 }
 0x37f   :  { %v2405_v21 = vadd.f32 2.7706815e-08, %v2393_v12  ;;  %v2561_v43 = vadd.f32 -0.00021337405, %v2549_v14  ;;  %v2394_v19 = vmul.f32 -2.7261424e-10, %v6489_v15 }
 0x380   :  { %v2403_v47 = vadd.f32 2.7706815e-08, %v2391_v44  ;;  %v2559_v11 = vadd.f32 -0.00021337405, %v2547_v59  ;;  %v2550_v32 = vmul.f32 -1.45660715e-05, %v6489_v15 }
 0x381   :  { %v2417_v51 = vmul.f32 %v2405_v21, %v6475_v3  ;;  %v2573_v37 = vmul.f32 %v2561_v43, %v6475_v3  ;;  %v2406_v20 = vadd.f32 2.7706815e-08, %v2394_v19  ;;  %v2392_v63 = vmul.f32 -2.7261424e-10, %v6495_v16 }
 0x382   :  { %v2415_v22 = vmul.f32 %v2403_v47, %v6481_v53  ;;  %v2571_v58 = vmul.f32 %v2559_v11, %v6481_v53  ;;  %v2562_v24 = vadd.f32 -0.00021337405, %v2550_v32  ;;  %v2548_v9 = vmul.f32 -1.45660715e-05, %v6495_v16 }
 0x383   :  { %v2429_v26 = vadd.f32 -2.101024e-06, %v2417_v51  ;;  %v2585_v18 = vadd.f32 -0.001682827, %v2573_v37  ;;  %v2418_v23 = vmul.f32 %v2406_v20, %v6489_v15  ;;  %v2404_v29 = vadd.f32 2.7706815e-08, %v2392_v63 }
 0x384   :  { %v2427_v56 = vadd.f32 -2.101024e-06, %v2415_v22  ;;  %v2583_v36 = vadd.f32 -0.001682827, %v2571_v58  ;;  %v2574_v38 = vmul.f32 %v2562_v24, %v6489_v15  ;;  %v2560_v25 = vadd.f32 -0.00021337405, %v2548_v9 }
 0x385   :  { %v2441_v13 = vmul.f32 %v2429_v26, %v6475_v3  ;;  %v2597_v30 = vmul.f32 %v2585_v18, %v6475_v3  ;;  %v2430_v28 = vadd.f32 -2.101024e-06, %v2418_v23  ;;  %v2416_v40 = vmul.f32 %v2404_v29, %v6495_v16  ;;  %v4988_v41 = vpop.f32.mrb[100].mxu1 }
 0x386   :  { %v2439_v17 = vmul.f32 %v2427_v56, %v6481_v53  ;;  %v2595_v45 = vmul.f32 %v2583_v36, %v6481_v53  ;;  %v2586_v52 = vadd.f32 -0.001682827, %v2574_v38  ;;  %v2572_v46 = vmul.f32 %v2560_v25, %v6495_v16  ;;  %v2300_v57 = vpop.f32.mrb[101].mxu1 }
 0x387   :  { %v2453_v35 = vadd.f32 -5.6925062e-05, %v2441_v13  ;;  %v2609_v54 = vadd.f32 -0.0073733293, %v2597_v30  ;;  %v2442_v60 = vmul.f32 %v2430_v28, %v6489_v15  ;;  %v2428_v1 = vadd.f32 -2.101024e-06, %v2416_v40 }
 0x388   :  { %v2451_v7 = vadd.f32 -5.6925062e-05, %v2439_v17  ;;  %v2607_v50 = vadd.f32 -0.0073733293, %v2595_v45  ;;  %v2598_v49 = vmul.f32 %v2586_v52, %v6489_v15  ;;  %v2584_v12 = vadd.f32 -0.001682827, %v2572_v46 }
 0x389   :  { %v2465_v14 = vmul.f32 %v2453_v35, %v6475_v3  ;;  %v2621_v44 = vmul.f32 %v2609_v54, %v6475_v3  ;;  %v2454_v59 = vadd.f32 -5.6925062e-05, %v2442_v60  ;;  %v2440_v21 = vmul.f32 %v2428_v1, %v6495_v16  ;;  %v4989_v43 = vpop.f32.mrb[102].mxu1 }
 0x38a   :  { %v2463_v19 = vmul.f32 %v2451_v7, %v6481_v53  ;;  %v2619_v47 = vmul.f32 %v2607_v50, %v6481_v53  ;;  %v2610_v11 = vadd.f32 -0.0073733293, %v2598_v49  ;;  %v2596_v32 = vmul.f32 %v2584_v12, %v6495_v16  ;;  %v2303_v51 = vpop.f32.mrb[103].mxu1 }
 0x38b   :  { %v2477_v37 = vadd.f32 -0.00073499064, %v2465_v14  ;;  %v2633_v20 = vadd.f32 -0.014264739, %v2621_v44  ;;  %v2466_v63 = vmul.f32 %v2454_v59, %v6489_v15  ;;  %v2452_v22 = vadd.f32 -5.6925062e-05, %v2440_v21 }
 0x38c   :  { %v2475_v58 = vadd.f32 -0.00073499064, %v2463_v19  ;;  %v2631_v24 = vadd.f32 -0.014264739, %v2619_v47  ;;  %v2622_v9 = vmul.f32 %v2610_v11, %v6489_v15  ;;  %v2608_v26 = vadd.f32 -0.0073733293, %v2596_v32 }
 0x38d   :  { %v2489_v18 = vmul.f32 %v2477_v37, %v6475_v3  ;;  %5487 = vrcp.f32 %v2633_v20  ;;  %v2478_v23 = vadd.f32 -0.00073499064, %v2466_v63  ;;  %v2464_v29 = vmul.f32 %v2452_v22, %v6495_v16 }
 0x38e   :  { %v2487_v56 = vmul.f32 %v2475_v58, %v6481_v53  ;;  %5489 = vrcp.f32 %v2631_v24  ;;  %v2634_v36 = vadd.f32 -0.014264739, %v2622_v9  ;;  %v2620_v38 = vmul.f32 %v2608_v26, %v6495_v16 }
 0x38f   :  { %v2501_v25 = vadd.f32 -0.0029546, %v2489_v18  ;;  %v2490_v13 = vmul.f32 %v2478_v23, %v6489_v15  ;;  %v2476_v30 = vadd.f32 -0.00073499064, %v2464_v29  ;;  %v6529_v28 = vadd.f32 %v4988_v41, %v6441_v33 }
 0x390   :  { %v2499_v40 = vadd.f32 -0.0029546, %v2487_v56  ;;  %5491 = vrcp.f32 %v2634_v36  ;;  %v2632_v17 = vadd.f32 -0.014264739, %v2620_v38  ;;  %v6532_v45 = vadd.f32 %v2300_v57, %v6437_v5 }
 0x391   :  { %v2333_v52 = vmul.f32 0.5, %v6457_v0  ;;  %v2513_v46 = vmul.f32 %v2501_v25, %v6475_v3  ;;  %v2502_v35 = vadd.f32 -0.0029546, %v2490_v13  ;;  %v2488_v54 = vmul.f32 %v2476_v30, %v6495_v16 }
 0x392   :  { %v2331_v60 = vmul.f32 0.5, %v6459_v6  ;;  %v2511_v1 = vmul.f32 %v2499_v40, %v6481_v53  ;;  %5493 = vrcp.f32 %v2632_v17  ;;  %v2349_v33 = vmul.f32 0.70710677, %v6529_v28 }
 0x393   :  { %v2525_v41 = vadd.f32 -0.016096033, %v2513_v46  ;;  %v2514_v7 = vmul.f32 %v2502_v35, %v6489_v15  ;;  %v2500_v50 = vadd.f32 -0.0029546, %v2488_v54  ;;  %v2347_v5 = vmul.f32 0.70710677, %v6532_v45 }
 0x394   :  { %v2523_v57 = vadd.f32 -0.016096033, %v2511_v1  ;;  %v6542_v0 = vclamps-f32 %v2349_v33, 4.0  ;;  %v6545_v3 = vadd.f32 %v4989_v43, %v6443_v34  ;;  %v6548_v49 = vadd.f32 %v2303_v51, %v6439_v4  ;;  %v6550_v6 = vpop.f32.mrb[104].mxu1 }
 0x395   :  { %v2537_v53 = vmul.f32 %v6467_v31, %v2525_v41  ;;  %v2526_v12 = vadd.f32 -0.016096033, %v2514_v7  ;;  %v2512_v14 = vmul.f32 %v2500_v50, %v6495_v16  ;;  %v6554_v15 = vclamps-f32 %v2347_v5, 4.0  ;;  %v6556_v44 = vpop.f32.mrb[105].mxu1 }
 0x396   :  { %v2535_v59 = vmul.f32 %v6470_v61, %v2523_v57  ;;  %v2334_v21 = vmul.f32 0.5, %v6462_v55  ;;  %v6562_v34 = vmul.f32 %v6542_v0, %v6542_v0  ;;  %v2350_v4 = vmul.f32 0.70710677, %v6545_v3  ;;  %v6565_v43 = vpop.f32.mrb[106].mxu1 }
 0x397   :  { %v5488_v31 = vpop.eup %5487  ;;  %v2538_v19 = vmul.f32 %v6477_v2, %v2526_v12  ;;  %v2332_v16 = vmul.f32 0.5, %v6465_v27  ;;  %v2524_v47 = vadd.f32 -0.016096033, %v2512_v14  ;;  %v6571_v11 = vmul.f32 %v6554_v15, %v6554_v15  ;;  %v6573_v61 = vpop.f32.mrb[107].mxu1 }
 0x398   :  { %v5490_v55 = vpop.eup %5489  ;;  %v2657_v32 = vmul.f32 %v5488_v31, %v2537_v53  ;;  %v2397_v51 = vmul.f32 -2.7261424e-10, %v6562_v34  ;;  %v2553_v37 = vmul.f32 -1.45660715e-05, %v6562_v34  ;;  %v6577_v20 = vclamps-f32 %v2350_v4, 4.0 }
 0x399   :  { %v2655_v63 = vmul.f32 %v5490_v55, %v2535_v59  ;;  %v2536_v2 = vmul.f32 %v6483_v10, %v2524_v47  ;;  %v2395_v27 = vmul.f32 -2.7261424e-10, %v6571_v11  ;;  %v2551_v22 = vmul.f32 -1.45660715e-05, %v6571_v11 }
 0x39a   :  { %v5492_v58 = vpop.eup %5491  ;;  %v2669_v24 = vadd.f32 1.0, %v2657_v32  ;;  %v2409_v9 = vadd.f32 2.7706815e-08, %v2397_v51  ;;  %v2565_v26 = vadd.f32 -0.00021337405, %v2553_v37  ;;  %v6584_v18 = vmul.f32 %v6577_v20, %v6577_v20 }
 0x39b   :  { %v2667_v23 = vadd.f32 1.0, %v2655_v63  ;;  %v2658_v29 = vmul.f32 %v5492_v58, %v2538_v19  ;;  %v2407_v56 = vadd.f32 2.7706815e-08, %v2395_v27  ;;  %v2563_v36 = vadd.f32 -0.00021337405, %v2551_v22 }
 0x39c   :  { %v5494_v38 = vpop.eup %5493  ;;  %v2681_v25 = vmul.f32 %v2669_v24, %v2333_v52  ;;  %v2421_v10 = vmul.f32 %v2409_v9, %v6562_v34  ;;  %v2577_v13 = vmul.f32 %v2565_v26, %v6562_v34  ;;  %v2398_v30 = vmul.f32 -2.7261424e-10, %v6584_v18 }
 0x39d   :  { %v2679_v40 = vmul.f32 %v2667_v23, %v2331_v60  ;;  %v2670_v17 = vadd.f32 1.0, %v2658_v29  ;;  %v2656_v46 = vmul.f32 %v5494_v38, %v2536_v2  ;;  %v2419_v35 = vmul.f32 %v2407_v56, %v6571_v11 }
 0x39e   :  { %v2433_v54 = vadd.f32 -2.101024e-06, %v2421_v10  ;;  %v2589_v1 = vadd.f32 -0.001682827, %v2577_v13  ;;  %v2575_v33 = vmul.f32 %v2563_v36, %v6571_v11  ;;  %v2410_v41 = vadd.f32 2.7706815e-08, %v2398_v30 }
 0x39f   :  { %v2682_v7 = vmul.f32 %v2670_v17, %v2334_v21  ;;  %v2668_v50 = vadd.f32 1.0, %v2656_v46  ;;  %v2431_v5 = vadd.f32 -2.101024e-06, %v2419_v35  ;;  %v2554_v52 = vmul.f32 -1.45660715e-05, %v6584_v18 }
 0x3a0   :  { %v2445_v57 = vmul.f32 %v2433_v54, %v6562_v34  ;;  %v2601_v53 = vmul.f32 %v2589_v1, %v6562_v34  ;;  %v2587_v12 = vadd.f32 -0.001682827, %v2575_v33  ;;  %v2422_v60 = vmul.f32 %v2410_v41, %v6584_v18 }
 0x3a1   :  { %v2692_v14 = vpack.c.bf16 %v2682_v7, %v2681_v25  ;;  %v2680_v59 = vmul.f32 %v2668_v50, %v2332_v16  ;;  %v2443_v4 = vmul.f32 %v2431_v5, %v6571_v11  ;;  %v2566_v31 = vadd.f32 -0.00021337405, %v2554_v52 }
 0x3a2   :  { %v2457_v19 = vadd.f32 -5.6925062e-05, %v2445_v57  ;;  %v2613_v47 = vadd.f32 -0.0073733293, %v2601_v53  ;;  %v2599_v21 = vmul.f32 %v2587_v12, %v6571_v11  ;;  %v2434_v55 = vadd.f32 -2.101024e-06, %v2422_v60 }
 0x3a3   :  { %v2691_v32 = vpack.c.bf16 %v2680_v59, %v2679_v40  ;;  %v2455_v51 = vadd.f32 -5.6925062e-05, %v2443_v4  ;;  %v2578_v37 = vmul.f32 %v2566_v31, %v6584_v18  ;;  %v2348_v63 = vmul.f32 0.70710677, %v6548_v49 }
 0x3a4   :  { %v2469_v2 = vmul.f32 %v2457_v19, %v6562_v34  ;;  %v2625_v27 = vmul.f32 %v2613_v47, %v6562_v34  ;;  %v2611_v22 = vadd.f32 -0.0073733293, %v2599_v21  ;;  %v2446_v16 = vmul.f32 %v2434_v55, %v6584_v18 }
 0x3a5   :  { %v2467_v58 = vmul.f32 %v2455_v51, %v6571_v11  ;;  %v2590_v24 = vadd.f32 -0.001682827, %v2578_v37  ;;  %v6603_v9 = vclamps-f32 %v2348_v63, 4.0  ;;  %v6607_v26 = vadd.f32 %v6550_v6, %v6449_v48  ;;  %4995 = vmatpush3.bf16.msra.mxu1 %v2691_v32 }
 0x3a6   :  { %v2481_v23 = vadd.f32 -0.00073499064, %v2469_v2  ;;  %v2637_v29 = vadd.f32 -0.014264739, %v2625_v27  ;;  %v2623_v56 = vmul.f32 %v2611_v22, %v6571_v11  ;;  %v2458_v36 = vadd.f32 -5.6925062e-05, %v2446_v16  ;;  %4996 = vmatprep.subr.bf16.mxu1 %v5524_v8 }
 0x3a7   :  { %v2479_v38 = vadd.f32 -0.00073499064, %v2467_v58  ;;  %v2602_v25 = vmul.f32 %v2590_v24, %v6584_v18  ;;  %v6614_v10 = vmul.f32 %v6603_v9, %v6603_v9  ;;  %v2353_v1 = vmul.f32 0.70710677, %v6607_v26 }
 0x3a8   :  { %v2493_v13 = vmul.f32 %v2481_v23, %v6562_v34  ;;  %5495 = vrcp.f32 %v2637_v29  ;;  %v2635_v48 = vadd.f32 -0.014264739, %v2623_v56  ;;  %v2470_v6 = vmul.f32 %v2458_v36, %v6584_v18 }
 0x3a9   :  { %v2491_v30 = vmul.f32 %v2479_v38, %v6571_v11  ;;  %v2614_v40 = vadd.f32 -0.0073733293, %v2602_v25  ;;  %v2396_v17 = vmul.f32 -2.7261424e-10, %v6614_v10  ;;  %v2552_v46 = vmul.f32 -1.45660715e-05, %v6614_v10  ;;  %4997 = vmatpush3.bf16.msra.mxu1 %v2692_v14 }
 0x3aa   :  { %v2505_v35 = vadd.f32 -0.0029546, %v2493_v13  ;;  %5497 = vrcp.f32 %v2635_v48  ;;  %v2482_v54 = vadd.f32 -0.00073499064, %v2470_v6  ;;  %4998 = vmatprep.subr.bf16.mxu1 %v5524_v8  ;;  %v6626_v57 = vclamps-f32 %v2353_v1, 4.0 }
 0x3ab   :  { %v2503_v33 = vadd.f32 -0.0029546, %v2491_v30  ;;  %v2626_v41 = vmul.f32 %v2614_v40, %v6584_v18  ;;  %v2408_v7 = vadd.f32 2.7706815e-08, %v2396_v17  ;;  %v2564_v50 = vadd.f32 -0.00021337405, %v2552_v46 }
 0x3ac   :  { %v2517_v5 = vmul.f32 %v2505_v35, %v6562_v34  ;;  %v2494_v52 = vmul.f32 %v2482_v54, %v6584_v18  ;;  %v6630_v53 = vadd.f32 %v6556_v44, %v6445_v42  ;;  %v6637_v34 = vmul.f32 %v6626_v57, %v6626_v57 }
 0x3ad   :  { %v2515_v12 = vmul.f32 %v2503_v33, %v6571_v11  ;;  %v2638_v60 = vadd.f32 -0.014264739, %v2626_v41  ;;  %v2420_v14 = vmul.f32 %v2408_v7, %v6614_v10  ;;  %v2576_v59 = vmul.f32 %v2564_v50, %v6614_v10 }
 0x3ae   :  { %v2529_v4 = vadd.f32 -0.016096033, %v2517_v5  ;;  %v2506_v31 = vadd.f32 -0.0029546, %v2494_v52  ;;  %v2401_v44 = vmul.f32 -2.7261424e-10, %v6637_v34 }
 0x3af   :  { %5499 = vrcp.f32 %v2638_v60  ;;  %v2432_v19 = vadd.f32 -2.101024e-06, %v2420_v14  ;;  %v2588_v47 = vadd.f32 -0.001682827, %v2576_v59  ;;  %v2557_v11 = vmul.f32 -1.45660715e-05, %v6637_v34 }
 0x3b0   :  { %v2541_v21 = vmul.f32 %v6542_v0, %v2529_v4  ;;  %v2518_v42 = vmul.f32 %v2506_v31, %v6584_v18  ;;  %v2527_v55 = vadd.f32 -0.016096033, %v2515_v12  ;;  %v2351_v37 = vmul.f32 0.70710677, %v6630_v53 }
 0x3b1   :  { %v2444_v32 = vmul.f32 %v2432_v19, %v6614_v10  ;;  %v2600_v51 = vmul.f32 %v2588_v47, %v6614_v10  ;;  %v2413_v27 = vadd.f32 2.7706815e-08, %v2401_v44  ;;  %v2569_v22 = vadd.f32 -0.00021337405, %v2557_v11 }
 0x3b2   :  { %v5496_v63 = vpop.eup %5495  ;;  %v2530_v2 = vadd.f32 -0.016096033, %v2518_v42  ;;  %v6648_v0 = vadd.f32 %v6565_v43, %v6451_v62  ;;  %v6650_v24 = vclamps-f32 %v2351_v37, 4.0  ;;  %v2337_v29 = vmul.f32 0.5, %v6529_v28 }
 0x3b3   :  { %v2661_v18 = vmul.f32 %v5496_v63, %v2541_v21  ;;  %v2456_v16 = vadd.f32 -5.6925062e-05, %v2444_v32  ;;  %v2612_v58 = vadd.f32 -0.0073733293, %v2600_v51  ;;  %v6654_v56 = vmul.f32 0.5, %v6532_v45 }
 0x3b4   :  { %v5498_v23 = vpop.eup %5497  ;;  %v2425_v36 = vmul.f32 %v2413_v27, %v6637_v34  ;;  %v2581_v38 = vmul.f32 %v2569_v22, %v6637_v34  ;;  %v2539_v25 = vmul.f32 %v6554_v15, %v2527_v55  ;;  %v2542_v62 = vmul.f32 %v6577_v20, %v2530_v2 }
 0x3b5   :  { %v2468_v43 = vmul.f32 %v2456_v16, %v6614_v10  ;;  %v2624_v13 = vmul.f32 %v2612_v58, %v6614_v10  ;;  %v6664_v28 = vmul.f32 %v6650_v24, %v6650_v24  ;;  %v2354_v45 = vmul.f32 0.70710677, %v6648_v0 }
 0x3b6   :  { %v2437_v48 = vadd.f32 -2.101024e-06, %v2425_v36  ;;  %v2593_v6 = vadd.f32 -0.001682827, %v2581_v38  ;;  %v2673_v30 = vadd.f32 1.0, %v2661_v18  ;;  %v2338_v40 = vmul.f32 0.5, %v6545_v3 }
 0x3b7   :  { %v2480_v17 = vadd.f32 -0.00073499064, %v2468_v43  ;;  %v2636_v46 = vadd.f32 -0.014264739, %v2624_v13  ;;  %v2399_v35 = vmul.f32 -2.7261424e-10, %v6664_v28  ;;  %v2659_v33 = vmul.f32 %v5498_v23, %v2539_v25 }
 0x3b8   :  { %v2449_v15 = vmul.f32 %v2437_v48, %v6637_v34  ;;  %v2605_v20 = vmul.f32 %v2593_v6, %v6637_v34  ;;  %v2555_v54 = vmul.f32 -1.45660715e-05, %v6664_v28  ;;  %v6673_v7 = vclamps-f32 %v2354_v45, 4.0 }
 0x3b9   :  { %v5500_v1 = vpop.eup %5499  ;;  %v2492_v41 = vmul.f32 %v2480_v17, %v6614_v10  ;;  %5501 = vrcp.f32 %v2636_v46  ;;  %v2411_v52 = vadd.f32 2.7706815e-08, %v2399_v35  ;;  %v6681_v59 = vadd.f32 %v6573_v61, %v6447_v39 }
 0x3ba   :  { %v2662_v50 = vmul.f32 %v5500_v1, %v2542_v62  ;;  %v2461_v5 = vadd.f32 -5.6925062e-05, %v2449_v15  ;;  %v2617_v3 = vadd.f32 -0.0073733293, %v2605_v20  ;;  %v2567_v60 = vadd.f32 -0.00021337405, %v2555_v54 }
 0x3bb   :  { %v2504_v12 = vadd.f32 -0.0029546, %v2492_v41  ;;  %v6677_v14 = vmul.f32 %v6673_v7, %v6673_v7  ;;  %v2423_v47 = vmul.f32 %v2411_v52, %v6664_v28  ;;  %v6690_v55 = vmul.f32 %v2673_v30, %v2337_v29 }
 0x3bc   :  { %v2674_v4 = vadd.f32 1.0, %v2662_v50  ;;  %v2473_v31 = vmul.f32 %v2461_v5, %v6637_v34  ;;  %v2629_v19 = vmul.f32 %v2617_v3, %v6637_v34  ;;  %v2579_v42 = vmul.f32 %v2567_v60, %v6664_v28 }
 0x3bd   :  { %v2516_v21 = vmul.f32 %v2504_v12, %v6614_v10  ;;  %v2402_v44 = vmul.f32 -2.7261424e-10, %v6677_v14  ;;  %v2558_v11 = vmul.f32 -1.45660715e-05, %v6677_v14  ;;  %v2435_v61 = vadd.f32 -2.101024e-06, %v2423_v47 }
 0x3be   :  { %v6692_v32 = vmul.f32 %v2674_v4, %v2338_v40  ;;  %v2485_v39 = vadd.f32 -0.00073499064, %v2473_v31  ;;  %v2591_v37 = vadd.f32 -0.001682827, %v2579_v42  ;;  %v2641_v27 = vadd.f32 -0.014264739, %v2629_v19 }
 0x3bf   :  { %v2528_v51 = vadd.f32 -0.016096033, %v2516_v21  ;;  %v2414_v63 = vadd.f32 2.7706815e-08, %v2402_v44  ;;  %v2447_v22 = vmul.f32 %v2435_v61, %v6664_v28  ;;  %v2570_v23 = vadd.f32 -0.00021337405, %v2558_v11 }
 0x3c0   :  { %v2694_v2 = vpack.c.bf16 %v6692_v32, %v6690_v55  ;;  %v2497_v10 = vmul.f32 %v2485_v39, %v6637_v34  ;;  %v2603_v16 = vmul.f32 %v2591_v37, %v6664_v28  ;;  %v2671_v29 = vadd.f32 1.0, %v2659_v33 }
 0x3c1   :  { %v2540_v18 = vmul.f32 %v6603_v9, %v2528_v51  ;;  %v2426_v58 = vmul.f32 %v2414_v63, %v6677_v14  ;;  %v2336_v36 = vmul.f32 0.5, %v6548_v49  ;;  %v2459_v25 = vadd.f32 -5.6925062e-05, %v2447_v22 }
 0x3c2   :  { %v2509_v38 = vadd.f32 -0.0029546, %v2497_v10  ;;  %v2615_v43 = vadd.f32 -0.0073733293, %v2603_v16  ;;  %v2582_v48 = vmul.f32 %v2570_v23, %v6677_v14  ;;  %v2352_v6 = vmul.f32 0.70710677, %v6681_v59 }
 0x3c3   :  { %v5502_v62 = vpop.eup %5501  ;;  %v2438_v13 = vadd.f32 -2.101024e-06, %v2426_v58  ;;  %5503 = vrcp.f32 %v2641_v27  ;;  %v2471_v30 = vmul.f32 %v2459_v25, %v6664_v28  ;;  %v6711_v20 = vmul.f32 0.5, %v6607_v26 }
 0x3c4   :  { %v2660_v45 = vmul.f32 %v5502_v62, %v2540_v18  ;;  %v2521_v9 = vmul.f32 %v2509_v38, %v6637_v34  ;;  %v2627_v40 = vmul.f32 %v2615_v43, %v6664_v28  ;;  %v2594_v49 = vadd.f32 -0.001682827, %v2582_v48 }
 0x3c5   :  { %v2450_v17 = vmul.f32 %v2438_v13, %v6677_v14  ;;  %v6708_v46 = vclamps-f32 %v2352_v6, 4.0  ;;  %v2483_v54 = vadd.f32 -0.00073499064, %v2471_v30  ;;  %v2683_v50 = vmul.f32 %v2671_v29, %v6654_v56 }
 0x3c6   :  { %v2672_v15 = vadd.f32 1.0, %v2660_v45  ;;  %v2533_v35 = vadd.f32 -0.016096033, %v2521_v9  ;;  %v2639_v1 = vadd.f32 -0.014264739, %v2627_v40  ;;  %v2606_v34 = vmul.f32 %v2594_v49, %v6677_v14 }
 0x3c7   :  { %v2462_v33 = vadd.f32 -5.6925062e-05, %v2450_v17  ;;  %v2388_v41 = vmul.f32 %v6708_v46, %v6708_v46  ;;  %v2495_v3 = vmul.f32 %v2483_v54, %v6664_v28  ;;  %v2339_v56 = vmul.f32 0.5, %v6630_v53 }
 0x3c8   :  { %v2684_v5 = vmul.f32 %v2672_v15, %v2336_v36  ;;  %v2618_v12 = vadd.f32 -0.0073733293, %v2606_v34  ;;  %5505 = vrcp.f32 %v2639_v1  ;;  %v2545_v61 = vmul.f32 %v6626_v57, %v2533_v35 }
 0x3c9   :  { %v2474_v52 = vmul.f32 %v2462_v33, %v6677_v14  ;;  %v2400_v60 = vmul.f32 -2.7261424e-10, %v2388_v41  ;;  %v2507_v4 = vadd.f32 -0.0029546, %v2495_v3  ;;  %v2556_v31 = vmul.f32 -1.45660715e-05, %v2388_v41 }
 0x3ca   :  { %v2693_v26 = vpack.c.bf16 %v2684_v5, %v2683_v50  ;;  %v2630_v47 = vmul.f32 %v2618_v12, %v6677_v14  ;;  %v2342_v25 = vmul.f32 0.5, %v6648_v0  ;;  %v2340_v1 = vmul.f32 0.5, %v6681_v59  ;;  %v5391_v59 = vld [vmem:[%s7167_s5] sm:$0xff]   ;;  %v5393_v3 = vld [vmem:[%s7167_s5 + $0x8] sm:$0xff]  }
 0x3cb   :  { %v2486_v19 = vadd.f32 -0.00073499064, %v2474_v52  ;;  %v2412_v21 = vadd.f32 2.7706815e-08, %v2400_v60  ;;  %v2519_v42 = vmul.f32 %v2507_v4, %v6664_v28  ;;  %v2568_v44 = vadd.f32 -0.00021337405, %v2556_v31 }
 0x3cc   :  { %4999 = vmatpush3.bf16.msra.mxu1 %v2693_v26  ;;  %v2642_v55 = vadd.f32 -0.014264739, %v2630_v47  ;;  %v5394_v52 = vld [vmem:[%s7167_s5 + $0x50] sm:$0xff]   ;;  %v5382_v12 = vld [vmem:[%s7166_s4 + $0x8] sm:$0xff]   ;;  %v5396_v26 = vld [vmem:[%s7167_s5 + $0x58] sm:$0xff]  }
 0x3cd   :  { %v2498_v11 = vmul.f32 %v2486_v19, %v6677_v14  ;;  %v2424_v32 = vmul.f32 %v2412_v21, %v2388_v41  ;;  %5000 = vmatprep.subr.bf16.mxu1 %v5524_v8  ;;  %v5504_v39 = vpop.eup %5503  ;;  %v2531_v51 = vadd.f32 -0.016096033, %v2519_v42  ;;  %v2580_v37 = vmul.f32 %v2568_v44, %v2388_v41  ;;  %v5395_v60 = vld [vmem:[%s7167_s5 + $0x10] sm:$0xff]   ;;  %v5397_v4 = vld [vmem:[%s7167_s5 + $0x18] sm:$0xff]   ;;  %v5398_v31 = vld [vmem:[%s7167_s5 + $0x60] sm:$0xff]  }
 0x3ce   :  { %5507 = vrcp.f32 %v2642_v55  ;;  %v2665_v53 = vmul.f32 %v5504_v39, %v2545_v61  ;;  %v5383_v19 = vld [vmem:[%s7166_s4 + $0x10] sm:$0xff]   ;;  %v5399_v47 = vld [vmem:[%s7167_s5 + $0x20] sm:$0xff]   ;;  %v5400_v21 = vld [vmem:[%s7167_s5 + $0x68] sm:$0xff]  }
 0x3cf   :  { %v2510_v63 = vadd.f32 -0.0029546, %v2498_v11  ;;  %v2436_v10 = vadd.f32 -2.101024e-06, %v2424_v32  ;;  %v2592_v27 = vadd.f32 -0.001682827, %v2580_v37  ;;  %v2543_v23 = vmul.f32 %v6650_v24, %v2531_v51 }
 0x3d0   :  { %5001 = vmatpush3.bf16.msra.mxu1 %v2694_v2  ;;  %v2677_v38 = vadd.f32 1.0, %v2665_v53  ;;  %v5401_v42 = vld [vmem:[%s7167_s5 + $0x28] sm:$0xff]   ;;  %v5384_v44 = vld [vmem:[%s7166_s4 + $0x18] sm:$0xff]   ;;  %v5387_v55 = vld [vmem:[%s7166_s4 + $0x30] sm:$0xff]  }
 0x3d1   :  { %v2522_v28 = vmul.f32 %v2510_v63, %v6677_v14  ;;  %v2448_v22 = vmul.f32 %v2436_v10, %v2388_v41  ;;  %5002 = vmatprep.subr.bf16.mxu1 %v5524_v8  ;;  %v2604_v18 = vmul.f32 %v2592_v27, %v2388_v41  ;;  %v5386_v11 = vld [vmem:[%s7166_s4 + $0x28] sm:$0xff]   ;;  %v5388_v32 = vld [vmem:[%s7166_s4 + $0x38] sm:$0xff]   ;;  %v5389_v39 = vld [vmem:[%s7166_s4 + $0x40] sm:$0xff]  }
 0x3d2   :  { %v5506_v57 = vpop.eup %5505  ;;  %v2689_v17 = vmul.f32 %v2677_v38, %v6711_v20  ;;  %v5392_v20 = vld [vmem:[%s7167_s5 + $0x48] sm:$0xff]   ;;  %v5402_v61 = vld [vmem:[%s7167_s5 + $0x70] sm:$0xff]   ;;  %v5404_v37 = vld [vmem:[%s7167_s5 + $0x78] sm:$0xff]  }
 0x3d3   :  { %v2534_v16 = vadd.f32 -0.016096033, %v2522_v28  ;;  %v2460_v58 = vadd.f32 -5.6925062e-05, %v2448_v22  ;;  %v2616_v29 = vadd.f32 -0.0073733293, %v2604_v18  ;;  %v2663_v14 = vmul.f32 %v5506_v57, %v2543_v23 }
 0x3d4   :  { %v5403_v51 = vld [vmem:[%s7167_s5 + $0x30] sm:$0xff]   ;;  %v5405_v63 = vld [vmem:[%s7167_s5 + $0x38] sm:$0xff]   ;;  %v5406_v10 = vld [vmem:[%s7167_s5 + $0xc0] sm:$0xff]  }
 0x3d5   :  { %v2472_v36 = vmul.f32 %v2460_v58, %v2388_v41  ;;  %v2546_v62 = vmul.f32 %v6673_v7, %v2534_v16  ;;  %v2628_v2 = vmul.f32 %v2616_v29, %v2388_v41  ;;  %v2675_v30 = vadd.f32 1.0, %v2663_v14  ;;  %v5408_v38 = vld [vmem:[%s7167_s5 + $0xc8] sm:$0xff]  }
 0x3d7   :  { %v2484_v43 = vadd.f32 -0.00073499064, %v2472_v36  ;;  %v2640_v13 = vadd.f32 -0.014264739, %v2628_v2  ;;  %v2687_v34 = vmul.f32 %v2675_v30, %v2339_v56  ;;  %v5385_v56 = vld [vmem:[%s7166_s4 + $0x20] sm:$0xff]  }
 0x3d8   :  { %v5508_v48 = vpop.eup %5507  ;;  %v5407_v36 = vld [vmem:[%s7167_s5 + $0x80] sm:$0xff]  }
 0x3d9   :  { %v2496_v6 = vmul.f32 %v2484_v43, %v2388_v41  ;;  %v2666_v45 = vmul.f32 %v5508_v48, %v2546_v62  ;;  %5509 = vrcp.f32 %v2640_v13  ;;  %v5410_v62 = vld [vmem:[%s7167_s5 + $0xd0] sm:$0xff]   ;;  %v5414_v30 = vld [vmem:[%s7167_s5 + $0xe0] sm:$0xff]  }
 0x3da   :  { %v5411_v13 = vld [vmem:[%s7167_s5 + $0x90] sm:$0xff]  }
 0x3db   :  { %v2508_v9 = vadd.f32 -0.0029546, %v2496_v6  ;;  %v2678_v40 = vadd.f32 1.0, %v2666_v45  ;;  %v5412_v45 = vld [vmem:[%s7167_s5 + $0xd8] sm:$0xff]  }
 0x3dd   :  { %v2520_v24 = vmul.f32 %v2508_v9, %v2388_v41  ;;  %v2690_v49 = vmul.f32 %v2678_v40, %v2342_v25  ;;  %v5390_v41 = vld [vmem:[%s7167_s5 + $0x40] sm:$0xff]   ;;  %v5409_v25 = vld [vmem:[%s7167_s5 + $0x88] sm:$0xff]   ;;  %v5413_v9 = vld [vmem:[%s7167_s5 + $0x98] sm:$0xff]  }
 0x3df   :  { %v2532_v15 = vadd.f32 -0.016096033, %v2520_v24  ;;  %v2696_v35 = vpack.c.bf16 %v2690_v49, %v2689_v17  ;;  %v5415_v49 = vld [vmem:[%s7167_s5 + $0xa0] sm:$0xff]  }
 0x3e1   :  { %v2544_v0 = vmul.f32 %v6708_v46, %v2532_v15  ;;  %v5381_v46 = vld [vmem:[%s7166_s4] sm:$0xff]  }
 0x3e3   :  { %v5510_v7 = vpop.eup %5509 }
 0x3e4   :  { %v2664_v54 = vmul.f32 %v5510_v7, %v2544_v0  ;;  %v5416_v0 = vld [vmem:[%s7167_s5 + $0xe8] sm:$0xff]  }
 0x3e5   :  { %v5417_v7 = vld [vmem:[%s7167_s5 + $0xa8] sm:$0xff]  }
 0x3e6   :  { %v2676_v33 = vadd.f32 1.0, %v2664_v54  ;;  %v5418_v54 = vld [vmem:[%s7167_s5 + $0xf0] sm:$0xff]  }
 0x3e8   :  { %v2688_v50 = vmul.f32 %v2676_v33, %v2340_v1 }
 0x3ea   :  { %v2695_v5 = vpack.c.bf16 %v2688_v50, %v2687_v34  ;;  %v5419_v50 = vld [vmem:[%s7167_s5 + $0xb0] sm:$0xff]  }
 0x3ec   :  { %5003 = vmatpush3.bf16.msra.mxu1 %v2695_v5 }
 0x3ed   :  { %5004 = vmatprep.subr.bf16.mxu1 %v5524_v8 }
 0x3f0   :  { %5005 = vmatpush3.bf16.msra.mxu1 %v2696_v35 }
 0x3f1   :  { %4840 = vmatprep.subr.bf16.mxu1 %v5390_v41 }
 0x3f3   :  { %5007 = vmatmul.mubr.msk.bf16.vlgmr.msra.gmra.mrb[108].mxu1 %vm2760_vm1, %v5381_v46  ;;  %v5420_v46 = vld [vmem:[%s7167_s5 + $0xf8] sm:$0xff]  }
 0x3f4   :  { %5010 = vmatprep.mubr.msk.bf16.mxu1 %vm5525_vm0, %v5524_v8  ;;  %4841 = vmatpush3.bf16.msra.mxu1 %v5391_v59  ;;  %v5421_v59 = vld [vmem:[%s7167_s5 + $0xb8] sm:$0xff]  }
 0x3f5   :  { %4842 = vmatprep.subr.bf16.mxu1 %v5392_v20  ;;  %v5422_v20 = vld [vmem:[%s7167_s5 + $0x140] sm:$0xff]  }
 0x3f8   :  { %4843 = vmatpush3.bf16.msra.mxu1 %v5393_v3 }
 0x3f9   :  { %4844 = vmatprep.subr.bf16.mxu1 %v5394_v52 }
 0x3fb   :  { %5011 = vmatmul.mubr.msk.bf16.gmra.mrb[112].mxu1 %vm2760_vm1, %v5382_v12 }
 0x3fc   :  { %5014 = vmatprep.mubr.msk.bf16.mxu1 %vm5525_vm0, %v5524_v8  ;;  %4845 = vmatpush3.bf16.msra.mxu1 %v5395_v60  ;;  %v5423_v60 = vld [vmem:[%s7167_s5 + $0x100] sm:$0xff]  }
 0x3fd   :  { %4846 = vmatprep.subr.bf16.mxu1 %v5396_v26 }
 0x400   :  { %4847 = vmatpush3.bf16.msra.mxu1 %v5397_v4 }
 0x401   :  { %4848 = vmatprep.subr.bf16.mxu1 %v5398_v31  ;;  %v5424_v31 = vld [vmem:[%s7167_s5 + $0x148] sm:$0xff]  }
 0x403   :  { %5015 = vmatmul.mubr.msk.bf16.gmra.mrb[116].mxu1 %vm2760_vm1, %v5383_v19  ;;  %v5425_v19 = vld [vmem:[%s7167_s5 + $0x108] sm:$0xff]  }
 0x404   :  { %5018 = vmatprep.mubr.msk.bf16.mxu1 %vm5525_vm0, %v5524_v8  ;;  %4849 = vmatpush3.bf16.msra.mxu1 %v5399_v47  ;;  %v5426_v47 = vld [vmem:[%s7167_s5 + $0x150] sm:$0xff]  }
 0x405   :  { %4850 = vmatprep.subr.bf16.mxu1 %v5400_v21 }
 0x408   :  { %4851 = vmatpush3.bf16.msra.mxu1 %v5401_v42 }
 0x409   :  { %4852 = vmatprep.subr.bf16.mxu1 %v5402_v61  ;;  %v5430_v61 = vld [vmem:[%s7167_s5 + $0x160] sm:$0xff]  }
 0x40b   :  { %5019 = vmatmul.mubr.msk.bf16.gmra.mrb[120].mxu1 %vm2760_vm1, %v5384_v44 }
 0x40c   :  { %5022 = vmatprep.mubr.msk.bf16.mxu1 %vm5525_vm0, %v5524_v8  ;;  %4853 = vmatpush3.bf16.msra.mxu1 %v5403_v51 }
 0x40d   :  { %4854 = vmatprep.subr.bf16.mxu1 %v5404_v37 }
 0x410   :  { %4855 = vmatpush3.bf16.msra.mxu1 %v5405_v63 }
 0x411   :  { %4862 = vmatprep.subr.bf16.mxu1 %v5406_v10  ;;  %v5431_v10 = vld [vmem:[%s7167_s5 + $0x120] sm:$0xff]  }
 0x413   :  { %5023 = vmatmul.mubr.msk.bf16.gmra.mrb[124].mxu1 %vm2760_vm1, %v5385_v56  ;;  %v5427_v56 = vld [vmem:[%s7167_s5 + $0x110] sm:$0xff]  }
 0x414   :  { %5026 = vmatprep.mubr.msk.bf16.mxu1 %vm5525_vm0, %v5524_v8 }
 0x41b   :  { %5027 = vmatmul.mubr.msk.bf16.gmra.mrb[128].mxu1 %vm2760_vm1, %v5386_v11 }
 0x41c   :  { %5030 = vmatprep.mubr.msk.bf16.mxu1 %vm5525_vm0, %v5524_v8 }
 0x423   :  { %5031 = vmatmul.mubr.msk.bf16.gmra.mrb[132].mxu1 %vm2760_vm1, %v5387_v55 }
 0x424   :  { %5034 = vmatprep.mubr.msk.bf16.mxu1 %vm5525_vm0, %v5524_v8 }
 0x42b   :  { %5035 = vmatmul.mubr.msk.bf16.gmra.mrb[136].mxu1 %vm2760_vm1, %v5388_v32  ;;  %v5428_v32 = vld [vmem:[%s7167_s5 + $0x158] sm:$0xff]  }
 0x42c   :  { %5038 = vmatprep.mubr.msk.bf16.mxu1 %vm5525_vm0, %v5524_v8 }
 0x433   :  { %5039 = vmatmul.mubr.msk.bf16.gmra.mrb[140].mxu1 %vm2760_vm1, %v5389_v39  ;;  %v5429_v39 = vld [vmem:[%s7167_s5 + $0x118] sm:$0xff]  }
 0x4c6   :  { %v2822_v27 = vpop.f32.mrb[108].mxu1 }
 0x4c7   :  { %v5008_v28 = vpop.f32.mrb[109].mxu1 }
 0x4c8   :  { %v2825_v22 = vpop.f32.mrb[110].mxu1 }
 0x4c9   :  { %v2893_v53 = vpack.c.bf16 %v2825_v22, %v2822_v27  ;;  %v5009_v18 = vpop.f32.mrb[111].mxu1  ;;  %v5432_v22 = vld [vmem:[%s7167_s5 + $0x168] sm:$0xff]  }
 0x4ca   :  { %v5434_v18 = vld [vmem:[%s7167_s5 + $0x170] sm:$0xff]  }
 0x4ce   :  { %v2830_v16 = vpop.f32.mrb[112].mxu1 }
 0x4cf   :  { %v5012_v58 = vpop.f32.mrb[113].mxu1 }
 0x4d0   :  { %v2833_v23 = vpop.f32.mrb[114].mxu1 }
 0x4d1   :  { %v2894_v29 = vpack.c.bf16 %v2833_v23, %v2830_v16  ;;  %v5013_v57 = vpop.f32.mrb[115].mxu1 }
 0x4d3   :  { %3517 = vmatprep.mubr.bf16.mxu1 %v2894_v29  ;;  %v5435_v29 = vld [vmem:[%s7167_s5 + $0x130] sm:$0xff]  }
 0x4d4   :  { %3518 = vmatmul.mubr.bf16.vlgmr.msra.gmra.mrb[144].mxu1 %v2893_v53  ;;  %v5433_v53 = vld [vmem:[%s7167_s5 + $0x128] sm:$0xff]  }
 0x4d5   :  { %4863 = vmatpush3.bf16.msra.mxu1 %v5407_v36 }
 0x4d6   :  { %4864 = vmatprep.subr.bf16.mxu1 %v5408_v38  ;;  %v2838_v2 = vpop.f32.mrb[116].mxu1  ;;  %v5436_v38 = vld [vmem:[%s7167_s5 + $0x178] sm:$0xff]  }
 0x4d7   :  { %v5016_v43 = vpop.f32.mrb[117].mxu1 }
 0x4d8   :  { %v2841_v14 = vpop.f32.mrb[118].mxu1  ;;  %v5440_v43 = vld [vmem:[%s7167_s5 + $0x1c8] sm:$0xff]  }
 0x4d9   :  { %4865 = vmatpush3.bf16.msra.mxu1 %v5409_v25  ;;  %v2895_v48 = vpack.c.bf16 %v2841_v14, %v2838_v2  ;;  %v5017_v6 = vpop.f32.mrb[119].mxu1  ;;  %v5437_v25 = vld [vmem:[%s7167_s5 + $0x138] sm:$0xff]   ;;  %v5439_v2 = vld [vmem:[%s7167_s5 + $0x180] sm:$0xff]   ;;  %v5441_v14 = vld [vmem:[%s7167_s5 + $0x188] sm:$0xff]  }
 0x4da   :  { %4866 = vmatprep.subr.bf16.mxu1 %v5410_v62  ;;  %v5438_v62 = vld [vmem:[%s7167_s5 + $0x1c0] sm:$0xff]   ;;  %v5444_v6 = vld [vmem:[%s7167_s5 + $0x1d8] sm:$0xff]  }
 0x4dd   :  { %4867 = vmatpush3.bf16.msra.mxu1 %v5411_v13  ;;  %v5442_v13 = vld [vmem:[%s7167_s5 + $0x1d0] sm:$0xff]  }
 0x4de   :  { %4868 = vmatprep.subr.bf16.mxu1 %v5412_v45  ;;  %v2846_v40 = vpop.f32.mrb[120].mxu1  ;;  %v5445_v45 = vld [vmem:[%s7167_s5 + $0x198] sm:$0xff]  }
 0x4df   :  { %v5020_v24 = vpop.f32.mrb[121].mxu1 }
 0x4e0   :  { %v2849_v17 = vpop.f32.mrb[122].mxu1  ;;  %v5449_v24 = vld [vmem:[%s7167_s5 + $0x1a8] sm:$0xff]  }
 0x4e1   :  { %4869 = vmatpush3.bf16.msra.mxu1 %v5413_v9  ;;  %v2896_v15 = vpack.c.bf16 %v2849_v17, %v2846_v40  ;;  %v5021_v35 = vpop.f32.mrb[123].mxu1  ;;  %v5446_v9 = vld [vmem:[%s7167_s5 + $0x1e0] sm:$0xff]   ;;  %v5448_v40 = vld [vmem:[%s7167_s5 + $0x1e8] sm:$0xff]   ;;  %v5450_v17 = vld [vmem:[%s7167_s5 + $0x1f0] sm:$0xff]  }
 0x4e2   :  { %4870 = vmatprep.subr.bf16.mxu1 %v5414_v30  ;;  %v5447_v30 = vld [vmem:[%s7167_s5 + $0x1a0] sm:$0xff]   ;;  %v5453_v35 = vld [vmem:[%s7167_s5 + $0x1b8] sm:$0xff]  }
 0x4e3   :  { %3558 = vmatprep.mubr.bf16.mxu1 %v2896_v15  ;;  %v5452_v15 = vld [vmem:[%s7167_s5 + $0x1f8] sm:$0xff]  }
 0x4e5   :  { %4871 = vmatpush3.bf16.msra.mxu1 %v5415_v49  ;;  %v5451_v49 = vld [vmem:[%s7167_s5 + $0x1b0] sm:$0xff]  }
 0x4e6   :  { %4872 = vmatprep.subr.bf16.mxu1 %v5416_v0  ;;  %v6873_v1 = vpop.f32.mrb[124].mxu1  ;;  %v5454_v0 = vld [vmem:[%s7167_s5 + $0x200] sm:$0xff]  }
 0x4e7   :  { %v5024_v33 = vpop.f32.mrb[125].mxu1 }
 0x4e8   :  { %v6875_v34 = vpop.f32.mrb[126].mxu1  ;;  %v5458_v33 = vld [vmem:[%s7167_s5 + $0x220] sm:$0xff]  }
 0x4e9   :  { %4873 = vmatpush3.bf16.msra.mxu1 %v5417_v7  ;;  %v2897_v5 = vpack.c.bf16 %v6875_v34, %v6873_v1  ;;  %v5025_v41 = vpop.f32.mrb[127].mxu1  ;;  %v5455_v7 = vld [vmem:[%s7167_s5 + $0x208] sm:$0xff]   ;;  %v5457_v1 = vld [vmem:[%s7167_s5 + $0x218] sm:$0xff]  }
 0x4ea   :  { %4874 = vmatprep.subr.bf16.mxu1 %v5418_v54  ;;  %v5456_v54 = vld [vmem:[%s7167_s5 + $0x210] sm:$0xff]   ;;  %v5459_v34 = vld [vmem:[%s7167_s5 + $0x228] sm:$0xff]  }
 0x4ed   :  { %4875 = vmatpush3.bf16.msra.mxu1 %v5419_v50  ;;  %v5460_v50 = vld [vmem:[%s7167_s5 + $0x230] sm:$0xff]  }
 0x4ee   :  { %4876 = vmatprep.subr.bf16.mxu1 %v5420_v46  ;;  %v2862_v3 = vpop.f32.mrb[128].mxu1 }
 0x4ef   :  { %v5028_v52 = vpop.f32.mrb[129].mxu1 }
 0x4f0   :  { %v2865_v12 = vpop.f32.mrb[130].mxu1 }
 0x4f1   :  { %4877 = vmatpush3.bf16.msra.mxu1 %v5421_v59  ;;  %v2898_v26 = vpack.c.bf16 %v2865_v12, %v2862_v3  ;;  %v5029_v4 = vpop.f32.mrb[131].mxu1  ;;  %v5462_v12 = vld [vmem:[%s7168_s7] sm:$0xff]  }
 0x4f2   :  { %4884 = vmatprep.subr.bf16.mxu1 %v5422_v20  ;;  %v5465_v4 = vld [vmem:[%s7168_s7 + $0x18] sm:$0xff]  }
 0x4f4   :  { %3559 = vmatmul.mubr.bf16.vlgmr.msra.gmra.mrb[148].mxu1 %v2895_v48  ;;  %v5443_v48 = vld [vmem:[%s7167_s5 + $0x190] sm:$0xff]  }
 0x4f5   :  { %4885 = vmatpush3.bf16.msra.mxu1 %v5423_v60  ;;  %3599 = vmatprep.mubr.bf16.mxu1 %v2898_v26  ;;  %v5463_v60 = vld [vmem:[%s7168_s7 + $0x8] sm:$0xff]   ;;  %v5464_v26 = vld [vmem:[%s7168_s7 + $0x10] sm:$0xff]  }
 0x4f6   :  { %4886 = vmatprep.subr.bf16.mxu1 %v5424_v31  ;;  %v6903_v21 = vpop.f32.mrb[132].mxu1  ;;  %v5466_v31 = vld [vmem:[%s7168_s7 + $0x20] sm:$0xff]  }
 0x4f7   :  { %v5032_v42 = vpop.f32.mrb[133].mxu1 }
 0x4f8   :  { %v6905_v44 = vpop.f32.mrb[134].mxu1 }
 0x4f9   :  { %4887 = vmatpush3.bf16.msra.mxu1 %v5425_v19  ;;  %v2899_v11 = vpack.c.bf16 %v6905_v44, %v6903_v21  ;;  %v5033_v55 = vpop.f32.mrb[135].mxu1  ;;  %v4495_v19 = vld [vmem:[%s7169_s6] ss:$0 sm:$0xff] }
 0x4fa   :  { %4888 = vmatprep.subr.bf16.mxu1 %v5426_v47 }
 0x4fd   :  { %4889 = vmatpush3.bf16.msra.mxu1 %v5427_v56 }
 0x4fe   :  { %4890 = vmatprep.subr.bf16.mxu1 %v5428_v32  ;;  %v2878_v51 = vpop.f32.mrb[136].mxu1 }
 0x4ff   :  { %v5036_v37 = vpop.f32.mrb[137].mxu1 }
 0x500   :  { %v2881_v63 = vpop.f32.mrb[138].mxu1  ;;  %v5468_v37 = vld [vmem:[%s7168_s7 + $0x30] sm:$0xff]  }
 0x501   :  { %4891 = vmatpush3.bf16.msra.mxu1 %v5429_v39  ;;  %v2900_v27 = vpack.c.bf16 %v2881_v63, %v2878_v51  ;;  %v5037_v28 = vpop.f32.mrb[139].mxu1  ;;  %v5469_v63 = vld [vmem:[%s7168_s7 + $0x38] sm:$0xff]  }
 0x502   :  { %4892 = vmatprep.subr.bf16.mxu1 %v5430_v61  ;;  %v5472_v28 = vld [vmem:[%s7170_s10 + $0x10] sm:$0xff]  }
 0x505   :  { %4893 = vmatpush3.bf16.msra.mxu1 %v5431_v10  ;;  %v5470_v10 = vld [vmem:[%s7170_s10] sm:$0xff]  }
 0x506   :  { %4894 = vmatprep.subr.bf16.mxu1 %v5432_v22  ;;  %v6933_v16 = vpop.f32.mrb[140].mxu1  ;;  %5089 = vmatpush3.bf16.msra.mxu0 %v5470_v10 }
 0x507   :  { %v5040_v58 = vpop.f32.mrb[141].mxu1  ;;  %5090 = vmatprep.subr.bf16.mxu0 %v5524_v8 }
 0x508   :  { %v6935_v23 = vpop.f32.mrb[142].mxu1 }
 0x509   :  { %4895 = vmatpush3.bf16.msra.mxu1 %v5433_v53  ;;  %v2901_v57 = vpack.c.bf16 %v6935_v23, %v6933_v16  ;;  %v5041_v36 = vpop.f32.mrb[143].mxu1 }
 0x50a   :  { %4896 = vmatprep.subr.bf16.mxu1 %v5434_v18 }
 0x50d   :  { %4897 = vmatpush3.bf16.msra.mxu1 %v5435_v29 }
 0x50e   :  { %4898 = vmatprep.subr.bf16.mxu1 %v5436_v38 }
 0x511   :  { %4899 = vmatpush3.bf16.msra.mxu1 %v5437_v25 }
 0x512   :  { %4906 = vmatprep.subr.bf16.mxu1 %v5438_v62 }
 0x514   :  { %3600 = vmatmul.mubr.bf16.vlgmr.msra.gmra.mrb[152].mxu1 %v2897_v5  ;;  %v5461_v5 = vld [vmem:[%s7167_s5 + $0x238] sm:$0xff]  }
 0x515   :  { %4907 = vmatpush3.bf16.msra.mxu1 %v5439_v2  ;;  %3640 = vmatprep.mubr.bf16.mxu1 %v2900_v27  ;;  %v5471_v27 = vld [vmem:[%s7170_s10 + $0x8] sm:$0xff]  }
 0x516   :  { %4908 = vmatprep.subr.bf16.mxu1 %v5440_v43  ;;  %5091 = vmatpush3.bf16.msra.mxu0 %v5471_v27 }
 0x517   :  { %5092 = vmatprep.subr.bf16.mxu0 %v5524_v8 }
 0x519   :  { %4909 = vmatpush3.bf16.msra.mxu1 %v5441_v14 }
 0x51a   :  { %4910 = vmatprep.subr.bf16.mxu1 %v5442_v13  ;;  %5093 = vmatpush3.bf16.msra.mxu0 %v5472_v28 }
 0x51b   :  { %5094 = vmatprep.subr.bf16.mxu0 %v5524_v8 }
 0x51d   :  { %4911 = vmatpush3.bf16.msra.mxu1 %v5443_v48 }
 0x51e   :  { %4912 = vmatprep.subr.bf16.mxu1 %v5444_v6 }
 0x521   :  { %4913 = vmatpush3.bf16.msra.mxu1 %v5445_v45 }
 0x522   :  { %4914 = vmatprep.subr.bf16.mxu1 %v5446_v9 }
 0x525   :  { %4915 = vmatpush3.bf16.msra.mxu1 %v5447_v30 }
 0x526   :  { %4916 = vmatprep.subr.bf16.mxu1 %v5448_v40 }
 0x529   :  { %4917 = vmatpush3.bf16.msra.mxu1 %v5449_v24 }
 0x52a   :  { %4918 = vmatprep.subr.bf16.mxu1 %v5450_v17 }
 0x52d   :  { %4919 = vmatpush3.bf16.msra.mxu1 %v5451_v49 }
 0x52e   :  { %4920 = vmatprep.subr.bf16.mxu1 %v5452_v15 }
 0x531   :  { %4921 = vmatpush3.bf16.msra.mxu1 %v5453_v35 }
 0x532   :  { %5042 = vmatprep.subr.bf16.mxu1 %v5524_v8 }
 0x534   :  { %3641 = vmatmul.mubr.bf16.vlgmr.msra.gmra.mrb[156].mxu1 %v2899_v11  ;;  %v5467_v11 = vld [vmem:[%s7168_s7 + $0x28] sm:$0xff]  }
 0x535   :  { %5043 = vmatpush3.bf16.msra.mxu1 %v5454_v0  ;;  %5058 = vmatprep.mubr.msk.bf16.mxu1 %vm5525_vm0, %v5524_v8 }
 0x536   :  { %5044 = vmatprep.subr.bf16.mxu1 %v5524_v8 }
 0x539   :  { %5045 = vmatpush3.bf16.msra.mxu1 %v5455_v7 }
 0x53a   :  { %5046 = vmatprep.subr.bf16.mxu1 %v5524_v8 }
 0x53d   :  { %5047 = vmatpush3.bf16.msra.mxu1 %v5456_v54 }
 0x53e   :  { %5048 = vmatprep.subr.bf16.mxu1 %v5524_v8 }
 0x541   :  { %5049 = vmatpush3.bf16.msra.mxu1 %v5457_v1 }
 0x542   :  { %5050 = vmatprep.subr.bf16.mxu1 %v5524_v8 }
 0x545   :  { %5051 = vmatpush3.bf16.msra.mxu1 %v5458_v33 }
 0x546   :  { %5052 = vmatprep.subr.bf16.mxu1 %v5524_v8 }
 0x549   :  { %5053 = vmatpush3.bf16.msra.mxu1 %v5459_v34 }
 0x54a   :  { %5054 = vmatprep.subr.bf16.mxu1 %v5524_v8 }
 0x54d   :  { %5055 = vmatpush3.bf16.msra.mxu1 %v5460_v50 }
 0x54e   :  { %5056 = vmatprep.subr.bf16.mxu1 %v5524_v8 }
 0x551   :  { %5057 = vmatpush3.bf16.msra.mxu1 %v5461_v5 }
 0x552   :  { %5062 = vmatprep.subr.bf16.mxu1 %v5524_v8 }
 0x554   :  { %5059 = vmatmul.mubr.bf16.vlgmr.msra.gmra.mrb[160].mxu1 %v2901_v57 }
 0x555   :  { %5078 = vmatprep.mubr.msk.bf16.mxu1 %vm5525_vm0, %v5524_v8  ;;  %5063 = vmatpush3.bf16.msra.mxu1 %v5462_v12 }
 0x556   :  { %5064 = vmatprep.subr.bf16.mxu1 %v5524_v8 }
 0x559   :  { %5065 = vmatpush3.bf16.msra.mxu1 %v5463_v60 }
 0x55a   :  { %5066 = vmatprep.subr.bf16.mxu1 %v5524_v8 }
 0x55d   :  { %5067 = vmatpush3.bf16.msra.mxu1 %v5464_v26 }
 0x55e   :  { %5068 = vmatprep.subr.bf16.mxu1 %v5524_v8 }
 0x561   :  { %5069 = vmatpush3.bf16.msra.mxu1 %v5465_v4 }
 0x562   :  { %5070 = vmatprep.subr.bf16.mxu1 %v5524_v8 }
 0x565   :  { %5071 = vmatpush3.bf16.msra.mxu1 %v5466_v31 }
 0x566   :  { %5072 = vmatprep.subr.bf16.mxu1 %v5524_v8 }
 0x569   :  { %5073 = vmatpush3.bf16.msra.mxu1 %v5467_v11 }
 0x56a   :  { %5074 = vmatprep.subr.bf16.mxu1 %v5524_v8 }
 0x56d   :  { %5075 = vmatpush3.bf16.msra.mxu1 %v5468_v37 }
 0x56e   :  { %5076 = vmatprep.subr.bf16.mxu1 %v5524_v8 }
 0x571   :  { %5077 = vmatpush3.bf16.msra.mxu1 %v5469_v63 }
 0x572   :  { %5082 = vmatprep.subr.bf16.mxu1 %v5524_v8 }
 0x5a7   :  { %v4856_v41 = vpop.f32.mrb[144].mxu1 }
 0x5a8   :  { %v4857_v46 = vpop.f32.mrb[145].mxu1 }
 0x5a9   :  { %v4858_v59 = vadd.f32 %v4857_v46, %v4856_v41  ;;  %v4859_v20 = vpop.f32.mrb[146].mxu1 }
 0x5aa   :  { %v4860_v3 = vpop.f32.mrb[147].mxu1 }
 0x5ab   :  { %v4861_v52 = vadd.f32 %v4860_v3, %v4859_v20  ;;  %v3520_v42 = vadd.f32 %v4858_v59, %v4495_v19 }
 0x5ad   :  { %v3523_v32 = vadd.f32 %v4861_v52, %v4495_v19 }
 0x5c7   :  { %v4878_v47 = vpop.f32.mrb[148].mxu1 }
 0x5c8   :  { %v4879_v21 = vpop.f32.mrb[149].mxu1 }
 0x5c9   :  { %v4880_v44 = vadd.f32 %v4879_v21, %v4878_v47  ;;  %v4881_v56 = vpop.f32.mrb[150].mxu1 }
 0x5ca   :  { %v4882_v55 = vpop.f32.mrb[151].mxu1 }
 0x5cb   :  { %v3561_v39 = vadd.f32 %v4880_v44, %v3520_v42  ;;  %v4883_v61 = vadd.f32 %v4882_v55, %v4881_v56 }
 0x5cd   :  { %v3564_v51 = vadd.f32 %v4883_v61, %v3523_v32 }
 0x5e7   :  { %v4900_v22 = vpop.f32.mrb[152].mxu1 }
 0x5e8   :  { %v4901_v53 = vpop.f32.mrb[153].mxu1 }
 0x5e9   :  { %v4902_v18 = vadd.f32 %v4901_v53, %v4900_v22  ;;  %v4903_v16 = vpop.f32.mrb[154].mxu1 }
 0x5ea   :  { %v4904_v58 = vpop.f32.mrb[155].mxu1 }
 0x5eb   :  { %v3602_v23 = vadd.f32 %v4902_v18, %v3561_v39  ;;  %v4905_v29 = vadd.f32 %v4904_v58, %v4903_v16 }
 0x5ed   :  { %v3605_v57 = vadd.f32 %v4905_v29, %v3564_v51 }
 0x607   :  { %v4922_v36 = vpop.f32.mrb[156].mxu1 }
 0x608   :  { %v4923_v38 = vpop.f32.mrb[157].mxu1 }
 0x609   :  { %v4924_v25 = vadd.f32 %v4923_v38, %v4922_v36  ;;  %v4925_v62 = vpop.f32.mrb[158].mxu1 }
 0x60a   :  { %v4926_v2 = vpop.f32.mrb[159].mxu1 }
 0x60b   :  { %v4927_v43 = vadd.f32 %v4926_v2, %v4925_v62  ;;  %v3643_v14 = vadd.f32 %v4924_v25, %v3602_v23 }
 0x60d   :  { %v3646_v13 = vadd.f32 %v4927_v43, %v3605_v57 }
 0x627   :  { %v3683_v48 = vpop.f32.mrb[160].mxu1 }
 0x628   :  { %v3684_v6 = vadd.f32 %v3683_v48, %v3643_v14  ;;  %v5060_v45 = vpop.f32.mrb[161].mxu1 }
 0x629   :  { %v3686_v9 = vpop.f32.mrb[162].mxu1 }
 0x62a   :  { %v3692_v30 = vmul.f32 0.70710677, %v3684_v6  ;;  %v3687_v40 = vadd.f32 %v3686_v9, %v3646_v13  ;;  %v5061_v24 = vpop.f32.mrb[163].mxu1  ;;  %v3690_v2 = vmul.f32 0.5, %v3684_v6  ;;  %v5473_v9 = vld [vmem:[%s7170_s10 + $0x18] sm:$0xff]   ;;  %v5475_v6 = vld [vmem:[%s7170_s10 + $0x20] sm:$0xff]  }
 0x62b   :  { %5095 = vmatpush3.bf16.msra.mxu0 %v5473_v9  ;;  %v5478_v24 = vld [vmem:[%s7170_s10 + $0x38] sm:$0xff]  }
 0x62c   :  { %v4568_v17 = vclamps-f32 %v3692_v30, 4.0  ;;  %v3693_v49 = vmul.f32 0.70710677, %v3687_v40  ;;  %v3691_v43 = vmul.f32 0.5, %v3687_v40  ;;  %5096 = vmatprep.subr.bf16.mxu0 %v5524_v8  ;;  %v5476_v30 = vld [vmem:[%s7170_s10 + $0x28] sm:$0xff]   ;;  %v5477_v40 = vld [vmem:[%s7170_s10 + $0x30] sm:$0xff]  }
 0x62e   :  { %v3698_v15 = vmul.f32 %v4568_v17, %v4568_v17  ;;  %v4569_v35 = vclamps-f32 %v3693_v49, 4.0 }
 0x62f   :  { %5097 = vmatpush3.bf16.msra.mxu0 %v5475_v6 }
 0x630   :  { %v3700_v0 = vmul.f32 -2.7261424e-10, %v3698_v15  ;;  %v3726_v7 = vmul.f32 -1.45660715e-05, %v3698_v15  ;;  %v3699_v54 = vmul.f32 %v4569_v35, %v4569_v35  ;;  %5098 = vmatprep.subr.bf16.mxu0 %v5524_v8 }
 0x632   :  { %v3702_v1 = vadd.f32 2.7706815e-08, %v3700_v0  ;;  %v3728_v33 = vadd.f32 -0.00021337405, %v3726_v7  ;;  %v3701_v34 = vmul.f32 -2.7261424e-10, %v3699_v54 }
 0x633   :  { %v3727_v50 = vmul.f32 -1.45660715e-05, %v3699_v54  ;;  %5099 = vmatpush3.bf16.msra.mxu0 %v5476_v30 }
 0x634   :  { %v3704_v5 = vmul.f32 %v3702_v1, %v3698_v15  ;;  %v3730_v41 = vmul.f32 %v3728_v33, %v3698_v15  ;;  %v3703_v46 = vadd.f32 2.7706815e-08, %v3701_v34  ;;  %5100 = vmatprep.subr.bf16.mxu0 %v5524_v8 }
 0x635   :  { %v3729_v59 = vadd.f32 -0.00021337405, %v3727_v50 }
 0x636   :  { %v3706_v20 = vadd.f32 -2.101024e-06, %v3704_v5  ;;  %v3732_v3 = vadd.f32 -0.001682827, %v3730_v41  ;;  %v3705_v52 = vmul.f32 %v3703_v46, %v3699_v54 }
 0x637   :  { %v3731_v12 = vmul.f32 %v3729_v59, %v3699_v54  ;;  %5101 = vmatpush3.bf16.msra.mxu0 %v5477_v40 }
 0x638   :  { %v3708_v60 = vmul.f32 %v3706_v20, %v3698_v15  ;;  %v3734_v26 = vmul.f32 %v3732_v3, %v3698_v15  ;;  %v3707_v4 = vadd.f32 -2.101024e-06, %v3705_v52  ;;  %5102 = vmatprep.subr.bf16.mxu0 %v5524_v8 }
 0x639   :  { %v3733_v31 = vadd.f32 -0.001682827, %v3731_v12 }
 0x63a   :  { %v3710_v19 = vadd.f32 -5.6925062e-05, %v3708_v60  ;;  %v3736_v47 = vadd.f32 -0.0073733293, %v3734_v26  ;;  %v3709_v21 = vmul.f32 %v3707_v4, %v3699_v54 }
 0x63b   :  { %v3735_v42 = vmul.f32 %v3733_v31, %v3699_v54  ;;  %5103 = vmatpush3.bf16.msra.mxu0 %v5478_v24 }
 0x63c   :  { %v3712_v44 = vmul.f32 %v3710_v19, %v3698_v15  ;;  %v3738_v56 = vmul.f32 %v3736_v47, %v3698_v15  ;;  %v3711_v11 = vadd.f32 -5.6925062e-05, %v3709_v21 }
 0x63d   :  { %v3737_v55 = vadd.f32 -0.0073733293, %v3735_v42 }
 0x63e   :  { %v3714_v32 = vadd.f32 -0.00073499064, %v3712_v44  ;;  %v3740_v39 = vadd.f32 -0.014264739, %v3738_v56  ;;  %v3713_v61 = vmul.f32 %v3711_v11, %v3699_v54 }
 0x63f   :  { %v3739_v51 = vmul.f32 %v3737_v55, %v3699_v54 }
 0x640   :  { %v3716_v37 = vmul.f32 %v3714_v32, %v3698_v15  ;;  %5511 = vrcp.f32 %v3740_v39  ;;  %v3715_v63 = vadd.f32 -0.00073499064, %v3713_v61 }
 0x641   :  { %v3741_v10 = vadd.f32 -0.014264739, %v3739_v51 }
 0x642   :  { %v3718_v27 = vadd.f32 -0.0029546, %v3716_v37  ;;  %v3717_v28 = vmul.f32 %v3715_v63, %v3699_v54 }
 0x643   :  { %5513 = vrcp.f32 %v3741_v10 }
 0x644   :  { %v3720_v22 = vmul.f32 %v3718_v27, %v3698_v15  ;;  %v3719_v53 = vadd.f32 -0.0029546, %v3717_v28 }
 0x646   :  { %v3722_v18 = vadd.f32 -0.016096033, %v3720_v22  ;;  %v3721_v16 = vmul.f32 %v3719_v53, %v3699_v54 }
 0x648   :  { %v3724_v58 = vmul.f32 %v4568_v17, %v3722_v18  ;;  %v3723_v23 = vadd.f32 -0.016096033, %v3721_v16  ;;  %v4570_v17 = vld [vmem:[%s7172_s8] ss:$0 sm:$0xff] }
 0x64a   :  { %v5512_v29 = vpop.eup %5511  ;;  %v3725_v57 = vmul.f32 %v4569_v35, %v3723_v23 }
 0x64b   :  { %v3744_v36 = vmul.f32 %v5512_v29, %v3724_v58 }
 0x64d   :  { %v5514_v38 = vpop.eup %5513  ;;  %v3746_v25 = vadd.f32 1.0, %v3744_v36 }
 0x64e   :  { %v3745_v62 = vmul.f32 %v5514_v38, %v3725_v57 }
 0x64f   :  { %v3748_v13 = vmul.f32 %v3746_v25, %v3690_v2 }
 0x650   :  { %v3747_v14 = vadd.f32 1.0, %v3745_v62 }
 0x652   :  { %v3749_v48 = vmul.f32 %v3747_v14, %v3691_v43 }
 0x654   :  { %v3750_v45 = vpack.c.bf16 %v3749_v48, %v3748_v13 }
 0x656   :  { %5079 = vmatmul.mubr.bf16.vlgmr.msra.gmra.mrb[164].mxu1 %v3750_v45 }
 0x657   :  { %5084 = vmatprep.mubr.msk.bf16.mxu1 %vm5525_vm0, %v5524_v8 }
 0x729   :  { %v3856_v49 = vpop.f32.mrb[164].mxu1 }
 0x72a   :  { %v3857_v15 = vadd.f32 %v4570_v17, %v3856_v49  ;;  %v5080_v35 = vpop.f32.mrb[165].mxu1 }
 0x72b   :  { %v3859_v0 = vpop.f32.mrb[166].mxu1 }
 0x72c   :  { %v3865_v7 = vmul.f32 0.70710677, %v3857_v15  ;;  %v3860_v54 = vadd.f32 %v4570_v17, %v3859_v0  ;;  %v5081_v1 = vpop.f32.mrb[167].mxu1  ;;  %v3863_v30 = vmul.f32 0.5, %v3857_v15  ;;  %v5474_v0 = vld [vmem:[%s7171_s9] sm:$0xff]  }
 0x72e   :  { %v4579_v33 = vclamps-f32 %v3865_v7, 4.0  ;;  %v3866_v34 = vmul.f32 0.70710677, %v3860_v54  ;;  %v3864_v40 = vmul.f32 0.5, %v3860_v54 }
 0x730   :  { %v3871_v50 = vmul.f32 %v4579_v33, %v4579_v33  ;;  %v4580_v5 = vclamps-f32 %v3866_v34, 4.0  ;;  %v5479_v34 = vld [vmem:[%s7173_s12] sm:$0xff]  }
 0x732   :  { %v3873_v41 = vmul.f32 -2.7261424e-10, %v3871_v50  ;;  %v3899_v46 = vmul.f32 -1.45660715e-05, %v3871_v50  ;;  %v3872_v59 = vmul.f32 %v4580_v5, %v4580_v5 }
 0x734   :  { %v3875_v20 = vadd.f32 2.7706815e-08, %v3873_v41  ;;  %v3901_v3 = vadd.f32 -0.00021337405, %v3899_v46  ;;  %v3874_v52 = vmul.f32 -2.7261424e-10, %v3872_v59 }
 0x735   :  { %v3900_v12 = vmul.f32 -1.45660715e-05, %v3872_v59  ;;  %v5482_v41 = vld [vmem:[%s7173_s12 + $0x18] sm:$0xff]   ;;  %v5483_v46 = vld [vmem:[%s7173_s12 + $0x20] sm:$0xff]  }
 0x736   :  { %v3877_v60 = vmul.f32 %v3875_v20, %v3871_v50  ;;  %v3903_v26 = vmul.f32 %v3901_v3, %v3871_v50  ;;  %v3876_v4 = vadd.f32 2.7706815e-08, %v3874_v52  ;;  %v5485_v20 = vld [vmem:[%s7173_s12 + $0x30] sm:$0xff]   ;;  %v5486_v3 = vld [vmem:[%s7173_s12 + $0x38] sm:$0xff]   ;;  %v4583_v52 = vld [vmem:[%s7174_s11] ss:$0 sm:$0xff] }
 0x737   :  { %v3902_v31 = vadd.f32 -0.00021337405, %v3900_v12 }
 0x738   :  { %v3879_v19 = vadd.f32 -2.101024e-06, %v3877_v60  ;;  %v3905_v47 = vadd.f32 -0.001682827, %v3903_v26  ;;  %v3878_v21 = vmul.f32 %v3876_v4, %v3872_v59 }
 0x739   :  { %v3904_v42 = vmul.f32 %v3902_v31, %v3872_v59 }
 0x73a   :  { %v3881_v44 = vmul.f32 %v3879_v19, %v3871_v50  ;;  %v3907_v56 = vmul.f32 %v3905_v47, %v3871_v50  ;;  %v3880_v11 = vadd.f32 -2.101024e-06, %v3878_v21 }
 0x73b   :  { %v3906_v55 = vadd.f32 -0.001682827, %v3904_v42 }
 0x73c   :  { %v3883_v32 = vadd.f32 -5.6925062e-05, %v3881_v44  ;;  %v3909_v39 = vadd.f32 -0.0073733293, %v3907_v56  ;;  %v3882_v61 = vmul.f32 %v3880_v11, %v3872_v59 }
 0x73d   :  { %v3908_v51 = vmul.f32 %v3906_v55, %v3872_v59 }
 0x73e   :  { %v3885_v37 = vmul.f32 %v3883_v32, %v3871_v50  ;;  %v3911_v63 = vmul.f32 %v3909_v39, %v3871_v50  ;;  %v3884_v10 = vadd.f32 -5.6925062e-05, %v3882_v61 }
 0x73f   :  { %v3910_v27 = vadd.f32 -0.0073733293, %v3908_v51 }
 0x740   :  { %v3887_v28 = vadd.f32 -0.00073499064, %v3885_v37  ;;  %v3913_v22 = vadd.f32 -0.014264739, %v3911_v63  ;;  %v3886_v53 = vmul.f32 %v3884_v10, %v3872_v59 }
 0x741   :  { %v3912_v18 = vmul.f32 %v3910_v27, %v3872_v59 }
 0x742   :  { %v3889_v16 = vmul.f32 %v3887_v28, %v3871_v50  ;;  %5515 = vrcp.f32 %v3913_v22  ;;  %v3888_v58 = vadd.f32 -0.00073499064, %v3886_v53 }
 0x743   :  { %v3914_v23 = vadd.f32 -0.014264739, %v3912_v18 }
 0x744   :  { %v3891_v29 = vadd.f32 -0.0029546, %v3889_v16  ;;  %v3890_v57 = vmul.f32 %v3888_v58, %v3872_v59 }
 0x745   :  { %5517 = vrcp.f32 %v3914_v23 }
 0x746   :  { %v3893_v36 = vmul.f32 %v3891_v29, %v3871_v50  ;;  %v3892_v38 = vadd.f32 -0.0029546, %v3890_v57  ;;  %v5480_v50 = vld [vmem:[%s7173_s12 + $0x8] sm:$0xff]  }
 0x748   :  { %v3895_v25 = vadd.f32 -0.016096033, %v3893_v36  ;;  %v3894_v62 = vmul.f32 %v3892_v38, %v3872_v59  ;;  %v5484_v59 = vld [vmem:[%s7173_s12 + $0x28] sm:$0xff]  }
 0x74a   :  { %v3897_v2 = vmul.f32 %v4579_v33, %v3895_v25  ;;  %v3896_v43 = vadd.f32 -0.016096033, %v3894_v62 }
 0x74c   :  { %v5516_v14 = vpop.eup %5515  ;;  %v3898_v13 = vmul.f32 %v4580_v5, %v3896_v43  ;;  %v5481_v5 = vld [vmem:[%s7173_s12 + $0x10] sm:$0xff]  }
 0x74d   :  { %v3917_v48 = vmul.f32 %v5516_v14, %v3897_v2 }
 0x74f   :  { %v5518_v45 = vpop.eup %5517  ;;  %v3919_v9 = vadd.f32 1.0, %v3917_v48 }
 0x750   :  { %v3918_v6 = vmul.f32 %v5518_v45, %v3898_v13 }
 0x751   :  { %v3921_v17 = vmul.f32 %v3919_v9, %v3863_v30 }
 0x752   :  { %v3920_v24 = vadd.f32 1.0, %v3918_v6 }
 0x754   :  { %v3922_v49 = vmul.f32 %v3920_v24, %v3864_v40 }
 0x756   :  { %v3923_v35 = vpack.c.bf16 %v3922_v49, %v3921_v17 }
 0x758   :  { %5083 = vmatpush3.bf16.msra.mxu1 %v3923_v35 }
 0x759   :  { %5108 = vmatprep.subr.bf16.mxu1 %v5524_v8 }
 0x75b   :  { %5085 = vmatmul.mubr.msk.bf16.vlgmr.msra.gmra.mrb[168].mxu1 %vm3931_vm2, %v5474_v0 }
 0x75c   :  { %5124 = vmatprep.mubr.msk.bf16.mxu1 %vm5525_vm0, %v5524_v8  ;;  %5109 = vmatpush3.bf16.msra.mxu1 %v5479_v34 }
 0x75d   :  { %5110 = vmatprep.subr.bf16.mxu1 %v5524_v8 }
 0x760   :  { %5111 = vmatpush3.bf16.msra.mxu1 %v5480_v50 }
 0x761   :  { %5112 = vmatprep.subr.bf16.mxu1 %v5524_v8 }
 0x764   :  { %5113 = vmatpush3.bf16.msra.mxu1 %v5481_v5 }
 0x765   :  { %5114 = vmatprep.subr.bf16.mxu1 %v5524_v8 }
 0x768   :  { %5115 = vmatpush3.bf16.msra.mxu1 %v5482_v41 }
 0x769   :  { %5116 = vmatprep.subr.bf16.mxu1 %v5524_v8 }
 0x76c   :  { %5117 = vmatpush3.bf16.msra.mxu1 %v5483_v46 }
 0x76d   :  { %5118 = vmatprep.subr.bf16.mxu1 %v5524_v8 }
 0x770   :  { %5119 = vmatpush3.bf16.msra.mxu1 %v5484_v59 }
 0x771   :  { %5120 = vmatprep.subr.bf16.mxu1 %v5524_v8 }
 0x774   :  { %5121 = vmatpush3.bf16.msra.mxu1 %v5485_v20 }
 0x775   :  { %5122 = vmatprep.subr.bf16.mxu1 %v5524_v8 }
 0x778   :  { %5123 = vmatpush3.bf16.msra.mxu1 %v5486_v3 }
 0x82e   :  { %v3969_v7 = vpop.f32.mrb[168].mxu1 }
 0x82f   :  { %v5086_v1 = vpop.f32.mrb[169].mxu1 }
 0x830   :  { %v3972_v15 = vpop.f32.mrb[170].mxu1 }
 0x831   :  { %v3976_v54 = vpack.c.bf16 %v3972_v15, %v3969_v7  ;;  %v5087_v33 = vpop.f32.mrb[171].mxu1 }
 0x833   :  { %5105 = vmatmul.mubr.bf16.vlgmr.msra.gmra.mrb[216].mxu0 %v3976_v54 }
 0x906   :  { %v4082_v12 = vpop.f32.mrb[216].mxu0 }
 0x907   :  { %v4083_v60 = vadd.f32 %v4583_v52, %v4082_v12  ;;  %v5106_v26 = vpop.f32.mrb[217].mxu0 }
 0x908   :  { %v4085_v4 = vpop.f32.mrb[218].mxu0  ;;  %v4594_v26 = vld [vmem:[%s7175_s13] ss:$0 sm:$0xff] }
 0x909   :  { %v4091_v31 = vmul.f32 0.70710677, %v4083_v60  ;;  %v4086_v19 = vadd.f32 %v4583_v52, %v4085_v4  ;;  %v5107_v47 = vpop.f32.mrb[219].mxu0  ;;  %v4089_v46 = vmul.f32 0.5, %v4083_v60 }
 0x90b   :  { %v4592_v21 = vclamps-f32 %v4091_v31, 4.0  ;;  %v4092_v42 = vmul.f32 0.70710677, %v4086_v19  ;;  %v4090_v59 = vmul.f32 0.5, %v4086_v19 }
 0x90d   :  { %v4097_v44 = vmul.f32 %v4592_v21, %v4592_v21  ;;  %v4593_v8 = vclamps-f32 %v4092_v42, 4.0 }
 0x90f   :  { %v4099_v56 = vmul.f32 -2.7261424e-10, %v4097_v44  ;;  %v4125_v11 = vmul.f32 -1.45660715e-05, %v4097_v44  ;;  %v4098_v55 = vmul.f32 %v4593_v8, %v4593_v8 }
 0x911   :  { %v4101_v32 = vadd.f32 2.7706815e-08, %v4099_v56  ;;  %v4127_v39 = vadd.f32 -0.00021337405, %v4125_v11  ;;  %v4100_v61 = vmul.f32 -2.7261424e-10, %v4098_v55 }
 0x912   :  { %v4126_v51 = vmul.f32 -1.45660715e-05, %v4098_v55 }
 0x913   :  { %v4103_v37 = vmul.f32 %v4101_v32, %v4097_v44  ;;  %v4129_v63 = vmul.f32 %v4127_v39, %v4097_v44  ;;  %v4102_v10 = vadd.f32 2.7706815e-08, %v4100_v61 }
 0x914   :  { %v4128_v27 = vadd.f32 -0.00021337405, %v4126_v51 }
 0x915   :  { %v4105_v28 = vadd.f32 -2.101024e-06, %v4103_v37  ;;  %v4131_v22 = vadd.f32 -0.001682827, %v4129_v63  ;;  %v4104_v53 = vmul.f32 %v4102_v10, %v4098_v55 }
 0x916   :  { %v4130_v18 = vmul.f32 %v4128_v27, %v4098_v55 }
 0x917   :  { %v4107_v16 = vmul.f32 %v4105_v28, %v4097_v44  ;;  %v4133_v58 = vmul.f32 %v4131_v22, %v4097_v44  ;;  %v4106_v23 = vadd.f32 -2.101024e-06, %v4104_v53 }
 0x918   :  { %v4132_v29 = vadd.f32 -0.001682827, %v4130_v18 }
 0x919   :  { %v4109_v57 = vadd.f32 -5.6925062e-05, %v4107_v16  ;;  %v4135_v36 = vadd.f32 -0.0073733293, %v4133_v58  ;;  %v4108_v38 = vmul.f32 %v4106_v23, %v4098_v55 }
 0x91a   :  { %v4134_v25 = vmul.f32 %v4132_v29, %v4098_v55 }
 0x91b   :  { %v4111_v62 = vmul.f32 %v4109_v57, %v4097_v44  ;;  %v4137_v2 = vmul.f32 %v4135_v36, %v4097_v44  ;;  %v4110_v43 = vadd.f32 -5.6925062e-05, %v4108_v38 }
 0x91c   :  { %v4136_v14 = vadd.f32 -0.0073733293, %v4134_v25 }
 0x91d   :  { %v4113_v13 = vadd.f32 -0.00073499064, %v4111_v62  ;;  %v4139_v48 = vadd.f32 -0.014264739, %v4137_v2  ;;  %v4112_v45 = vmul.f32 %v4110_v43, %v4098_v55 }
 0x91e   :  { %v4138_v9 = vmul.f32 %v4136_v14, %v4098_v55 }
 0x91f   :  { %v4115_v6 = vmul.f32 %v4113_v13, %v4097_v44  ;;  %5519 = vrcp.f32 %v4139_v48  ;;  %v4114_v30 = vadd.f32 -0.00073499064, %v4112_v45 }
 0x920   :  { %v4140_v40 = vadd.f32 -0.014264739, %v4138_v9 }
 0x921   :  { %v4117_v24 = vadd.f32 -0.0029546, %v4115_v6  ;;  %v4116_v17 = vmul.f32 %v4114_v30, %v4098_v55 }
 0x922   :  { %5521 = vrcp.f32 %v4140_v40 }
 0x923   :  { %v4119_v49 = vmul.f32 %v4117_v24, %v4097_v44  ;;  %v4118_v35 = vadd.f32 -0.0029546, %v4116_v17 }
 0x925   :  { %v4121_v0 = vadd.f32 -0.016096033, %v4119_v49  ;;  %v4120_v7 = vmul.f32 %v4118_v35, %v4098_v55 }
 0x927   :  { %v4123_v1 = vmul.f32 %v4592_v21, %v4121_v0  ;;  %v4122_v15 = vadd.f32 -0.016096033, %v4120_v7 }
 0x929   :  { %v5520_v54 = vpop.eup %5519  ;;  %v4124_v33 = vmul.f32 %v4593_v8, %v4122_v15 }
 0x92a   :  { %v4143_v34 = vmul.f32 %v5520_v54, %v4123_v1 }
 0x92c   :  { %v5522_v50 = vpop.eup %5521  ;;  %v4145_v5 = vadd.f32 1.0, %v4143_v34 }
 0x92d   :  { %v4144_v41 = vmul.f32 %v5522_v50, %v4124_v33 }
 0x92e   :  { %v4147_v3 = vmul.f32 %v4145_v5, %v4089_v46 }
 0x92f   :  { %v4146_v20 = vadd.f32 1.0, %v4144_v41 }
 0x931   :  { %v4148_v52 = vmul.f32 %v4146_v20, %v4090_v59 }
 0x933   :  { %v4149_v12 = vpack.c.bf16 %v4148_v52, %v4147_v3 }
 0x935   :  { %5125 = vmatmul.mubr.bf16.vlgmr.msra.gmra.mrb[172].mxu1 %v4149_v12 }
 0xa08   :  { %v4255_v4 = vpop.f32.mrb[172].mxu1 }
 0xa09   :  { %v4256_v31 = vadd.f32 %v4594_v26, %v4255_v4  ;;  %v5126_v47 = vpop.f32.mrb[173].mxu1 }
 0xa0a   :  { %v4258_v21 = vpop.f32.mrb[174].mxu1 }
 0xa0b   :  { %4262 = vst [vmem:[%s7176_s14] sm:$0xff] %v4256_v31  ;;  %v4259_v42 = vadd.f32 %v4594_v26, %v4258_v21  ;;  %v5127_v60 = vpop.f32.mrb[175].mxu1 }
 0xa0d   :  { %4263 = vst [vmem:[%s7176_s14 + $0x8] sm:$0xff] %v4259_v42 }

</bundles_post_ra>
